<compile_context>
chip_gen: v7x
topology: tpu7x:2x2x1
jax: 0.10.0
libtpu: 0.0.40
codegen_flags: <defaults>
</compile_context>

<pallas_src>
import math

import jax
import jax.numpy as jnp
from jax.experimental import pallas as pl
from jax.experimental.pallas import tpu as pltpu

CIN, COUT = 3, 64
KW = 3                        # Conv2d kernel is (1, 3): height 1, width 3
H, WIN = 32, 34
WOUT = WIN - KW + 1           # 32
HP = H * WOUT                 # 1024 (lane-dense conv output width)
FLAT = COUT * HP              # 65536 -> matches Linear(65536, 13)
NOUT = 13
EPS = 1e-5

NCORE = 2                     # split the K reduction across (up to) 2 TensorCores
TK = 16384                    # per-step K tile of the Linear reduction
KSTEPS = FLAT // (NCORE * TK)  # 2 K-steps per core
assert NCORE * KSTEPS * TK == FLAT


def conv_bn_kernel(a_ref, w_ref, b_ref, o_ref):
    # a_ref: (N, CIN*KW, HP) f32 im2col patches
    # w_ref: (COUT, CIN*KW)  f32 BN-folded conv weight
    # b_ref: (COUT, 1)       f32 BN-folded bias
    # o_ref: (N, COUT, HP)   bf16, lane-dense, already torch Flatten (C,H,W) order
    n_batch = o_ref.shape[0]
    for n in range(n_batch):                       # tiny static batch loop
        conv = jnp.dot(w_ref[...], a_ref[n],
                       preferred_element_type=jnp.float32) + b_ref[...]
        o_ref[n] = conv.astype(o_ref.dtype)


def linear_partial_kernel(x_ref, w_ref, p_ref, acc_ref):
    # x_ref: (N, TK)        bf16 activation chunk
    # w_ref: (NOUT, TK)     bf16 weight chunk (big dim on lanes -> natural MXU LHS)
    # p_ref: (1, NOUT, N)   f32 per-core partial output
    # acc_ref: (NOUT, N)    f32 scratch accumulator
    k = pl.program_id(1)

    @pl.when(k == 0)
    def _():
        acc_ref[...] = jnp.zeros_like(acc_ref)

    # Weight tile is the LHS in its natural layout; only the tiny (N, TK)
    # activation tile needs relayout for the lane-lane contraction.
    acc_ref[...] += jax.lax.dot_general(
        w_ref[...], x_ref[...],
        dimension_numbers=(((1,), (1,)), ((), ())),
        preferred_element_type=jnp.float32)

    @pl.when(k == pl.num_programs(1) - 1)
    def _():
        p_ref[0] = acc_ref[...]


def model_forward(x_nchw, params):
    (cw, cb, gamma, beta, rmean, rvar, lw, lb) = params
    N = x_nchw.shape[0]

    # ---- tiny param prep: fold BatchNorm (inference) into conv weight / bias
    scale = gamma * jax.lax.rsqrt(rvar + EPS)                      # (COUT,)
    w_fold = (cw * scale[:, None, None]).reshape(COUT, CIN * KW)   # (64, 9)
    b_fold = ((cb - rmean) * scale + beta).reshape(COUT, 1)        # (64, 1)

    # bf16 weight streaming (identity if the param is already stored in bf16,
    # which is how it is passed from __main__ -> one-time cost, not per call).
    lw_bf = lw.astype(jnp.bfloat16)                                # (13, 65536)

    # ---- glue: im2col of the tiny input so the conv is one lane-dense matmul
    # A[n, ci*KW+kw, h*WOUT+w] = x[n, ci, h, w+kw]
    patches = jnp.stack([x_nchw[:, :, :, kw:kw + WOUT] for kw in range(KW)],
                        axis=2)                                    # (N,CIN,KW,H,WOUT)
    a = patches.reshape(N, CIN * KW, HP)                           # (N, 9, 1024)

    conv_out = pl.pallas_call(
        conv_bn_kernel,
        out_shape=jax.ShapeDtypeStruct((N, COUT, HP), jnp.bfloat16),
        grid=(1,),
        in_specs=[
            pl.BlockSpec((N, CIN * KW, HP), lambda i: (0, 0, 0)),
            pl.BlockSpec((COUT, CIN * KW), lambda i: (0, 0)),
            pl.BlockSpec((COUT, 1), lambda i: (0, 0)),
        ],
        out_specs=pl.BlockSpec((N, COUT, HP), lambda i: (0, 0, 0)),
        compiler_params=pltpu.CompilerParams(
            dimension_semantics=("arbitrary",)),
    )(a, w_fold, b_fold)

    # (N, COUT, H*WOUT) is already torch Flatten (C, H, W) order -> free reshape
    flat = conv_out.reshape(N, FLAT)                               # bf16

    partials = pl.pallas_call(
        linear_partial_kernel,
        out_shape=jax.ShapeDtypeStruct((NCORE, NOUT, N), jnp.float32),
        grid=(NCORE, KSTEPS),
        in_specs=[
            pl.BlockSpec((N, TK), lambda c, k: (0, c * KSTEPS + k)),
            pl.BlockSpec((NOUT, TK), lambda c, k: (0, c * KSTEPS + k)),
        ],
        out_specs=pl.BlockSpec((1, NOUT, N), lambda c, k: (c, 0, 0)),
        scratch_shapes=[pltpu.VMEM((NOUT, N), jnp.float32)],
        compiler_params=pltpu.CompilerParams(
            dimension_semantics=("parallel", "arbitrary")),
    )(flat, lw_bf)

    # tiny epilogue: combine per-core partials, add bias, ReLU  -> (N, NOUT)
    out = jnp.maximum(jnp.sum(partials, axis=0).T + lb[None, :], 0.0)
    return out


def reference(x_nchw, params):
    (cw, cb, gamma, beta, rmean, rvar, lw, lb) = params
    w4 = cw.reshape(COUT, CIN, 1, KW)
    conv = jax.lax.conv_general_dilated(
        x_nchw, w4, window_strides=(1, 1), padding="VALID",
        dimension_numbers=("NCHW", "OIHW", "NCHW"))
    conv = conv + cb.reshape(1, COUT, 1, 1)
    bn = (conv - rmean.reshape(1, COUT, 1, 1)) \
        * jax.lax.rsqrt(rvar.reshape(1, COUT, 1, 1) + EPS)
    bn = bn * gamma.reshape(1, COUT, 1, 1) + beta.reshape(1, COUT, 1, 1)
    flat = bn.reshape(x_nchw.shape[0], -1)
    y = flat @ lw.T + lb.reshape(1, NOUT)
    return jnp.maximum(y, 0.0)


if __name__ == "__main__":
    key = jax.random.PRNGKey(0)
    ks = jax.random.split(key, 9)
    N = 2

    # input shaped so that 64 * H_out * W_out == 65536 (required by the Linear)
    x = jax.random.normal(ks[0], (N, CIN, H, WIN), jnp.float32)

    conv_bound = 1.0 / math.sqrt(CIN * 1 * KW)
    cw = jax.random.uniform(ks[1], (COUT, CIN, KW), jnp.float32,
                            -conv_bound, conv_bound)
    cb = jax.random.uniform(ks[2], (COUT,), jnp.float32,
                            -conv_bound, conv_bound)
    gamma = jax.random.uniform(ks[3], (COUT,), jnp.float32, 0.5, 1.5)
    beta = 0.1 * jax.random.normal(ks[4], (COUT,), jnp.float32)
    rmean = 0.1 * jax.random.normal(ks[5], (COUT,), jnp.float32)
    rvar = jax.random.uniform(ks[6], (COUT,), jnp.float32, 0.5, 1.5)

    lin_bound = 1.0 / math.sqrt(FLAT)
    lw = jax.random.uniform(ks[7], (NOUT, FLAT), jnp.float32,
                            -lin_bound, lin_bound)   # torch (out, in) layout
    lb = jax.random.uniform(ks[8], (NOUT,), jnp.float32,
                            -lin_bound, lin_bound)

    params_f32 = (cw, cb, gamma, beta, rmean, rvar, lw, lb)
    # Store the big Linear weight in bf16 once (outside the jitted forward) so
    # the kernel streams half the HBM bytes without a per-call cast.
    params = (cw, cb, gamma, beta, rmean, rvar, lw.astype(jnp.bfloat16), lb)

    fwd = jax.jit(model_forward)
    out = jax.block_until_ready(fwd(x, params))
    ref = jax.block_until_ready(reference(x, params_f32))

    assert out.shape == (N, NOUT), out.shape
    max_err = float(jnp.max(jnp.abs(out - ref)))
    if not (max_err < 5e-2):
        raise AssertionError(f"mismatch vs reference: max abs err {max_err}")
    print("KERNEL_OK")
</pallas_src>

<mosaic_0001>
module attributes {stable_mosaic.version = 11 : i64} {
  func.func @conv_bn_kernel(%arg0: i32, %arg1: memref<2x9x1024xf32, #tpu.memory_space<vmem>>, %arg2: memref<64x9xf32, #tpu.memory_space<vmem>>, %arg3: memref<64x1xf32, #tpu.memory_space<vmem>>, %arg4: memref<2x64x1024xbf16, #tpu.memory_space<vmem>>) attributes {dimension_semantics = [#tpu.dimension_semantics<arbitrary>], iteration_bounds = array<i64: 1>, scalar_prefetch = 0 : i64, scratch_operands = 0 : i64, tpu.core_type = #tpu.core_type<tc>, window_params = [{pipeline_mode = #tpu.pipeline_mode<synchronous>, transform_indices = @transform_0, window_bounds = array<i64: 2, 9, 1024>}, {pipeline_mode = #tpu.pipeline_mode<synchronous>, transform_indices = @transform_1, window_bounds = array<i64: 64, 9>}, {pipeline_mode = #tpu.pipeline_mode<synchronous>, transform_indices = @transform_2, window_bounds = array<i64: 64, 1>}, {pipeline_mode = #tpu.pipeline_mode<synchronous>, transform_indices = @transform_3, window_bounds = array<i64: 2, 64, 1024>}]} {
    %c0 = arith.constant 0 : index
    %c0_0 = arith.constant 0 : index
    %0 = vector.load %arg2[%c0, %c0_0] : memref<64x9xf32, #tpu.memory_space<vmem>>, vector<64x9xf32>
    %c0_1 = arith.constant 0 : index
    %c0_2 = arith.constant 0 : index
    %c0_3 = arith.constant 0 : index
    %1 = vector.load %arg1[%c0_1, %c0_2, %c0_3] : memref<2x9x1024xf32, #tpu.memory_space<vmem>>, vector<1x9x1024xf32>
    %2 = vector.shape_cast %1 : vector<1x9x1024xf32> to vector<9x1024xf32>
    %cst = arith.constant dense<0.000000e+00> : vector<64x1024xf32>
    %3 = tpu.matmul %0, %2, %cst {dimension_numbers = #tpu.dot_dimension_numbers<[1], [0], [0], [1], [0, 0, 1, 1], [], []>} : vector<64x9xf32>, vector<9x1024xf32>, vector<64x1024xf32> -> vector<64x1024xf32>
    %c0_4 = arith.constant 0 : index
    %c0_5 = arith.constant 0 : index
    %4 = vector.load %arg3[%c0_4, %c0_5] : memref<64x1xf32, #tpu.memory_space<vmem>>, vector<64x1xf32>
    %5 = vector.broadcast %4 : vector<64x1xf32> to vector<64x1024xf32>
    %6 = arith.addf %3, %5 : vector<64x1024xf32>
    %7 = arith.truncf %6 : vector<64x1024xf32> to vector<64x1024xbf16>
    %c0_6 = arith.constant 0 : index
    %c0_7 = arith.constant 0 : index
    %c0_8 = arith.constant 0 : index
    %8 = vector.load %arg4[%c0_6, %c0_7, %c0_8] : memref<2x64x1024xbf16, #tpu.memory_space<vmem>>, vector<1x64x1024xbf16>
    %9 = vector.shape_cast %8 : vector<1x64x1024xbf16> to vector<64x1024xbf16>
    %10 = vector.shape_cast %7 : vector<64x1024xbf16> to vector<1x64x1024xbf16>
    tpu.vector_store %arg4[%c0_6, %c0_7, %c0_8], %10 {strides = array<i32>} : memref<2x64x1024xbf16, #tpu.memory_space<vmem>>, vector<1x64x1024xbf16>,
    %c0_9 = arith.constant 0 : index
    %c0_10 = arith.constant 0 : index
    %11 = vector.load %arg2[%c0_9, %c0_10] : memref<64x9xf32, #tpu.memory_space<vmem>>, vector<64x9xf32>
    %c1 = arith.constant 1 : index
    %c0_11 = arith.constant 0 : index
    %c0_12 = arith.constant 0 : index
    %12 = vector.load %arg1[%c1, %c0_11, %c0_12] : memref<2x9x1024xf32, #tpu.memory_space<vmem>>, vector<1x9x1024xf32>
    %13 = vector.shape_cast %12 : vector<1x9x1024xf32> to vector<9x1024xf32>
    %cst_13 = arith.constant dense<0.000000e+00> : vector<64x1024xf32>
    %14 = tpu.matmul %11, %13, %cst_13 {dimension_numbers = #tpu.dot_dimension_numbers<[1], [0], [0], [1], [0, 0, 1, 1], [], []>} : vector<64x9xf32>, vector<9x1024xf32>, vector<64x1024xf32> -> vector<64x1024xf32>
    %c0_14 = arith.constant 0 : index
    %c0_15 = arith.constant 0 : index
    %15 = vector.load %arg3[%c0_14, %c0_15] : memref<64x1xf32, #tpu.memory_space<vmem>>, vector<64x1xf32>
    %16 = vector.broadcast %15 : vector<64x1xf32> to vector<64x1024xf32>
    %17 = arith.addf %14, %16 : vector<64x1024xf32>
    %18 = arith.truncf %17 : vector<64x1024xf32> to vector<64x1024xbf16>
    %c1_16 = arith.constant 1 : index
    %c0_17 = arith.constant 0 : index
    %c0_18 = arith.constant 0 : index
    %19 = vector.load %arg4[%c1_16, %c0_17, %c0_18] : memref<2x64x1024xbf16, #tpu.memory_space<vmem>>, vector<1x64x1024xbf16>
    %20 = vector.shape_cast %19 : vector<1x64x1024xbf16> to vector<64x1024xbf16>
    %21 = vector.shape_cast %18 : vector<64x1024xbf16> to vector<1x64x1024xbf16>
    tpu.vector_store %arg4[%c1_16, %c0_17, %c0_18], %21 {strides = array<i32>} : memref<2x64x1024xbf16, #tpu.memory_space<vmem>>, vector<1x64x1024xbf16>,
    return
  }
  func.func @transform_0(%arg0: i32) -> (i32, i32, i32) {
    %c0_i32 = arith.constant 0 : i32
    %c0_i32_0 = arith.constant 0 : i32
    %c0_i32_1 = arith.constant 0 : i32
    %c0_i32_2 = arith.constant 0 : i32
    return %c0_i32, %c0_i32_0, %c0_i32_1 : i32, i32, i32
  }
  func.func @transform_1(%arg0: i32) -> (i32, i32) {
    %c0_i32 = arith.constant 0 : i32
    %c0_i32_0 = arith.constant 0 : i32
    %c0_i32_1 = arith.constant 0 : i32
    return %c0_i32, %c0_i32_0 : i32, i32
  }
  func.func @transform_2(%arg0: i32) -> (i32, i32) {
    %c0_i32 = arith.constant 0 : i32
    %c0_i32_0 = arith.constant 0 : i32
    %c0_i32_1 = arith.constant 0 : i32
    return %c0_i32, %c0_i32_0 : i32, i32
  }
  func.func @transform_3(%arg0: i32) -> (i32, i32, i32) {
    %c0_i32 = arith.constant 0 : i32
    %c0_i32_0 = arith.constant 0 : i32
    %c0_i32_1 = arith.constant 0 : i32
    %c0_i32_2 = arith.constant 0 : i32
    return %c0_i32, %c0_i32_0, %c0_i32_1 : i32, i32, i32
  }
}

module attributes {stable_mosaic.version = 11 : i64} {
  func.func @linear_partial_kernel(%arg0: i32, %arg1: i32, %arg2: memref<2x16384xbf16, #tpu.memory_space<vmem>>, %arg3: memref<13x16384xbf16, #tpu.memory_space<vmem>>, %arg4: memref<1x13x2xf32, #tpu.memory_space<vmem>>, %arg5: memref<13x2xf32, #tpu.memory_space<vmem>>) attributes {dimension_semantics = [#tpu.dimension_semantics<parallel>, #tpu.dimension_semantics<arbitrary>], iteration_bounds = array<i64: 2, 2>, scalar_prefetch = 0 : i64, scratch_operands = 1 : i64, tpu.core_type = #tpu.core_type<tc>, window_params = [{transform_indices = @transform_0, window_bounds = array<i64: 2, 16384>}, {transform_indices = @transform_1, window_bounds = array<i64: 13, 16384>}, {transform_indices = @transform_2, window_bounds = array<i64: 1, 13, 2>}]} {
    %c0_i32 = arith.constant 0 : i32
    %0 = arith.cmpi eq, %arg1, %c0_i32 : i32
    %1 = arith.extui %0 : i1 to i32
    %c0_i32_0 = arith.constant 0 : i32
    %2 = arith.cmpi ne, %1, %c0_i32_0 : i32
    scf.if %2 {
      %cst_9 = arith.constant 0.000000e+00 : f32
      %12 = vector.broadcast %cst_9 : f32 to vector<13x2xf32>
      %c0_10 = arith.constant 0 : index
      %c0_11 = arith.constant 0 : index
      %13 = vector.load %arg5[%c0_10, %c0_11] : memref<13x2xf32, #tpu.memory_space<vmem>>, vector<13x2xf32>
      tpu.vector_store %arg5[%c0_10, %c0_11], %12 {strides = array<i32>} : memref<13x2xf32, #tpu.memory_space<vmem>>, vector<13x2xf32>,
    } else {
    }
    %c0 = arith.constant 0 : index
    %c0_1 = arith.constant 0 : index
    %3 = vector.load %arg5[%c0, %c0_1] : memref<13x2xf32, #tpu.memory_space<vmem>>, vector<13x2xf32>
    %c0_2 = arith.constant 0 : index
    %c0_3 = arith.constant 0 : index
    %4 = vector.load %arg3[%c0_2, %c0_3] : memref<13x16384xbf16, #tpu.memory_space<vmem>>, vector<13x16384xbf16>
    %c0_4 = arith.constant 0 : index
    %c0_5 = arith.constant 0 : index
    %5 = vector.load %arg2[%c0_4, %c0_5] : memref<2x16384xbf16, #tpu.memory_space<vmem>>, vector<2x16384xbf16>
    %cst = arith.constant dense<0.000000e+00> : vector<13x2xf32>
    %6 = tpu.matmul %4, %5, %cst {dimension_numbers = #tpu.dot_dimension_numbers<[1], [1], [0], [0], [0, 0, 1, 0], [], []>} : vector<13x16384xbf16>, vector<2x16384xbf16>, vector<13x2xf32> -> vector<13x2xf32>
    %7 = arith.addf %3, %6 : vector<13x2xf32>
    %c0_6 = arith.constant 0 : index
    %c0_7 = arith.constant 0 : index
    %8 = vector.load %arg5[%c0_6, %c0_7] : memref<13x2xf32, #tpu.memory_space<vmem>>, vector<13x2xf32>
    tpu.vector_store %arg5[%c0_6, %c0_7], %7 {strides = array<i32>} : memref<13x2xf32, #tpu.memory_space<vmem>>, vector<13x2xf32>,
    %c1_i32 = arith.constant 1 : i32
    %9 = arith.cmpi eq, %arg1, %c1_i32 : i32
    %10 = arith.extui %9 : i1 to i32
    %c0_i32_8 = arith.constant 0 : i32
    %11 = arith.cmpi ne, %10, %c0_i32_8 : i32
    scf.if %11 {
      %c0_9 = arith.constant 0 : index
      %c0_10 = arith.constant 0 : index
      %12 = vector.load %arg5[%c0_9, %c0_10] : memref<13x2xf32, #tpu.memory_space<vmem>>, vector<13x2xf32>
      %c0_11 = arith.constant 0 : index
      %c0_12 = arith.constant 0 : index
      %c0_13 = arith.constant 0 : index
      %13 = vector.load %arg4[%c0_11, %c0_12, %c0_13] : memref<1x13x2xf32, #tpu.memory_space<vmem>>, vector<1x13x2xf32>
      %14 = vector.shape_cast %13 : vector<1x13x2xf32> to vector<13x2xf32>
      %15 = vector.shape_cast %12 : vector<13x2xf32> to vector<1x13x2xf32>
      tpu.vector_store %arg4[%c0_11, %c0_12, %c0_13], %15 {strides = array<i32>} : memref<1x13x2xf32, #tpu.memory_space<vmem>>, vector<1x13x2xf32>,
    } else {
    }
    return
  }
  func.func @transform_0(%arg0: i32, %arg1: i32) -> (i32, i32) {
    %c2_i32 = arith.constant 2 : i32
    %0 = arith.muli %arg0, %c2_i32 : i32
    %1 = arith.addi %0, %arg1 : i32
    %c0_i32 = arith.constant 0 : i32
    %c0_i32_0 = arith.constant 0 : i32
    return %c0_i32, %1 : i32, i32
  }
  func.func @transform_1(%arg0: i32, %arg1: i32) -> (i32, i32) {
    %c2_i32 = arith.constant 2 : i32
    %0 = arith.muli %arg0, %c2_i32 : i32
    %1 = arith.addi %0, %arg1 : i32
    %c0_i32 = arith.constant 0 : i32
    %c0_i32_0 = arith.constant 0 : i32
    return %c0_i32, %1 : i32, i32
  }
  func.func @transform_2(%arg0: i32, %arg1: i32) -> (i32, i32, i32) {
    %c0_i32 = arith.constant 0 : i32
    %c0_i32_0 = arith.constant 0 : i32
    %c0_i32_1 = arith.constant 0 : i32
    return %arg0, %c0_i32, %c0_i32_0 : i32, i32, i32
  }
}

</mosaic_0001>

<bundles_post_ra>
// kernel: model_forward.2
= control target key start
LH: loop header
LB: loop body
LE: loop exit
PB: predicated region body
PF: predicated region fallthrough
CT: control target
= control target key end

     0   :  { %vm111_vm0 = vcmask 1040384   ;;  %vm1923_vm1 = vmmov 1   ;;  %v1924_v3 = vmov 0.0   ;;  %v1925_v8 = vmov 0   ;;  %s2686_s0 = inlined_call_operand.vmem [shape: f32[2,9,1024], index: 0, kind: input, shape index: {}]   ;;  %s2687_s1 = inlined_call_operand.vmem [shape: f32[64,9], index: 1, kind: input, shape index: {}]   ;;  %s2688_s2 = inlined_call_operand.vmem [shape: f32[64,1], index: 2, kind: input, shape index: {}]   ;;  %s2689_s3 = inlined_call_operand.vmem [shape: bf16[2,64,1024], index: 3, kind: output, shape index: {}]  }
   0x1   :  { %v23_v0 = vld [vmem:[%s2686_s0 + $0x8] sm:$0xff]  ;;  %vm1952_vm2 = vmpackc.low %vm111_vm0, %vm1923_vm1  ;;  %200 = vmatprep.mubr.f32.mxu0 %v1924_v3  ;;  %313 = vmatprep.mubr.f32.mxu1 %v1924_v3  ;;  %v25_v5 = vld [vmem:[%s2686_s0 + $0x18] sm:$0xff]  ;;  %vm86_vm3 = vcmask 72704  }
   0x2   :  { %v31_v1 = vld [vmem:[%s2686_s0 + $0x48] sm:$0x1]  ;;  %v33_v6 = vld [vmem:[%s2686_s0 + $0x58] sm:$0x1]  ;;  %v22_v7 = vld [vmem:[%s2686_s0] sm:$0xff]  ;;  %1921 = vset.pattern.permute.xlu0 %v1925_v8  ;;  %1922 = vset.pattern.permute.xlu1 %v1925_v8 }
   0x3   :  { %v1870_v4 = vpack.c.bf16 %v31_v1, %v23_v0  ;;  %v1876_v9 = vpack.c.bf16 %v33_v6, %v25_v5  ;;  %v30_v10 = vld [vmem:[%s2686_s0 + $0x40] sm:$0x1]  ;;  %v24_v11 = vld [vmem:[%s2686_s0 + $0x10] sm:$0xff]  ;;  %v27_v16 = vld [vmem:[%s2686_s0 + $0x28] sm:$0xff] }
   0x4   :  { %v32_v12 = vld [vmem:[%s2686_s0 + $0x50] sm:$0x1]  ;;  %v1873_v13 = vpack.c.bf16 %v30_v10, %v22_v7  ;;  %v1981_v15 = vld [vmem:[%s2687_s1] sm:$0xff]  ;;  %v35_v17 = vld [vmem:[%s2686_s0 + $0x68] sm:$0x1] }
   0x5   :  { %1872 = vmatprep.subr.msk.bf16.mxu0 %vm1952_vm2, %v1870_v4  ;;  %v1879_v14 = vpack.c.bf16 %v32_v12, %v24_v11  ;;  %1878 = vmatprep.subr.msk.bf16.mxu1 %vm1952_vm2, %v1876_v9  ;;  %v1882_v18 = vpack.c.bf16 %v35_v17, %v27_v16  ;;  %v29_v19 = vld [vmem:[%s2686_s0 + $0x38] sm:$0xff]  ;;  %v26_v21 = vld [vmem:[%s2686_s0 + $0x20] sm:$0xff]  ;;  %v28_v24 = vld [vmem:[%s2686_s0 + $0x30] sm:$0xff] }
   0x6   :  { %v37_v20 = vld [vmem:[%s2686_s0 + $0x78] sm:$0x1]  ;;  %1875 = vmatpush1.bf16.msk.msra.mxu0 %vm1952_vm2, %v1873_v13  ;;  %v34_v23 = vld [vmem:[%s2686_s0 + $0x60] sm:$0x1]  ;;  %v36_v25 = vld [vmem:[%s2686_s0 + $0x70] sm:$0x1] }
   0x7   :  { %1881 = vmatpush1.bf16.msk.msra.mxu1 %vm1952_vm2, %v1879_v14  ;;  %v1888_v22 = vpack.c.bf16 %v37_v20, %v29_v19  ;;  %1884 = vmatprep.subr.msk.bf16.mxu0 %vm1952_vm2, %v1882_v18  ;;  %v1885_v26 = vpack.c.bf16 %v34_v23, %v26_v21  ;;  %v1891_v27 = vpack.c.bf16 %v36_v25, %v28_v24  ;;  %v1687_v28 = vld [vmem:[%s2686_s0 + $0x88] sm:$0xff]  ;;  %v1689_v32 = vld [vmem:[%s2686_s0 + $0x98] sm:$0xff]  ;;  %v2055_v35 = vld [vmem:[%s2687_s1 + $0x10] sm:$0xff] }
   0x8   :  { %v1695_v29 = vld [vmem:[%s2686_s0 + $0xc8] sm:$0x1]  ;;  %v1697_v33 = vld [vmem:[%s2686_s0 + $0xd8] sm:$0x1]  ;;  %v38_v36 = vld [vmem:[%s2688_s2] sm:$0xff] }
   0x9   :  { %1890 = vmatprep.subr.msk.bf16.mxu1 %vm1952_vm2, %v1888_v22  ;;  %1616 = vmatmul.mubr.msk.f32.vlgmr.msra.gmra.mrb[0].mxu0 %vm86_vm3, %v1981_v15  ;;  %v2034_v30 = vld [vmem:[%s2687_s1 + $0x8] sm:$0xff]  ;;  %v1894_v31 = vpack.c.bf16 %v1695_v29, %v1687_v28  ;;  %v1900_v34 = vpack.c.bf16 %v1697_v33, %v1689_v32  ;;  %v40_v37 = vld [vmem:[%s2688_s2 + $0x10] sm:$0xff]  ;;  %v41_v39 = vld [vmem:[%s2688_s2 + $0x18] sm:$0xff] }
   0xa   :  { %1626 = vmatmul.mubr.msk.f32.vlgmr.msra.gmra.mrb[0].mxu1 %vm86_vm3, %v1981_v15  ;;  %1887 = vmatpush1.bf16.msk.msra.mxu0 %vm1952_vm2, %v1885_v26  ;;  %v39_v38 = vld [vmem:[%s2688_s2 + $0x8] sm:$0xff]  ;;  %v2080_v40 = vld [vmem:[%s2687_s1 + $0x18] sm:$0xff]  ;;  %v42_v41 = vld [vmem:[%s2688_s2 + $0x20] sm:$0xff] }
   0xb   :  { %1893 = vmatpush1.bf16.msk.msra.mxu1 %vm1952_vm2, %v1891_v27  ;;  %206 = vmatprep.mubr.f32.mxu0 %v1924_v3  ;;  %v43_v42 = vld [vmem:[%s2688_s2 + $0x28] sm:$0xff]  ;;  %v2097_v43 = vld [vmem:[%s2687_s1 + $0x20] sm:$0xff]  ;;  %v44_v44 = vld [vmem:[%s2688_s2 + $0x30] sm:$0xff] }
   0xc   :  { %319 = vmatprep.mubr.f32.mxu1 %v1924_v3  ;;  %1896 = vmatprep.subr.msk.bf16.mxu0 %vm1952_vm2, %v1894_v31  ;;  %v45_v45 = vld [vmem:[%s2688_s2 + $0x38] sm:$0xff]  ;;  %v2114_v46 = vld [vmem:[%s2687_s1 + $0x28] sm:$0xff]  ;;  %v2125_v47 = vld [vmem:[%s2687_s1 + $0x30] sm:$0xff] }
   0xd   :  { %1617 = vmatmul.mubr.msk.f32.gmra.mrb[2].mxu0 %vm86_vm3, %v2034_v30  ;;  %1902 = vmatprep.subr.msk.bf16.mxu1 %vm1952_vm2, %v1900_v34  ;;  %v2136_v48 = vld [vmem:[%s2687_s1 + $0x38] sm:$0xff]  ;;  %v1686_v49 = vld [vmem:[%s2686_s0 + $0x80] sm:$0xff]  ;;  %v1688_v51 = vld [vmem:[%s2686_s0 + $0x90] sm:$0xff] }
   0xe   :  { %1627 = vmatmul.mubr.msk.f32.gmra.mrb[2].mxu1 %vm86_vm3, %v2034_v30  ;;  %212 = vmatprep.mubr.f32.mxu0 %v1924_v3  ;;  %v1694_v50 = vld [vmem:[%s2686_s0 + $0xc0] sm:$0x1]  ;;  %v1696_v52 = vld [vmem:[%s2686_s0 + $0xd0] sm:$0x1]  ;;  %v1691_v53 = vld [vmem:[%s2686_s0 + $0xa8] sm:$0xff] }
   0xf   :  { %325 = vmatprep.mubr.f32.mxu1 %v1924_v3  ;;  %48 = vperm.xlu0 %1921, %v38_v36   ;;  %v1699_v54 = vld [vmem:[%s2686_s0 + $0xe8] sm:$0x1]  ;;  %v1693_v55 = vld [vmem:[%s2686_s0 + $0xb8] sm:$0xff]  ;;  %v1897_v57 = vpack.c.bf16 %v1694_v50, %v1686_v49  ;;  %v1903_v58 = vpack.c.bf16 %v1696_v52, %v1688_v51  ;;  %v1690_v61 = vld [vmem:[%s2686_s0 + $0xa0] sm:$0xff] }
  0x10   :  { %58 = vperm.xlu1 %1922, %v40_v37   ;;  %v1701_v56 = vld [vmem:[%s2686_s0 + $0xf8] sm:$0x1]  ;;  %v1906_v59 = vpack.c.bf16 %v1699_v54, %v1691_v53  ;;  %v1698_v62 = vld [vmem:[%s2686_s0 + $0xe0] sm:$0x1]  ;;  %v1692_v63 = vld [vmem:[%s2686_s0 + $0xb0] sm:$0xff] }
  0x11   :  { %1618 = vmatmul.mubr.msk.f32.gmra.mrb[4].mxu0 %vm86_vm3, %v2055_v35  ;;  %v1912_v60 = vpack.c.bf16 %v1701_v56, %v1693_v55  ;;  %v1700_v0 = vld [vmem:[%s2686_s0 + $0xf0] sm:$0x1]  ;;  %v1909_v1 = vpack.c.bf16 %v1698_v62, %v1690_v61 }
  0x12   :  { %1628 = vmatmul.mubr.msk.f32.gmra.mrb[4].mxu1 %vm86_vm3, %v2055_v35  ;;  %218 = vmatprep.mubr.f32.mxu0 %v1924_v3  ;;  %v1915_v4 = vpack.c.bf16 %v1700_v0, %v1692_v63 }
  0x13   :  { %331 = vmatprep.mubr.f32.mxu1 %v1924_v3  ;;  %53 = vperm.xlu0 %1921, %v39_v38  }
  0x14   :  { %63 = vperm.xlu1 %1922, %v41_v39  }
  0x15   :  { %1619 = vmatmul.mubr.msk.f32.gmra.mrb[6].mxu0 %vm86_vm3, %v2080_v40 }
  0x16   :  { %1629 = vmatmul.mubr.msk.f32.gmra.mrb[6].mxu1 %vm86_vm3, %v2080_v40  ;;  %224 = vmatprep.mubr.f32.mxu0 %v1924_v3 }
  0x17   :  { %337 = vmatprep.mubr.f32.mxu1 %v1924_v3  ;;  %68 = vperm.xlu0 %1921, %v42_v41  }
  0x18   :  { %73 = vperm.xlu1 %1922, %v43_v42  }
  0x19   :  { %1620 = vmatmul.mubr.msk.f32.gmra.mrb[8].mxu0 %vm86_vm3, %v2097_v43 }
  0x1a   :  { %1630 = vmatmul.mubr.msk.f32.gmra.mrb[8].mxu1 %vm86_vm3, %v2097_v43  ;;  %230 = vmatprep.mubr.f32.mxu0 %v1924_v3 }
  0x1b   :  { %343 = vmatprep.mubr.f32.mxu1 %v1924_v3  ;;  %78 = vperm.xlu0 %1921, %v44_v44  }
  0x1c   :  { %83 = vperm.xlu1 %1922, %v45_v45  }
  0x1d   :  { %1621 = vmatmul.mubr.msk.f32.gmra.mrb[10].mxu0 %vm86_vm3, %v2114_v46 }
  0x1e   :  { %1631 = vmatmul.mubr.msk.f32.gmra.mrb[10].mxu1 %vm86_vm3, %v2114_v46  ;;  %236 = vmatprep.mubr.f32.mxu0 %v1924_v3 }
  0x1f   :  { %349 = vmatprep.mubr.f32.mxu1 %v1924_v3  ;;  %847 = vperm.xlu0 %1921, %v38_v36  }
  0x20   :  { %852 = vperm.xlu1 %1922, %v39_v38  }
  0x21   :  { %1622 = vmatmul.mubr.msk.f32.gmra.mrb[12].mxu0 %vm86_vm3, %v2125_v47 }
  0x22   :  { %1632 = vmatmul.mubr.msk.f32.gmra.mrb[12].mxu1 %vm86_vm3, %v2125_v47  ;;  %242 = vmatprep.mubr.f32.mxu0 %v1924_v3 }
  0x23   :  { %355 = vmatprep.mubr.f32.mxu1 %v1924_v3  ;;  %857 = vperm.xlu0 %1921, %v40_v37  }
  0x24   :  { %862 = vperm.xlu1 %1922, %v41_v39  }
  0x25   :  { %1623 = vmatmul.mubr.msk.f32.gmra.mrb[14].mxu0 %vm86_vm3, %v2136_v48 }
  0x26   :  { %1633 = vmatmul.mubr.msk.f32.gmra.mrb[14].mxu1 %vm86_vm3, %v2136_v48  ;;  %426 = vmatprep.mubr.f32.mxu0 %v1924_v3 }
  0x27   :  { %539 = vmatprep.mubr.f32.mxu1 %v1924_v3  ;;  %867 = vperm.xlu0 %1921, %v42_v41  }
  0x28   :  { %872 = vperm.xlu1 %1922, %v43_v42  }
  0x29   :  { %1636 = vmatmul.mubr.msk.f32.vlgmr.msra.gmra.mrb[16].mxu0 %vm86_vm3, %v1981_v15 }
  0x2a   :  { %1646 = vmatmul.mubr.msk.f32.vlgmr.msra.gmra.mrb[16].mxu1 %vm86_vm3, %v1981_v15  ;;  %1899 = vmatpush1.bf16.msk.msra.mxu0 %vm1952_vm2, %v1897_v57 }
  0x2b   :  { %1905 = vmatpush1.bf16.msk.msra.mxu1 %vm1952_vm2, %v1903_v58  ;;  %432 = vmatprep.mubr.f32.mxu0 %v1924_v3 }
  0x2c   :  { %545 = vmatprep.mubr.f32.mxu1 %v1924_v3  ;;  %1908 = vmatprep.subr.msk.bf16.mxu0 %vm1952_vm2, %v1906_v59 }
  0x2d   :  { %1914 = vmatprep.subr.msk.bf16.mxu1 %vm1952_vm2, %v1912_v60  ;;  %1637 = vmatmul.mubr.msk.f32.gmra.mrb[18].mxu0 %vm86_vm3, %v2034_v30 }
  0x2e   :  { %1647 = vmatmul.mubr.msk.f32.gmra.mrb[18].mxu1 %vm86_vm3, %v2034_v30  ;;  %438 = vmatprep.mubr.f32.mxu0 %v1924_v3 }
  0x2f   :  { %551 = vmatprep.mubr.f32.mxu1 %v1924_v3  ;;  %877 = vperm.xlu0 %1921, %v44_v44  }
  0x30   :  { %882 = vperm.xlu1 %1922, %v45_v45  }
  0x31   :  { %1638 = vmatmul.mubr.msk.f32.gmra.mrb[20].mxu0 %vm86_vm3, %v2055_v35 }
  0x32   :  { %1648 = vmatmul.mubr.msk.f32.gmra.mrb[20].mxu1 %vm86_vm3, %v2055_v35  ;;  %444 = vmatprep.mubr.f32.mxu0 %v1924_v3 }
  0x33   :  { %557 = vmatprep.mubr.f32.mxu1 %v1924_v3 }
  0x35   :  { %1639 = vmatmul.mubr.msk.f32.gmra.mrb[22].mxu0 %vm86_vm3, %v2080_v40 }
  0x36   :  { %1649 = vmatmul.mubr.msk.f32.gmra.mrb[22].mxu1 %vm86_vm3, %v2080_v40  ;;  %450 = vmatprep.mubr.f32.mxu0 %v1924_v3 }
  0x37   :  { %563 = vmatprep.mubr.f32.mxu1 %v1924_v3 }
  0x39   :  { %1640 = vmatmul.mubr.msk.f32.gmra.mrb[24].mxu0 %vm86_vm3, %v2097_v43 }
  0x3a   :  { %1650 = vmatmul.mubr.msk.f32.gmra.mrb[24].mxu1 %vm86_vm3, %v2097_v43  ;;  %456 = vmatprep.mubr.f32.mxu0 %v1924_v3 }
  0x3b   :  { %569 = vmatprep.mubr.f32.mxu1 %v1924_v3 }
  0x3d   :  { %1641 = vmatmul.mubr.msk.f32.gmra.mrb[26].mxu0 %vm86_vm3, %v2114_v46 }
  0x3e   :  { %1651 = vmatmul.mubr.msk.f32.gmra.mrb[26].mxu1 %vm86_vm3, %v2114_v46  ;;  %462 = vmatprep.mubr.f32.mxu0 %v1924_v3 }
  0x3f   :  { %575 = vmatprep.mubr.f32.mxu1 %v1924_v3 }
  0x41   :  { %1642 = vmatmul.mubr.msk.f32.gmra.mrb[28].mxu0 %vm86_vm3, %v2125_v47 }
  0x42   :  { %1652 = vmatmul.mubr.msk.f32.gmra.mrb[28].mxu1 %vm86_vm3, %v2125_v47  ;;  %468 = vmatprep.mubr.f32.mxu0 %v1924_v3 }
  0x43   :  { %581 = vmatprep.mubr.f32.mxu1 %v1924_v3 }
  0x45   :  { %1643 = vmatmul.mubr.msk.f32.gmra.mrb[30].mxu0 %vm86_vm3, %v2136_v48 }
  0x46   :  { %1653 = vmatmul.mubr.msk.f32.gmra.mrb[30].mxu1 %vm86_vm3, %v2136_v48  ;;  %997 = vmatprep.mubr.f32.mxu0 %v1924_v3 }
  0x47   :  { %1110 = vmatprep.mubr.f32.mxu1 %v1924_v3 }
  0x49   :  { %1704 = vmatmul.mubr.msk.f32.vlgmr.msra.gmra.mrb[32].mxu0 %vm86_vm3, %v1981_v15 }
  0x4a   :  { %1714 = vmatmul.mubr.msk.f32.vlgmr.msra.gmra.mrb[32].mxu1 %vm86_vm3, %v1981_v15  ;;  %1911 = vmatpush1.bf16.msk.msra.mxu0 %vm1952_vm2, %v1909_v1 }
  0x4b   :  { %1917 = vmatpush1.bf16.msk.msra.mxu1 %vm1952_vm2, %v1915_v4  ;;  %1003 = vmatprep.mubr.f32.mxu0 %v1924_v3 }
  0x4c   :  { %1116 = vmatprep.mubr.f32.mxu1 %v1924_v3 }
  0x4d   :  { %1705 = vmatmul.mubr.msk.f32.gmra.mrb[34].mxu0 %vm86_vm3, %v2034_v30 }
  0x4e   :  { %1715 = vmatmul.mubr.msk.f32.gmra.mrb[34].mxu1 %vm86_vm3, %v2034_v30  ;;  %1009 = vmatprep.mubr.f32.mxu0 %v1924_v3 }
  0x4f   :  { %1122 = vmatprep.mubr.f32.mxu1 %v1924_v3 }
  0x51   :  { %1706 = vmatmul.mubr.msk.f32.gmra.mrb[36].mxu0 %vm86_vm3, %v2055_v35 }
  0x52   :  { %1716 = vmatmul.mubr.msk.f32.gmra.mrb[36].mxu1 %vm86_vm3, %v2055_v35  ;;  %1015 = vmatprep.mubr.f32.mxu0 %v1924_v3 }
  0x53   :  { %1128 = vmatprep.mubr.f32.mxu1 %v1924_v3 }
  0x55   :  { %1707 = vmatmul.mubr.msk.f32.gmra.mrb[38].mxu0 %vm86_vm3, %v2080_v40 }
  0x56   :  { %1717 = vmatmul.mubr.msk.f32.gmra.mrb[38].mxu1 %vm86_vm3, %v2080_v40  ;;  %1021 = vmatprep.mubr.f32.mxu0 %v1924_v3 }
  0x57   :  { %1134 = vmatprep.mubr.f32.mxu1 %v1924_v3 }
  0x59   :  { %1708 = vmatmul.mubr.msk.f32.gmra.mrb[40].mxu0 %vm86_vm3, %v2097_v43 }
  0x5a   :  { %1718 = vmatmul.mubr.msk.f32.gmra.mrb[40].mxu1 %vm86_vm3, %v2097_v43  ;;  %1027 = vmatprep.mubr.f32.mxu0 %v1924_v3 }
  0x5b   :  { %1140 = vmatprep.mubr.f32.mxu1 %v1924_v3 }
  0x5d   :  { %1709 = vmatmul.mubr.msk.f32.gmra.mrb[42].mxu0 %vm86_vm3, %v2114_v46 }
  0x5e   :  { %1719 = vmatmul.mubr.msk.f32.gmra.mrb[42].mxu1 %vm86_vm3, %v2114_v46  ;;  %1033 = vmatprep.mubr.f32.mxu0 %v1924_v3 }
  0x5f   :  { %1146 = vmatprep.mubr.f32.mxu1 %v1924_v3 }
  0x61   :  { %1710 = vmatmul.mubr.msk.f32.gmra.mrb[44].mxu0 %vm86_vm3, %v2125_v47 }
  0x62   :  { %1720 = vmatmul.mubr.msk.f32.gmra.mrb[44].mxu1 %vm86_vm3, %v2125_v47  ;;  %1039 = vmatprep.mubr.f32.mxu0 %v1924_v3 }
  0x63   :  { %1152 = vmatprep.mubr.f32.mxu1 %v1924_v3 }
  0x65   :  { %1711 = vmatmul.mubr.msk.f32.gmra.mrb[46].mxu0 %vm86_vm3, %v2136_v48 }
  0x66   :  { %1721 = vmatmul.mubr.msk.f32.gmra.mrb[46].mxu1 %vm86_vm3, %v2136_v48  ;;  %1223 = vmatprep.mubr.f32.mxu0 %v1924_v3 }
  0x67   :  { %1336 = vmatprep.mubr.f32.mxu1 %v1924_v3 }
  0x69   :  { %1724 = vmatmul.mubr.msk.f32.vlgmr.msra.gmra.mrb[48].mxu0 %vm86_vm3, %v1981_v15 }
  0x6a   :  { %1734 = vmatmul.mubr.msk.f32.vlgmr.msra.gmra.mrb[48].mxu1 %vm86_vm3, %v1981_v15  ;;  %1229 = vmatprep.mubr.f32.mxu0 %v1924_v3 }
  0x6b   :  { %1342 = vmatprep.mubr.f32.mxu1 %v1924_v3 }
  0x6d   :  { %1725 = vmatmul.mubr.msk.f32.gmra.mrb[50].mxu0 %vm86_vm3, %v2034_v30 }
  0x6e   :  { %1735 = vmatmul.mubr.msk.f32.gmra.mrb[50].mxu1 %vm86_vm3, %v2034_v30  ;;  %1235 = vmatprep.mubr.f32.mxu0 %v1924_v3 }
  0x6f   :  { %1348 = vmatprep.mubr.f32.mxu1 %v1924_v3 }
  0x71   :  { %1726 = vmatmul.mubr.msk.f32.gmra.mrb[52].mxu0 %vm86_vm3, %v2055_v35 }
  0x72   :  { %1736 = vmatmul.mubr.msk.f32.gmra.mrb[52].mxu1 %vm86_vm3, %v2055_v35  ;;  %1241 = vmatprep.mubr.f32.mxu0 %v1924_v3 }
  0x73   :  { %1354 = vmatprep.mubr.f32.mxu1 %v1924_v3 }
  0x75   :  { %1727 = vmatmul.mubr.msk.f32.gmra.mrb[54].mxu0 %vm86_vm3, %v2080_v40 }
  0x76   :  { %1737 = vmatmul.mubr.msk.f32.gmra.mrb[54].mxu1 %vm86_vm3, %v2080_v40  ;;  %1247 = vmatprep.mubr.f32.mxu0 %v1924_v3 }
  0x77   :  { %1360 = vmatprep.mubr.f32.mxu1 %v1924_v3 }
  0x79   :  { %1728 = vmatmul.mubr.msk.f32.gmra.mrb[56].mxu0 %vm86_vm3, %v2097_v43 }
  0x7a   :  { %1738 = vmatmul.mubr.msk.f32.gmra.mrb[56].mxu1 %vm86_vm3, %v2097_v43  ;;  %1253 = vmatprep.mubr.f32.mxu0 %v1924_v3 }
  0x7b   :  { %1366 = vmatprep.mubr.f32.mxu1 %v1924_v3 }
  0x7d   :  { %1729 = vmatmul.mubr.msk.f32.gmra.mrb[58].mxu0 %vm86_vm3, %v2114_v46 }
  0x7e   :  { %1739 = vmatmul.mubr.msk.f32.gmra.mrb[58].mxu1 %vm86_vm3, %v2114_v46  ;;  %1259 = vmatprep.mubr.f32.mxu0 %v1924_v3 }
  0x7f   :  { %1372 = vmatprep.mubr.f32.mxu1 %v1924_v3 }
  0x81   :  { %1730 = vmatmul.mubr.msk.f32.gmra.mrb[60].mxu0 %vm86_vm3, %v2125_v47 }
  0x82   :  { %1740 = vmatmul.mubr.msk.f32.gmra.mrb[60].mxu1 %vm86_vm3, %v2125_v47  ;;  %1265 = vmatprep.mubr.f32.mxu0 %v1924_v3 }
  0x83   :  { %1378 = vmatprep.mubr.f32.mxu1 %v1924_v3 }
  0x85   :  { %1731 = vmatmul.mubr.msk.f32.gmra.mrb[62].mxu0 %vm86_vm3, %v2136_v48 }
  0x86   :  { %1741 = vmatmul.mubr.msk.f32.gmra.mrb[62].mxu1 %vm86_vm3, %v2136_v48 }
  0x8e   :  { %v2334_v2 = vpop.permute.xlu0 %48 }
  0x8f   :  { %v2342_v13 = vpop.permute.xlu1 %58 }
  0x92   :  { %v2340_v12 = vpop.permute.xlu0 %53 }
  0x93   :  { %v2364_v34 = vpop.permute.xlu1 %63 }
  0x96   :  { %v2376_v45 = vpop.permute.xlu0 %68 }
  0x97   :  { %v2388_v56 = vpop.permute.xlu1 %73 }
  0xdc   :  { %v202_v5 = vpop.f32.mrb[0].mxu0 }
  0xdd   :  { %v315_v6 = vpop.f32.mrb[0].mxu1  ;;  %v203_v7 = vadd.f32 %v202_v5, %v2334_v2  ;;  %v204_v8 = vpop.f32.mrb[1].mxu0 }
  0xde   :  { %v316_v9 = vadd.f32 %v315_v6, %v2334_v2  ;;  %v317_v10 = vpop.f32.mrb[1].mxu1  ;;  %v205_v11 = vadd.f32 %v204_v8, %v2334_v2  ;;  %v2400_v5 = vpop.permute.xlu0 %78 }
  0xdf   :  { %v318_v3 = vadd.f32 %v317_v10, %v2334_v2 }
  0xe0   :  { %v1806_v14 = vpack.c.bf16 %v205_v11, %v203_v7  ;;  %v208_v16 = vpop.f32.mrb[2].mxu0 }
  0xe1   :  { %v1807_v15 = vpack.c.bf16 %v318_v3, %v316_v9  ;;  %v321_v17 = vpop.f32.mrb[2].mxu1  ;;  %v209_v18 = vadd.f32 %v208_v16, %v2340_v12  ;;  %v210_v19 = vpop.f32.mrb[3].mxu0 }
  0xe2   :  { %v322_v20 = vadd.f32 %v321_v17, %v2340_v12  ;;  %v323_v21 = vpop.f32.mrb[3].mxu1  ;;  %780 = vst [vmem:[%s2689_s3] sm:$0xff] %v1806_v14  ;;  %v211_v22 = vadd.f32 %v210_v19, %v2340_v12  ;;  %v2412_v17 = vpop.permute.xlu1 %83 }
  0xe3   :  { %781 = vst [vmem:[%s2689_s3 + $0x8] sm:$0xff] %v1807_v15  ;;  %v324_v23 = vadd.f32 %v323_v21, %v2340_v12 }
  0xe4   :  { %v1810_v24 = vpack.c.bf16 %v211_v22, %v209_v18  ;;  %v214_v26 = vpop.f32.mrb[4].mxu0 }
  0xe5   :  { %v1811_v25 = vpack.c.bf16 %v324_v23, %v322_v20  ;;  %v327_v27 = vpop.f32.mrb[4].mxu1  ;;  %v215_v28 = vadd.f32 %v214_v26, %v2342_v13  ;;  %v216_v29 = vpop.f32.mrb[5].mxu0 }
  0xe6   :  { %v328_v30 = vadd.f32 %v327_v27, %v2342_v13  ;;  %v329_v31 = vpop.f32.mrb[5].mxu1  ;;  %784 = vst [vmem:[%s2689_s3 + $0x20] sm:$0xff] %v1810_v24  ;;  %v217_v32 = vadd.f32 %v216_v29, %v2342_v13 }
  0xe7   :  { %785 = vst [vmem:[%s2689_s3 + $0x28] sm:$0xff] %v1811_v25  ;;  %v330_v33 = vadd.f32 %v329_v31, %v2342_v13 }
  0xe8   :  { %v1814_v35 = vpack.c.bf16 %v217_v32, %v215_v28  ;;  %v220_v37 = vpop.f32.mrb[6].mxu0 }
  0xe9   :  { %v1815_v36 = vpack.c.bf16 %v330_v33, %v328_v30  ;;  %v333_v38 = vpop.f32.mrb[6].mxu1  ;;  %v221_v39 = vadd.f32 %v220_v37, %v2364_v34  ;;  %v222_v40 = vpop.f32.mrb[7].mxu0 }
  0xea   :  { %v334_v41 = vadd.f32 %v333_v38, %v2364_v34  ;;  %v335_v42 = vpop.f32.mrb[7].mxu1  ;;  %788 = vst [vmem:[%s2689_s3 + $0x40] sm:$0xff] %v1814_v35  ;;  %v223_v43 = vadd.f32 %v222_v40, %v2364_v34 }
  0xeb   :  { %789 = vst [vmem:[%s2689_s3 + $0x48] sm:$0xff] %v1815_v36  ;;  %v336_v44 = vadd.f32 %v335_v42, %v2364_v34 }
  0xec   :  { %v1818_v46 = vpack.c.bf16 %v223_v43, %v221_v39  ;;  %v226_v48 = vpop.f32.mrb[8].mxu0 }
  0xed   :  { %v1819_v47 = vpack.c.bf16 %v336_v44, %v334_v41  ;;  %v339_v49 = vpop.f32.mrb[8].mxu1  ;;  %v227_v50 = vadd.f32 %v226_v48, %v2376_v45  ;;  %v228_v51 = vpop.f32.mrb[9].mxu0 }
  0xee   :  { %v340_v52 = vadd.f32 %v339_v49, %v2376_v45  ;;  %v341_v53 = vpop.f32.mrb[9].mxu1  ;;  %792 = vst [vmem:[%s2689_s3 + $0x60] sm:$0xff] %v1818_v46  ;;  %v229_v54 = vadd.f32 %v228_v51, %v2376_v45 }
  0xef   :  { %793 = vst [vmem:[%s2689_s3 + $0x68] sm:$0xff] %v1819_v47  ;;  %v342_v55 = vadd.f32 %v341_v53, %v2376_v45 }
  0xf0   :  { %v1822_v57 = vpack.c.bf16 %v229_v54, %v227_v50  ;;  %v232_v59 = vpop.f32.mrb[10].mxu0 }
  0xf1   :  { %v1823_v58 = vpack.c.bf16 %v342_v55, %v340_v52  ;;  %v345_v60 = vpop.f32.mrb[10].mxu1  ;;  %v233_v61 = vadd.f32 %v232_v59, %v2388_v56  ;;  %v234_v62 = vpop.f32.mrb[11].mxu0 }
  0xf2   :  { %v346_v63 = vadd.f32 %v345_v60, %v2388_v56  ;;  %v347_v0 = vpop.f32.mrb[11].mxu1  ;;  %796 = vst [vmem:[%s2689_s3 + $0x80] sm:$0xff] %v1822_v57  ;;  %v235_v1 = vadd.f32 %v234_v62, %v2388_v56 }
  0xf3   :  { %797 = vst [vmem:[%s2689_s3 + $0x88] sm:$0xff] %v1823_v58  ;;  %v348_v4 = vadd.f32 %v347_v0, %v2388_v56 }
  0xf4   :  { %v1826_v6 = vpack.c.bf16 %v235_v1, %v233_v61  ;;  %v238_v8 = vpop.f32.mrb[12].mxu0 }
  0xf5   :  { %v1827_v7 = vpack.c.bf16 %v348_v4, %v346_v63  ;;  %v351_v9 = vpop.f32.mrb[12].mxu1  ;;  %v239_v10 = vadd.f32 %v238_v8, %v2400_v5  ;;  %v240_v11 = vpop.f32.mrb[13].mxu0 }
  0xf6   :  { %v352_v3 = vadd.f32 %v351_v9, %v2400_v5  ;;  %v353_v14 = vpop.f32.mrb[13].mxu1  ;;  %800 = vst [vmem:[%s2689_s3 + $0xa0] sm:$0xff] %v1826_v6  ;;  %v241_v15 = vadd.f32 %v240_v11, %v2400_v5 }
  0xf7   :  { %801 = vst [vmem:[%s2689_s3 + $0xa8] sm:$0xff] %v1827_v7  ;;  %v354_v16 = vadd.f32 %v353_v14, %v2400_v5 }
  0xf8   :  { %v1830_v18 = vpack.c.bf16 %v241_v15, %v239_v10  ;;  %v244_v20 = vpop.f32.mrb[14].mxu0 }
  0xf9   :  { %v1831_v19 = vpack.c.bf16 %v354_v16, %v352_v3  ;;  %v357_v21 = vpop.f32.mrb[14].mxu1  ;;  %v245_v22 = vadd.f32 %v244_v20, %v2412_v17  ;;  %v246_v23 = vpop.f32.mrb[15].mxu0 }
  0xfa   :  { %v358_v24 = vadd.f32 %v357_v21, %v2412_v17  ;;  %v359_v25 = vpop.f32.mrb[15].mxu1  ;;  %804 = vst [vmem:[%s2689_s3 + $0xc0] sm:$0xff] %v1830_v18  ;;  %v247_v26 = vadd.f32 %v246_v23, %v2412_v17 }
  0xfb   :  { %805 = vst [vmem:[%s2689_s3 + $0xc8] sm:$0xff] %v1831_v19  ;;  %v360_v27 = vadd.f32 %v359_v25, %v2412_v17 }
  0xfc   :  { %v1834_v28 = vpack.c.bf16 %v247_v26, %v245_v22  ;;  %v428_v30 = vpop.f32.mrb[16].mxu0 }
  0xfd   :  { %v1835_v29 = vpack.c.bf16 %v360_v27, %v358_v24  ;;  %v541_v31 = vpop.f32.mrb[16].mxu1  ;;  %v429_v32 = vadd.f32 %v428_v30, %v2334_v2  ;;  %v430_v35 = vpop.f32.mrb[17].mxu0 }
  0xfe   :  { %v542_v33 = vadd.f32 %v541_v31, %v2334_v2  ;;  %v543_v36 = vpop.f32.mrb[17].mxu1  ;;  %808 = vst [vmem:[%s2689_s3 + $0xe0] sm:$0xff] %v1834_v28  ;;  %v431_v37 = vadd.f32 %v430_v35, %v2334_v2 }
  0xff   :  { %809 = vst [vmem:[%s2689_s3 + $0xe8] sm:$0xff] %v1835_v29  ;;  %v544_v38 = vadd.f32 %v543_v36, %v2334_v2 }
 0x100   :  { %v1808_v39 = vpack.c.bf16 %v431_v37, %v429_v32  ;;  %v434_v41 = vpop.f32.mrb[18].mxu0 }
 0x101   :  { %v1809_v40 = vpack.c.bf16 %v544_v38, %v542_v33  ;;  %v547_v42 = vpop.f32.mrb[18].mxu1  ;;  %v435_v43 = vadd.f32 %v434_v41, %v2340_v12  ;;  %v436_v46 = vpop.f32.mrb[19].mxu0 }
 0x102   :  { %v548_v44 = vadd.f32 %v547_v42, %v2340_v12  ;;  %v549_v47 = vpop.f32.mrb[19].mxu1  ;;  %782 = vst [vmem:[%s2689_s3 + $0x10] sm:$0xff] %v1808_v39  ;;  %v437_v2 = vadd.f32 %v436_v46, %v2340_v12 }
 0x103   :  { %783 = vst [vmem:[%s2689_s3 + $0x18] sm:$0xff] %v1809_v40  ;;  %v550_v48 = vadd.f32 %v549_v47, %v2340_v12  ;;  %v2504_v47 = vpop.permute.xlu0 %847 }
 0x104   :  { %v1812_v49 = vpack.c.bf16 %v437_v2, %v435_v43  ;;  %v440_v51 = vpop.f32.mrb[20].mxu0 }
 0x105   :  { %v1813_v50 = vpack.c.bf16 %v550_v48, %v548_v44  ;;  %v553_v52 = vpop.f32.mrb[20].mxu1  ;;  %v441_v53 = vadd.f32 %v440_v51, %v2342_v13  ;;  %v442_v55 = vpop.f32.mrb[21].mxu0 }
 0x106   :  { %v554_v54 = vadd.f32 %v553_v52, %v2342_v13  ;;  %v555_v57 = vpop.f32.mrb[21].mxu1  ;;  %786 = vst [vmem:[%s2689_s3 + $0x30] sm:$0xff] %v1812_v49  ;;  %v443_v12 = vadd.f32 %v442_v55, %v2342_v13 }
 0x107   :  { %787 = vst [vmem:[%s2689_s3 + $0x38] sm:$0xff] %v1813_v50  ;;  %v556_v58 = vadd.f32 %v555_v57, %v2342_v13  ;;  %v2516_v57 = vpop.permute.xlu1 %852 }
 0x108   :  { %v1816_v59 = vpack.c.bf16 %v443_v12, %v441_v53  ;;  %v446_v61 = vpop.f32.mrb[22].mxu0 }
 0x109   :  { %v1817_v60 = vpack.c.bf16 %v556_v58, %v554_v54  ;;  %v559_v62 = vpop.f32.mrb[22].mxu1  ;;  %v447_v63 = vadd.f32 %v446_v61, %v2364_v34  ;;  %v448_v1 = vpop.f32.mrb[23].mxu0 }
 0x10a   :  { %v560_v0 = vadd.f32 %v559_v62, %v2364_v34  ;;  %v561_v4 = vpop.f32.mrb[23].mxu1  ;;  %790 = vst [vmem:[%s2689_s3 + $0x50] sm:$0xff] %v1816_v59  ;;  %v449_v13 = vadd.f32 %v448_v1, %v2364_v34 }
 0x10b   :  { %791 = vst [vmem:[%s2689_s3 + $0x58] sm:$0xff] %v1817_v60  ;;  %v562_v6 = vadd.f32 %v561_v4, %v2364_v34 }
 0x10c   :  { %v1820_v7 = vpack.c.bf16 %v449_v13, %v447_v63  ;;  %v452_v9 = vpop.f32.mrb[24].mxu0  ;;  %v2528_v13 = vpop.permute.xlu0 %857 }
 0x10d   :  { %v1821_v8 = vpack.c.bf16 %v562_v6, %v560_v0  ;;  %v565_v10 = vpop.f32.mrb[24].mxu1  ;;  %v453_v11 = vadd.f32 %v452_v9, %v2376_v45  ;;  %v454_v14 = vpop.f32.mrb[25].mxu0 }
 0x10e   :  { %v566_v3 = vadd.f32 %v565_v10, %v2376_v45  ;;  %v567_v15 = vpop.f32.mrb[25].mxu1  ;;  %794 = vst [vmem:[%s2689_s3 + $0x70] sm:$0xff] %v1820_v7  ;;  %v455_v34 = vadd.f32 %v454_v14, %v2376_v45 }
 0x10f   :  { %795 = vst [vmem:[%s2689_s3 + $0x78] sm:$0xff] %v1821_v8  ;;  %v568_v16 = vadd.f32 %v567_v15, %v2376_v45 }
 0x110   :  { %v1824_v18 = vpack.c.bf16 %v455_v34, %v453_v11  ;;  %v458_v20 = vpop.f32.mrb[26].mxu0 }
 0x111   :  { %v1825_v19 = vpack.c.bf16 %v568_v16, %v566_v3  ;;  %v571_v21 = vpop.f32.mrb[26].mxu1  ;;  %v459_v22 = vadd.f32 %v458_v20, %v2388_v56  ;;  %v460_v24 = vpop.f32.mrb[27].mxu0 }
 0x112   :  { %v572_v23 = vadd.f32 %v571_v21, %v2388_v56  ;;  %v573_v25 = vpop.f32.mrb[27].mxu1  ;;  %798 = vst [vmem:[%s2689_s3 + $0x90] sm:$0xff] %v1824_v18  ;;  %v461_v45 = vadd.f32 %v460_v24, %v2388_v56  ;;  %v2540_v16 = vpop.permute.xlu1 %862 }
 0x113   :  { %799 = vst [vmem:[%s2689_s3 + $0x98] sm:$0xff] %v1825_v19  ;;  %v574_v26 = vadd.f32 %v573_v25, %v2388_v56 }
 0x114   :  { %v1828_v27 = vpack.c.bf16 %v461_v45, %v459_v22  ;;  %v464_v29 = vpop.f32.mrb[28].mxu0 }
 0x115   :  { %v1829_v28 = vpack.c.bf16 %v574_v26, %v572_v23  ;;  %v577_v30 = vpop.f32.mrb[28].mxu1  ;;  %v465_v31 = vadd.f32 %v464_v29, %v2400_v5  ;;  %v466_v33 = vpop.f32.mrb[29].mxu0 }
 0x116   :  { %v578_v32 = vadd.f32 %v577_v30, %v2400_v5  ;;  %v579_v35 = vpop.f32.mrb[29].mxu1  ;;  %802 = vst [vmem:[%s2689_s3 + $0xb0] sm:$0xff] %v1828_v27  ;;  %v467_v56 = vadd.f32 %v466_v33, %v2400_v5  ;;  %v2552_v27 = vpop.permute.xlu0 %867 }
 0x117   :  { %803 = vst [vmem:[%s2689_s3 + $0xb8] sm:$0xff] %v1829_v28  ;;  %v580_v36 = vadd.f32 %v579_v35, %v2400_v5 }
 0x118   :  { %v1832_v37 = vpack.c.bf16 %v467_v56, %v465_v31  ;;  %v470_v39 = vpop.f32.mrb[30].mxu0 }
 0x119   :  { %v1833_v38 = vpack.c.bf16 %v580_v36, %v578_v32  ;;  %v583_v40 = vpop.f32.mrb[30].mxu1  ;;  %v471_v41 = vadd.f32 %v470_v39, %v2412_v17  ;;  %v472_v43 = vpop.f32.mrb[31].mxu0 }
 0x11a   :  { %v584_v42 = vadd.f32 %v583_v40, %v2412_v17  ;;  %v585_v44 = vpop.f32.mrb[31].mxu1  ;;  %806 = vst [vmem:[%s2689_s3 + $0xd0] sm:$0xff] %v1832_v37  ;;  %v473_v5 = vadd.f32 %v472_v43, %v2412_v17 }
 0x11b   :  { %807 = vst [vmem:[%s2689_s3 + $0xd8] sm:$0xff] %v1833_v38  ;;  %v586_v46 = vadd.f32 %v585_v44, %v2412_v17  ;;  %v2564_v38 = vpop.permute.xlu1 %872 }
 0x11c   :  { %v1836_v2 = vpack.c.bf16 %v473_v5, %v471_v41  ;;  %v999_v49 = vpop.f32.mrb[32].mxu0 }
 0x11d   :  { %v1837_v48 = vpack.c.bf16 %v586_v46, %v584_v42  ;;  %v1112_v50 = vpop.f32.mrb[32].mxu1  ;;  %v1000_v51 = vadd.f32 %v999_v49, %v2504_v47  ;;  %v1001_v52 = vpop.f32.mrb[33].mxu0 }
 0x11e   :  { %v1113_v53 = vadd.f32 %v1112_v50, %v2504_v47  ;;  %v1114_v54 = vpop.f32.mrb[33].mxu1  ;;  %810 = vst [vmem:[%s2689_s3 + $0xf0] sm:$0xff] %v1836_v2  ;;  %v1002_v17 = vadd.f32 %v1001_v52, %v2504_v47  ;;  %v2576_v49 = vpop.permute.xlu0 %877 }
 0x11f   :  { %811 = vst [vmem:[%s2689_s3 + $0xf8] sm:$0xff] %v1837_v48  ;;  %v1115_v55 = vadd.f32 %v1114_v54, %v2504_v47 }
 0x120   :  { %v1838_v12 = vpack.c.bf16 %v1002_v17, %v1000_v51  ;;  %v1005_v59 = vpop.f32.mrb[34].mxu0 }
 0x121   :  { %v1839_v58 = vpack.c.bf16 %v1115_v55, %v1113_v53  ;;  %v1118_v60 = vpop.f32.mrb[34].mxu1  ;;  %v1006_v61 = vadd.f32 %v1005_v59, %v2516_v57  ;;  %v1007_v62 = vpop.f32.mrb[35].mxu0 }
 0x122   :  { %v1119_v63 = vadd.f32 %v1118_v60, %v2516_v57  ;;  %v1120_v0 = vpop.f32.mrb[35].mxu1  ;;  %1774 = vst [vmem:[%s2689_s3 + $0x100] sm:$0xff] %v1838_v12  ;;  %v1008_v1 = vadd.f32 %v1007_v62, %v2516_v57  ;;  %v2588_v60 = vpop.permute.xlu1 %882 }
 0x123   :  { %1775 = vst [vmem:[%s2689_s3 + $0x108] sm:$0xff] %v1839_v58  ;;  %v1121_v4 = vadd.f32 %v1120_v0, %v2516_v57 }
 0x124   :  { %v1842_v6 = vpack.c.bf16 %v1008_v1, %v1006_v61  ;;  %v1011_v8 = vpop.f32.mrb[36].mxu0 }
 0x125   :  { %v1843_v7 = vpack.c.bf16 %v1121_v4, %v1119_v63  ;;  %v1124_v9 = vpop.f32.mrb[36].mxu1  ;;  %v1012_v10 = vadd.f32 %v1011_v8, %v2528_v13  ;;  %v1013_v11 = vpop.f32.mrb[37].mxu0 }
 0x126   :  { %v1125_v3 = vadd.f32 %v1124_v9, %v2528_v13  ;;  %v1126_v14 = vpop.f32.mrb[37].mxu1  ;;  %1778 = vst [vmem:[%s2689_s3 + $0x120] sm:$0xff] %v1842_v6  ;;  %v1014_v15 = vadd.f32 %v1013_v11, %v2528_v13 }
 0x127   :  { %1779 = vst [vmem:[%s2689_s3 + $0x128] sm:$0xff] %v1843_v7  ;;  %v1127_v34 = vadd.f32 %v1126_v14, %v2528_v13 }
 0x128   :  { %v1846_v18 = vpack.c.bf16 %v1014_v15, %v1012_v10  ;;  %v1017_v20 = vpop.f32.mrb[38].mxu0 }
 0x129   :  { %v1847_v19 = vpack.c.bf16 %v1127_v34, %v1125_v3  ;;  %v1130_v21 = vpop.f32.mrb[38].mxu1  ;;  %v1018_v22 = vadd.f32 %v1017_v20, %v2540_v16  ;;  %v1019_v23 = vpop.f32.mrb[39].mxu0 }
 0x12a   :  { %v1131_v24 = vadd.f32 %v1130_v21, %v2540_v16  ;;  %v1132_v25 = vpop.f32.mrb[39].mxu1  ;;  %1782 = vst [vmem:[%s2689_s3 + $0x140] sm:$0xff] %v1846_v18  ;;  %v1020_v45 = vadd.f32 %v1019_v23, %v2540_v16 }
 0x12b   :  { %1783 = vst [vmem:[%s2689_s3 + $0x148] sm:$0xff] %v1847_v19  ;;  %v1133_v26 = vadd.f32 %v1132_v25, %v2540_v16 }
 0x12c   :  { %v1850_v28 = vpack.c.bf16 %v1020_v45, %v1018_v22  ;;  %v1023_v30 = vpop.f32.mrb[40].mxu0 }
 0x12d   :  { %v1851_v29 = vpack.c.bf16 %v1133_v26, %v1131_v24  ;;  %v1136_v31 = vpop.f32.mrb[40].mxu1  ;;  %v1024_v32 = vadd.f32 %v1023_v30, %v2552_v27  ;;  %v1025_v33 = vpop.f32.mrb[41].mxu0 }
 0x12e   :  { %v1137_v35 = vadd.f32 %v1136_v31, %v2552_v27  ;;  %v1138_v56 = vpop.f32.mrb[41].mxu1  ;;  %1786 = vst [vmem:[%s2689_s3 + $0x160] sm:$0xff] %v1850_v28  ;;  %v1026_v36 = vadd.f32 %v1025_v33, %v2552_v27 }
 0x12f   :  { %1787 = vst [vmem:[%s2689_s3 + $0x168] sm:$0xff] %v1851_v29  ;;  %v1139_v37 = vadd.f32 %v1138_v56, %v2552_v27 }
 0x130   :  { %v1854_v39 = vpack.c.bf16 %v1026_v36, %v1024_v32  ;;  %v1029_v41 = vpop.f32.mrb[42].mxu0 }
 0x131   :  { %v1855_v40 = vpack.c.bf16 %v1139_v37, %v1137_v35  ;;  %v1142_v42 = vpop.f32.mrb[42].mxu1  ;;  %v1030_v43 = vadd.f32 %v1029_v41, %v2564_v38  ;;  %v1031_v44 = vpop.f32.mrb[43].mxu0 }
 0x132   :  { %v1143_v5 = vadd.f32 %v1142_v42, %v2564_v38  ;;  %v1144_v46 = vpop.f32.mrb[43].mxu1  ;;  %1790 = vst [vmem:[%s2689_s3 + $0x180] sm:$0xff] %v1854_v39  ;;  %v1032_v2 = vadd.f32 %v1031_v44, %v2564_v38 }
 0x133   :  { %1791 = vst [vmem:[%s2689_s3 + $0x188] sm:$0xff] %v1855_v40  ;;  %v1145_v48 = vadd.f32 %v1144_v46, %v2564_v38 }
 0x134   :  { %v1858_v50 = vpack.c.bf16 %v1032_v2, %v1030_v43  ;;  %v1035_v52 = vpop.f32.mrb[44].mxu0 }
 0x135   :  { %v1859_v51 = vpack.c.bf16 %v1145_v48, %v1143_v5  ;;  %v1148_v53 = vpop.f32.mrb[44].mxu1  ;;  %v1036_v54 = vadd.f32 %v1035_v52, %v2576_v49  ;;  %v1037_v17 = vpop.f32.mrb[45].mxu0 }
 0x136   :  { %v1149_v55 = vadd.f32 %v1148_v53, %v2576_v49  ;;  %v1150_v12 = vpop.f32.mrb[45].mxu1  ;;  %1794 = vst [vmem:[%s2689_s3 + $0x1a0] sm:$0xff] %v1858_v50  ;;  %v1038_v58 = vadd.f32 %v1037_v17, %v2576_v49 }
 0x137   :  { %1795 = vst [vmem:[%s2689_s3 + $0x1a8] sm:$0xff] %v1859_v51  ;;  %v1151_v59 = vadd.f32 %v1150_v12, %v2576_v49 }
 0x138   :  { %v1862_v61 = vpack.c.bf16 %v1038_v58, %v1036_v54  ;;  %v1041_v63 = vpop.f32.mrb[46].mxu0 }
 0x139   :  { %v1863_v62 = vpack.c.bf16 %v1151_v59, %v1149_v55  ;;  %v1154_v0 = vpop.f32.mrb[46].mxu1  ;;  %v1042_v1 = vadd.f32 %v1041_v63, %v2588_v60  ;;  %v1043_v4 = vpop.f32.mrb[47].mxu0 }
 0x13a   :  { %v1155_v6 = vadd.f32 %v1154_v0, %v2588_v60  ;;  %v1156_v7 = vpop.f32.mrb[47].mxu1  ;;  %1798 = vst [vmem:[%s2689_s3 + $0x1c0] sm:$0xff] %v1862_v61  ;;  %v1044_v8 = vadd.f32 %v1043_v4, %v2588_v60 }
 0x13b   :  { %1799 = vst [vmem:[%s2689_s3 + $0x1c8] sm:$0xff] %v1863_v62  ;;  %v1157_v9 = vadd.f32 %v1156_v7, %v2588_v60 }
 0x13c   :  { %v1866_v10 = vpack.c.bf16 %v1044_v8, %v1042_v1  ;;  %v1225_v3 = vpop.f32.mrb[48].mxu0 }
 0x13d   :  { %v1867_v11 = vpack.c.bf16 %v1157_v9, %v1155_v6  ;;  %v1338_v14 = vpop.f32.mrb[48].mxu1  ;;  %v1226_v15 = vadd.f32 %v1225_v3, %v2504_v47  ;;  %v1227_v18 = vpop.f32.mrb[49].mxu0 }
 0x13e   :  { %v1339_v34 = vadd.f32 %v1338_v14, %v2504_v47  ;;  %v1340_v19 = vpop.f32.mrb[49].mxu1  ;;  %1802 = vst [vmem:[%s2689_s3 + $0x1e0] sm:$0xff] %v1866_v10  ;;  %v1228_v20 = vadd.f32 %v1227_v18, %v2504_v47 }
 0x13f   :  { %1803 = vst [vmem:[%s2689_s3 + $0x1e8] sm:$0xff] %v1867_v11  ;;  %v1341_v21 = vadd.f32 %v1340_v19, %v2504_v47 }
 0x140   :  { %v1840_v22 = vpack.c.bf16 %v1228_v20, %v1226_v15  ;;  %v1231_v24 = vpop.f32.mrb[50].mxu0 }
 0x141   :  { %v1841_v23 = vpack.c.bf16 %v1341_v21, %v1339_v34  ;;  %v1344_v25 = vpop.f32.mrb[50].mxu1  ;;  %v1232_v45 = vadd.f32 %v1231_v24, %v2516_v57  ;;  %v1233_v28 = vpop.f32.mrb[51].mxu0 }
 0x142   :  { %v1345_v26 = vadd.f32 %v1344_v25, %v2516_v57  ;;  %v1346_v29 = vpop.f32.mrb[51].mxu1  ;;  %1776 = vst [vmem:[%s2689_s3 + $0x110] sm:$0xff] %v1840_v22  ;;  %v1234_v47 = vadd.f32 %v1233_v28, %v2516_v57 }
 0x143   :  { %1777 = vst [vmem:[%s2689_s3 + $0x118] sm:$0xff] %v1841_v23  ;;  %v1347_v30 = vadd.f32 %v1346_v29, %v2516_v57 }
 0x144   :  { %v1844_v31 = vpack.c.bf16 %v1234_v47, %v1232_v45  ;;  %v1237_v33 = vpop.f32.mrb[52].mxu0 }
 0x145   :  { %v1845_v32 = vpack.c.bf16 %v1347_v30, %v1345_v26  ;;  %v1350_v35 = vpop.f32.mrb[52].mxu1  ;;  %v1238_v56 = vadd.f32 %v1237_v33, %v2528_v13  ;;  %v1239_v37 = vpop.f32.mrb[53].mxu0 }
 0x146   :  { %v1351_v36 = vadd.f32 %v1350_v35, %v2528_v13  ;;  %v1352_v39 = vpop.f32.mrb[53].mxu1  ;;  %1780 = vst [vmem:[%s2689_s3 + $0x130] sm:$0xff] %v1844_v31  ;;  %v1240_v57 = vadd.f32 %v1239_v37, %v2528_v13 }
 0x147   :  { %1781 = vst [vmem:[%s2689_s3 + $0x138] sm:$0xff] %v1845_v32  ;;  %v1353_v40 = vadd.f32 %v1352_v39, %v2528_v13 }
 0x148   :  { %v1848_v41 = vpack.c.bf16 %v1240_v57, %v1238_v56  ;;  %v1243_v43 = vpop.f32.mrb[54].mxu0 }
 0x149   :  { %v1849_v42 = vpack.c.bf16 %v1353_v40, %v1351_v36  ;;  %v1356_v44 = vpop.f32.mrb[54].mxu1  ;;  %v1244_v5 = vadd.f32 %v1243_v43, %v2540_v16  ;;  %v1245_v2 = vpop.f32.mrb[55].mxu0 }
 0x14a   :  { %v1357_v46 = vadd.f32 %v1356_v44, %v2540_v16  ;;  %v1358_v48 = vpop.f32.mrb[55].mxu1  ;;  %1784 = vst [vmem:[%s2689_s3 + $0x150] sm:$0xff] %v1848_v41  ;;  %v1246_v13 = vadd.f32 %v1245_v2, %v2540_v16 }
 0x14b   :  { %1785 = vst [vmem:[%s2689_s3 + $0x158] sm:$0xff] %v1849_v42  ;;  %v1359_v50 = vadd.f32 %v1358_v48, %v2540_v16 }
 0x14c   :  { %v1852_v51 = vpack.c.bf16 %v1246_v13, %v1244_v5  ;;  %v1249_v53 = vpop.f32.mrb[56].mxu0 }
 0x14d   :  { %v1853_v52 = vpack.c.bf16 %v1359_v50, %v1357_v46  ;;  %v1362_v54 = vpop.f32.mrb[56].mxu1  ;;  %v1250_v17 = vadd.f32 %v1249_v53, %v2552_v27  ;;  %v1251_v12 = vpop.f32.mrb[57].mxu0 }
 0x14e   :  { %v1363_v55 = vadd.f32 %v1362_v54, %v2552_v27  ;;  %v1364_v58 = vpop.f32.mrb[57].mxu1  ;;  %1788 = vst [vmem:[%s2689_s3 + $0x170] sm:$0xff] %v1852_v51  ;;  %v1252_v16 = vadd.f32 %v1251_v12, %v2552_v27 }
 0x14f   :  { %1789 = vst [vmem:[%s2689_s3 + $0x178] sm:$0xff] %v1853_v52  ;;  %v1365_v59 = vadd.f32 %v1364_v58, %v2552_v27 }
 0x150   :  { %v1856_v61 = vpack.c.bf16 %v1252_v16, %v1250_v17  ;;  %v1255_v63 = vpop.f32.mrb[58].mxu0 }
 0x151   :  { %v1857_v62 = vpack.c.bf16 %v1365_v59, %v1363_v55  ;;  %v1368_v0 = vpop.f32.mrb[58].mxu1  ;;  %v1256_v1 = vadd.f32 %v1255_v63, %v2564_v38  ;;  %v1257_v6 = vpop.f32.mrb[59].mxu0 }
 0x152   :  { %v1369_v4 = vadd.f32 %v1368_v0, %v2564_v38  ;;  %v1370_v7 = vpop.f32.mrb[59].mxu1  ;;  %1792 = vst [vmem:[%s2689_s3 + $0x190] sm:$0xff] %v1856_v61  ;;  %v1258_v27 = vadd.f32 %v1257_v6, %v2564_v38 }
 0x153   :  { %1793 = vst [vmem:[%s2689_s3 + $0x198] sm:$0xff] %v1857_v62  ;;  %v1371_v8 = vadd.f32 %v1370_v7, %v2564_v38 }
 0x154   :  { %v1860_v9 = vpack.c.bf16 %v1258_v27, %v1256_v1  ;;  %v1261_v11 = vpop.f32.mrb[60].mxu0 }
 0x155   :  { %v1861_v10 = vpack.c.bf16 %v1371_v8, %v1369_v4  ;;  %v1374_v3 = vpop.f32.mrb[60].mxu1  ;;  %v1262_v14 = vadd.f32 %v1261_v11, %v2576_v49  ;;  %v1263_v34 = vpop.f32.mrb[61].mxu0 }
 0x156   :  { %v1375_v15 = vadd.f32 %v1374_v3, %v2576_v49  ;;  %v1376_v18 = vpop.f32.mrb[61].mxu1  ;;  %1796 = vst [vmem:[%s2689_s3 + $0x1b0] sm:$0xff] %v1860_v9  ;;  %v1264_v38 = vadd.f32 %v1263_v34, %v2576_v49 }
 0x157   :  { %1797 = vst [vmem:[%s2689_s3 + $0x1b8] sm:$0xff] %v1861_v10  ;;  %v1377_v19 = vadd.f32 %v1376_v18, %v2576_v49 }
 0x158   :  { %v1864_v20 = vpack.c.bf16 %v1264_v38, %v1262_v14  ;;  %v1267_v22 = vpop.f32.mrb[62].mxu0 }
 0x159   :  { %v1865_v21 = vpack.c.bf16 %v1377_v19, %v1375_v15  ;;  %v1380_v23 = vpop.f32.mrb[62].mxu1  ;;  %v1268_v24 = vadd.f32 %v1267_v22, %v2588_v60  ;;  %v1269_v45 = vpop.f32.mrb[63].mxu0 }
 0x15a   :  { %v1381_v25 = vadd.f32 %v1380_v23, %v2588_v60  ;;  %v1382_v26 = vpop.f32.mrb[63].mxu1  ;;  %1800 = vst [vmem:[%s2689_s3 + $0x1d0] sm:$0xff] %v1864_v20  ;;  %v1270_v49 = vadd.f32 %v1269_v45, %v2588_v60 }
 0x15b   :  { %1801 = vst [vmem:[%s2689_s3 + $0x1d8] sm:$0xff] %v1865_v21  ;;  %v1383_v28 = vadd.f32 %v1382_v26, %v2588_v60 }
 0x15c   :  { %v1868_v29 = vpack.c.bf16 %v1270_v49, %v1268_v24 }
 0x15d   :  { %v1869_v47 = vpack.c.bf16 %v1383_v28, %v1381_v25 }
 0x15e   :  { %1804 = vst [vmem:[%s2689_s3 + $0x1f0] sm:$0xff] %v1868_v29 }
 0x15f   :  { %1805 = vst [vmem:[%s2689_s3 + $0x1f8] sm:$0xff] %v1869_v47 }

// kernel: model_forward.3
= control target key start
LH: loop header
LB: loop body
LE: loop exit
PB: predicated region body
PF: predicated region fallthrough
CT: control target
= control target key end

     0   :  { %s5215_s9 = smov 0   ;;  %s5217_s10 = smov 0   ;;  %s5819_s0 = inlined_call_operand.vmem [shape: bf16[2,65536], index: 0, kind: input, shape index: {}]   ;;  %s5820_s1 = inlined_call_operand.vmem [shape: bf16[13,65536], index: 1, kind: input, shape index: {}]   ;;  %s5821_s2 = inlined_call_operand.vmem [shape: f32[2,13,2], index: 2, kind: output, shape index: {}]  }
   0x1   :  { %s5219_s11 = smov 0   ;;  %s5221_s12 = smov 0  }
   0x2   :  { %s5223_s13 = smov 0   ;;  %s5225_s14 = smov 0  }
   0x3   :  { %s5227_s15 = smov 0  }
   0x4 LB: > { %s21_s16 = sadd.s32 1, %s5188_s13  ;;  %s24_s17 = sadd.s32 1, %s5192_s14  ;;  %s5196_s15 = sphi %s5227_s15, %s12_s15   ;;  %s5192_s14 = sphi %s5225_s14, %s5827_s14   ;;  %s5188_s13 = sphi %s5223_s13, %s5826_s13   ;;  %s5184_s12 = sphi %s5221_s12, %s5825_s12   ;;  %s5180_s11 = sphi %s5219_s11, %s5824_s11   ;;  %s5176_s10 = sphi %s5217_s10, %s5823_s10   ;;  %s5172_s9 = sphi %s5215_s9, %s5822_s9  }
   0x5   : > { %p22_p0 = scmp.ge.s32.totalorder %s21_s16, 2  ;;  %p72_p1 = scmp.ne.s32.totalorder %s5176_s10, %s5172_s9 }
   0x6   : > { %p73_p2 = scmp.eq.s32.totalorder %s5196_s15, 0  ;;  %s4920_s18 = sshll.u32 %s5192_s14, 1 }
   0x7   : > { %s5829_s16 = smov (%p22_p0, %s21_s16), 0  ;;  %s5831_s17 = smov (!%p22_p0, %s24_s17), %s5192_s14 }
   0x8   : > { %p26_p3 = scmp.ge.s32.totalorder %s5831_s17, 2  ;;  %p74_p4 = por %p73_p2, %p72_p1 }
   0x9   : > { %s59_s19 = sadd.s32 %s5188_s13, %s4920_s18  ;;  %s65_s23 = sadd.s32 1, %s5176_s10 }
   0xa   : > { %s5833_s17 = smov (%p26_p3, %s5831_s17), 0  ;;  %p4923_p6 = scmp.ge.s32.totalorder %s5196_s15, 4 }
   0xb   : > { %s4921_s20 = sshll.u32 %s5833_s17, 1 }
   0xc   : > { %s61_s21 = sadd.s32 %s4921_s20, %s5829_s16  ;;  %124 = sbr.rel (%p4923_p6) target bundleno = 87 (0x57), region = 16 }
   0xd   : > { %s62_s22 = ssub.s32 %s59_s19, %s61_s21 }
   0xe   : > { %p63_p5 = scmp.eq.s32.totalorder %s62_s22, 0 }
  0x10   : > { %s5266_s24 = scalar_select %p63_p5, %s5176_s10, %s65_s23  }
  0x13   : > { %139 = sbr.rel (!%p74_p4) target bundleno = 87 (0x57), region = 24  ;;  %s141_s25 = sand.u32 (%p74_p4), 1, %s5176_s10  }
  0x14   : > { %s5066_s26 = sshll.u32 (%p74_p4), %s59_s19, 9  ;;  %s4924_s27 = sshll.u32 (%p74_p4), %s141_s25, 10 }
  0x15   : > { %s5273_s30 = scalar_lea.vmem (%p74_p4), %s5820_s1, %s5066_s26  ;;  %s5278_s3 = scalar_lea.vmem (%p74_p4), [#allocation3], %s4924_s27 }
  0x16   : > { %v161_v0 = vld [vmem:[%s5273_s30] sm:$0xff] (%p74_p4)  ;;  %v163_v1 = vld [vmem:[%s5273_s30 + $0x8] sm:$0xff] (%p74_p4)  ;;  %v165_v2 = vld [vmem:[%s5273_s30 + $0x10] sm:$0xff] (%p74_p4) }
  0x17   : > { %162 = vst [vmem:[%s5278_s3] sm:$0xff] (%p74_p4), %v161_v0  ;;  %164 = vst [vmem:[%s5278_s3 + $0x8] sm:$0xff] (%p74_p4), %v163_v1  ;;  %v167_v3 = vld [vmem:[%s5273_s30 + $0x18] sm:$0xff] (%p74_p4)  ;;  %v169_v4 = vld [vmem:[%s5273_s30 + $0x20] sm:$0xff] (%p74_p4) }
  0x18   : > { %166 = vst [vmem:[%s5278_s3 + $0x10] sm:$0xff] (%p74_p4), %v165_v2  ;;  %v171_v5 = vld [vmem:[%s5273_s30 + $0x28] sm:$0xff] (%p74_p4)  ;;  %168 = vst [vmem:[%s5278_s3 + $0x18] sm:$0xff] (%p74_p4), %v167_v3  ;;  %v173_v6 = vld [vmem:[%s5273_s30 + $0x30] sm:$0xff] (%p74_p4) }
  0x19   : > { %170 = vst [vmem:[%s5278_s3 + $0x20] sm:$0xff] (%p74_p4), %v169_v4  ;;  %172 = vst [vmem:[%s5278_s3 + $0x28] sm:$0xff] (%p74_p4), %v171_v5  ;;  %v175_v7 = vld [vmem:[%s5273_s30 + $0x38] sm:$0xff] (%p74_p4)  ;;  %v177_v8 = vld [vmem:[%s5273_s30 + $0x40] sm:$0xff] (%p74_p4) }
  0x1a   : > { %174 = vst [vmem:[%s5278_s3 + $0x30] sm:$0xff] %v173_v6  ;;  %176 = vst [vmem:[%s5278_s3 + $0x38] sm:$0xff] %v175_v7  ;;  %v179_v9 = vld [vmem:[%s5273_s30 + $0x48] sm:$0xff]  ;;  %v181_v10 = vld [vmem:[%s5273_s30 + $0x50] sm:$0xff] }
  0x1b   : > { %178 = vst [vmem:[%s5278_s3 + $0x40] sm:$0xff] %v177_v8  ;;  %v183_v11 = vld [vmem:[%s5273_s30 + $0x58] sm:$0xff]  ;;  %180 = vst [vmem:[%s5278_s3 + $0x48] sm:$0xff] %v179_v9  ;;  %v185_v12 = vld [vmem:[%s5273_s30 + $0x60] sm:$0xff] }
  0x1c   : > { %182 = vst [vmem:[%s5278_s3 + $0x50] sm:$0xff] %v181_v10  ;;  %184 = vst [vmem:[%s5278_s3 + $0x58] sm:$0xff] %v183_v11  ;;  %v187_v13 = vld [vmem:[%s5273_s30 + $0x68] sm:$0xff]  ;;  %v189_v14 = vld [vmem:[%s5273_s30 + $0x70] sm:$0xff] }
  0x1d   : > { %186 = vst [vmem:[%s5278_s3 + $0x60] sm:$0xff] %v185_v12  ;;  %188 = vst [vmem:[%s5278_s3 + $0x68] sm:$0xff] %v187_v13  ;;  %v191_v15 = vld [vmem:[%s5273_s30 + $0x78] sm:$0xff]  ;;  %v193_v16 = vld [vmem:[%s5273_s30 + $0x80] sm:$0xff] }
  0x1e   : > { %190 = vst [vmem:[%s5278_s3 + $0x70] sm:$0xff] %v189_v14  ;;  %v195_v17 = vld [vmem:[%s5273_s30 + $0x88] sm:$0xff]  ;;  %192 = vst [vmem:[%s5278_s3 + $0x78] sm:$0xff] %v191_v15  ;;  %v197_v18 = vld [vmem:[%s5273_s30 + $0x90] sm:$0xff] }
  0x1f   : > { %194 = vst [vmem:[%s5278_s3 + $0x80] sm:$0xff] %v193_v16  ;;  %196 = vst [vmem:[%s5278_s3 + $0x88] sm:$0xff] %v195_v17  ;;  %v199_v19 = vld [vmem:[%s5273_s30 + $0x98] sm:$0xff]  ;;  %v201_v20 = vld [vmem:[%s5273_s30 + $0xa0] sm:$0xff] }
  0x20   : > { %198 = vst [vmem:[%s5278_s3 + $0x90] sm:$0xff] %v197_v18  ;;  %200 = vst [vmem:[%s5278_s3 + $0x98] sm:$0xff] %v199_v19  ;;  %v203_v21 = vld [vmem:[%s5273_s30 + $0xa8] sm:$0xff]  ;;  %v205_v22 = vld [vmem:[%s5273_s30 + $0xb0] sm:$0xff] }
  0x21   : > { %202 = vst [vmem:[%s5278_s3 + $0xa0] sm:$0xff] %v201_v20  ;;  %v207_v23 = vld [vmem:[%s5273_s30 + $0xb8] sm:$0xff]  ;;  %204 = vst [vmem:[%s5278_s3 + $0xa8] sm:$0xff] %v203_v21  ;;  %v209_v24 = vld [vmem:[%s5273_s30 + $0xc0] sm:$0xff] }
  0x22   : > { %206 = vst [vmem:[%s5278_s3 + $0xb0] sm:$0xff] %v205_v22  ;;  %208 = vst [vmem:[%s5278_s3 + $0xb8] sm:$0xff] %v207_v23  ;;  %v211_v25 = vld [vmem:[%s5273_s30 + $0xc8] sm:$0xff]  ;;  %v213_v26 = vld [vmem:[%s5273_s30 + $0xd0] sm:$0xff] }
  0x23   : > { %210 = vst [vmem:[%s5278_s3 + $0xc0] sm:$0xff] %v209_v24  ;;  %212 = vst [vmem:[%s5278_s3 + $0xc8] sm:$0xff] %v211_v25  ;;  %v215_v27 = vld [vmem:[%s5273_s30 + $0xd8] sm:$0xff]  ;;  %v217_v28 = vld [vmem:[%s5273_s30 + $0xe0] sm:$0xff] }
  0x24   : > { %214 = vst [vmem:[%s5278_s3 + $0xd0] sm:$0xff] %v213_v26  ;;  %v219_v29 = vld [vmem:[%s5273_s30 + $0xe8] sm:$0xff]  ;;  %216 = vst [vmem:[%s5278_s3 + $0xd8] sm:$0xff] %v215_v27  ;;  %v221_v30 = vld [vmem:[%s5273_s30 + $0xf0] sm:$0xff] }
  0x25   : > { %218 = vst [vmem:[%s5278_s3 + $0xe0] sm:$0xff] %v217_v28  ;;  %220 = vst [vmem:[%s5278_s3 + $0xe8] sm:$0xff] %v219_v29  ;;  %v223_v31 = vld [vmem:[%s5273_s30 + $0xf8] sm:$0xff]  ;;  %v225_v32 = vld [vmem:[%s5273_s30 + $0x100] sm:$0xff] }
  0x26   : > { %222 = vst [vmem:[%s5278_s3 + $0xf0] sm:$0xff] %v221_v30  ;;  %224 = vst [vmem:[%s5278_s3 + $0xf8] sm:$0xff] %v223_v31  ;;  %v227_v33 = vld [vmem:[%s5273_s30 + $0x108] sm:$0xff]  ;;  %v229_v34 = vld [vmem:[%s5273_s30 + $0x110] sm:$0xff] }
  0x27   : > { %226 = vst [vmem:[%s5278_s3 + $0x100] sm:$0xff] %v225_v32  ;;  %v231_v35 = vld [vmem:[%s5273_s30 + $0x118] sm:$0xff]  ;;  %228 = vst [vmem:[%s5278_s3 + $0x108] sm:$0xff] %v227_v33  ;;  %v233_v36 = vld [vmem:[%s5273_s30 + $0x120] sm:$0xff] }
  0x28   : > { %230 = vst [vmem:[%s5278_s3 + $0x110] sm:$0xff] %v229_v34  ;;  %232 = vst [vmem:[%s5278_s3 + $0x118] sm:$0xff] %v231_v35  ;;  %v235_v37 = vld [vmem:[%s5273_s30 + $0x128] sm:$0xff]  ;;  %v237_v38 = vld [vmem:[%s5273_s30 + $0x130] sm:$0xff] }
  0x29   : > { %234 = vst [vmem:[%s5278_s3 + $0x120] sm:$0xff] %v233_v36  ;;  %236 = vst [vmem:[%s5278_s3 + $0x128] sm:$0xff] %v235_v37  ;;  %v239_v39 = vld [vmem:[%s5273_s30 + $0x138] sm:$0xff]  ;;  %v241_v40 = vld [vmem:[%s5273_s30 + $0x140] sm:$0xff] }
  0x2a   : > { %238 = vst [vmem:[%s5278_s3 + $0x130] sm:$0xff] %v237_v38  ;;  %v243_v41 = vld [vmem:[%s5273_s30 + $0x148] sm:$0xff]  ;;  %240 = vst [vmem:[%s5278_s3 + $0x138] sm:$0xff] %v239_v39  ;;  %v245_v42 = vld [vmem:[%s5273_s30 + $0x150] sm:$0xff] }
  0x2b   : > { %242 = vst [vmem:[%s5278_s3 + $0x140] sm:$0xff] %v241_v40  ;;  %244 = vst [vmem:[%s5278_s3 + $0x148] sm:$0xff] %v243_v41  ;;  %v247_v43 = vld [vmem:[%s5273_s30 + $0x158] sm:$0xff]  ;;  %v249_v44 = vld [vmem:[%s5273_s30 + $0x160] sm:$0xff] }
  0x2c   : > { %246 = vst [vmem:[%s5278_s3 + $0x150] sm:$0xff] %v245_v42  ;;  %248 = vst [vmem:[%s5278_s3 + $0x158] sm:$0xff] %v247_v43  ;;  %v251_v45 = vld [vmem:[%s5273_s30 + $0x168] sm:$0xff]  ;;  %v253_v46 = vld [vmem:[%s5273_s30 + $0x170] sm:$0xff] }
  0x2d   : > { %250 = vst [vmem:[%s5278_s3 + $0x160] sm:$0xff] %v249_v44  ;;  %v255_v47 = vld [vmem:[%s5273_s30 + $0x178] sm:$0xff]  ;;  %252 = vst [vmem:[%s5278_s3 + $0x168] sm:$0xff] %v251_v45  ;;  %v257_v48 = vld [vmem:[%s5273_s30 + $0x180] sm:$0xff] }
  0x2e   : > { %254 = vst [vmem:[%s5278_s3 + $0x170] sm:$0xff] %v253_v46  ;;  %256 = vst [vmem:[%s5278_s3 + $0x178] sm:$0xff] %v255_v47  ;;  %v259_v49 = vld [vmem:[%s5273_s30 + $0x188] sm:$0xff]  ;;  %v261_v50 = vld [vmem:[%s5273_s30 + $0x190] sm:$0xff] }
  0x2f   : > { %258 = vst [vmem:[%s5278_s3 + $0x180] sm:$0xff] %v257_v48  ;;  %260 = vst [vmem:[%s5278_s3 + $0x188] sm:$0xff] %v259_v49  ;;  %v263_v51 = vld [vmem:[%s5273_s30 + $0x198] sm:$0xff]  ;;  %v265_v52 = vld [vmem:[%s5273_s30 + $0x1a0] sm:$0xff] }
  0x30   : > { %262 = vst [vmem:[%s5278_s3 + $0x190] sm:$0xff] %v261_v50  ;;  %v267_v53 = vld [vmem:[%s5273_s30 + $0x1a8] sm:$0xff]  ;;  %264 = vst [vmem:[%s5278_s3 + $0x198] sm:$0xff] %v263_v51  ;;  %v269_v54 = vld [vmem:[%s5273_s30 + $0x1b0] sm:$0xff] }
  0x31   : > { %266 = vst [vmem:[%s5278_s3 + $0x1a0] sm:$0xff] %v265_v52  ;;  %268 = vst [vmem:[%s5278_s3 + $0x1a8] sm:$0xff] %v267_v53  ;;  %v271_v55 = vld [vmem:[%s5273_s30 + $0x1b8] sm:$0xff]  ;;  %v273_v56 = vld [vmem:[%s5273_s30 + $0x1c0] sm:$0xff] }
  0x32   : > { %270 = vst [vmem:[%s5278_s3 + $0x1b0] sm:$0xff] %v269_v54  ;;  %272 = vst [vmem:[%s5278_s3 + $0x1b8] sm:$0xff] %v271_v55  ;;  %v275_v57 = vld [vmem:[%s5273_s30 + $0x1c8] sm:$0xff]  ;;  %v277_v58 = vld [vmem:[%s5273_s30 + $0x1d0] sm:$0xff] }
  0x33   : > { %274 = vst [vmem:[%s5278_s3 + $0x1c0] sm:$0xff] %v273_v56  ;;  %v279_v59 = vld [vmem:[%s5273_s30 + $0x1d8] sm:$0xff]  ;;  %276 = vst [vmem:[%s5278_s3 + $0x1c8] sm:$0xff] %v275_v57  ;;  %v281_v60 = vld [vmem:[%s5273_s30 + $0x1e0] sm:$0xff] }
  0x34   : > { %278 = vst [vmem:[%s5278_s3 + $0x1d0] sm:$0xff] %v277_v58  ;;  %280 = vst [vmem:[%s5278_s3 + $0x1d8] sm:$0xff] %v279_v59  ;;  %v283_v61 = vld [vmem:[%s5273_s30 + $0x1e8] sm:$0xff]  ;;  %v285_v62 = vld [vmem:[%s5273_s30 + $0x1f0] sm:$0xff] }
  0x35   : > { %282 = vst [vmem:[%s5278_s3 + $0x1e0] sm:$0xff] %v281_v60  ;;  %284 = vst [vmem:[%s5278_s3 + $0x1e8] sm:$0xff] %v283_v61  ;;  %v287_v63 = vld [vmem:[%s5273_s30 + $0x1f8] sm:$0xff]  ;;  %v289_v0 = vld [vmem:[%s5273_s30 + $0x800] sm:$0xff] }
  0x36   : > { %286 = vst [vmem:[%s5278_s3 + $0x1f0] sm:$0xff] %v285_v62  ;;  %v291_v1 = vld [vmem:[%s5273_s30 + $0x808] sm:$0xff]  ;;  %288 = vst [vmem:[%s5278_s3 + $0x1f8] sm:$0xff] %v287_v63  ;;  %v293_v2 = vld [vmem:[%s5273_s30 + $0x810] sm:$0xff] }
  0x37   : > { %290 = vst [vmem:[%s5278_s3 + $0x200] sm:$0xff] %v289_v0  ;;  %292 = vst [vmem:[%s5278_s3 + $0x208] sm:$0xff] %v291_v1  ;;  %v295_v3 = vld [vmem:[%s5273_s30 + $0x818] sm:$0xff]  ;;  %v297_v4 = vld [vmem:[%s5273_s30 + $0x820] sm:$0xff] }
  0x38   : > { %294 = vst [vmem:[%s5278_s3 + $0x210] sm:$0xff] %v293_v2  ;;  %296 = vst [vmem:[%s5278_s3 + $0x218] sm:$0xff] %v295_v3  ;;  %v299_v5 = vld [vmem:[%s5273_s30 + $0x828] sm:$0xff]  ;;  %v301_v6 = vld [vmem:[%s5273_s30 + $0x830] sm:$0xff] }
  0x39   : > { %298 = vst [vmem:[%s5278_s3 + $0x220] sm:$0xff] %v297_v4  ;;  %v303_v7 = vld [vmem:[%s5273_s30 + $0x838] sm:$0xff]  ;;  %300 = vst [vmem:[%s5278_s3 + $0x228] sm:$0xff] %v299_v5  ;;  %v305_v8 = vld [vmem:[%s5273_s30 + $0x840] sm:$0xff] }
  0x3a   : > { %302 = vst [vmem:[%s5278_s3 + $0x230] sm:$0xff] %v301_v6  ;;  %304 = vst [vmem:[%s5278_s3 + $0x238] sm:$0xff] %v303_v7  ;;  %v307_v9 = vld [vmem:[%s5273_s30 + $0x848] sm:$0xff]  ;;  %v309_v10 = vld [vmem:[%s5273_s30 + $0x850] sm:$0xff] }
  0x3b   : > { %306 = vst [vmem:[%s5278_s3 + $0x240] sm:$0xff] %v305_v8  ;;  %308 = vst [vmem:[%s5278_s3 + $0x248] sm:$0xff] %v307_v9  ;;  %v311_v11 = vld [vmem:[%s5273_s30 + $0x858] sm:$0xff]  ;;  %v313_v12 = vld [vmem:[%s5273_s30 + $0x860] sm:$0xff] }
  0x3c   : > { %310 = vst [vmem:[%s5278_s3 + $0x250] sm:$0xff] %v309_v10  ;;  %v315_v13 = vld [vmem:[%s5273_s30 + $0x868] sm:$0xff]  ;;  %312 = vst [vmem:[%s5278_s3 + $0x258] sm:$0xff] %v311_v11  ;;  %v317_v14 = vld [vmem:[%s5273_s30 + $0x870] sm:$0xff] }
  0x3d   : > { %314 = vst [vmem:[%s5278_s3 + $0x260] sm:$0xff] %v313_v12  ;;  %316 = vst [vmem:[%s5278_s3 + $0x268] sm:$0xff] %v315_v13  ;;  %v319_v15 = vld [vmem:[%s5273_s30 + $0x878] sm:$0xff]  ;;  %v321_v16 = vld [vmem:[%s5273_s30 + $0x880] sm:$0xff] }
  0x3e   : > { %318 = vst [vmem:[%s5278_s3 + $0x270] sm:$0xff] %v317_v14  ;;  %320 = vst [vmem:[%s5278_s3 + $0x278] sm:$0xff] %v319_v15  ;;  %v323_v17 = vld [vmem:[%s5273_s30 + $0x888] sm:$0xff]  ;;  %v325_v18 = vld [vmem:[%s5273_s30 + $0x890] sm:$0xff] }
  0x3f   : > { %322 = vst [vmem:[%s5278_s3 + $0x280] sm:$0xff] %v321_v16  ;;  %v327_v19 = vld [vmem:[%s5273_s30 + $0x898] sm:$0xff]  ;;  %324 = vst [vmem:[%s5278_s3 + $0x288] sm:$0xff] %v323_v17  ;;  %v329_v20 = vld [vmem:[%s5273_s30 + $0x8a0] sm:$0xff] }
  0x40   : > { %326 = vst [vmem:[%s5278_s3 + $0x290] sm:$0xff] %v325_v18  ;;  %328 = vst [vmem:[%s5278_s3 + $0x298] sm:$0xff] %v327_v19  ;;  %v331_v21 = vld [vmem:[%s5273_s30 + $0x8a8] sm:$0xff]  ;;  %v333_v22 = vld [vmem:[%s5273_s30 + $0x8b0] sm:$0xff] }
  0x41   : > { %330 = vst [vmem:[%s5278_s3 + $0x2a0] sm:$0xff] %v329_v20  ;;  %332 = vst [vmem:[%s5278_s3 + $0x2a8] sm:$0xff] %v331_v21  ;;  %v335_v23 = vld [vmem:[%s5273_s30 + $0x8b8] sm:$0xff]  ;;  %v337_v24 = vld [vmem:[%s5273_s30 + $0x8c0] sm:$0xff] }
  0x42   : > { %334 = vst [vmem:[%s5278_s3 + $0x2b0] sm:$0xff] %v333_v22  ;;  %v339_v25 = vld [vmem:[%s5273_s30 + $0x8c8] sm:$0xff]  ;;  %336 = vst [vmem:[%s5278_s3 + $0x2b8] sm:$0xff] %v335_v23  ;;  %v341_v26 = vld [vmem:[%s5273_s30 + $0x8d0] sm:$0xff] }
  0x43   : > { %338 = vst [vmem:[%s5278_s3 + $0x2c0] sm:$0xff] %v337_v24  ;;  %340 = vst [vmem:[%s5278_s3 + $0x2c8] sm:$0xff] %v339_v25  ;;  %v343_v27 = vld [vmem:[%s5273_s30 + $0x8d8] sm:$0xff]  ;;  %v345_v28 = vld [vmem:[%s5273_s30 + $0x8e0] sm:$0xff] }
  0x44   : > { %342 = vst [vmem:[%s5278_s3 + $0x2d0] sm:$0xff] %v341_v26  ;;  %344 = vst [vmem:[%s5278_s3 + $0x2d8] sm:$0xff] %v343_v27  ;;  %v347_v29 = vld [vmem:[%s5273_s30 + $0x8e8] sm:$0xff]  ;;  %v349_v30 = vld [vmem:[%s5273_s30 + $0x8f0] sm:$0xff] }
  0x45   : > { %346 = vst [vmem:[%s5278_s3 + $0x2e0] sm:$0xff] %v345_v28  ;;  %v351_v31 = vld [vmem:[%s5273_s30 + $0x8f8] sm:$0xff]  ;;  %348 = vst [vmem:[%s5278_s3 + $0x2e8] sm:$0xff] %v347_v29  ;;  %v353_v32 = vld [vmem:[%s5273_s30 + $0x900] sm:$0xff] }
  0x46   : > { %350 = vst [vmem:[%s5278_s3 + $0x2f0] sm:$0xff] %v349_v30  ;;  %352 = vst [vmem:[%s5278_s3 + $0x2f8] sm:$0xff] %v351_v31  ;;  %v355_v33 = vld [vmem:[%s5273_s30 + $0x908] sm:$0xff]  ;;  %v357_v34 = vld [vmem:[%s5273_s30 + $0x910] sm:$0xff] }
  0x47   : > { %354 = vst [vmem:[%s5278_s3 + $0x300] sm:$0xff] %v353_v32  ;;  %356 = vst [vmem:[%s5278_s3 + $0x308] sm:$0xff] %v355_v33  ;;  %v359_v35 = vld [vmem:[%s5273_s30 + $0x918] sm:$0xff]  ;;  %v361_v36 = vld [vmem:[%s5273_s30 + $0x920] sm:$0xff] }
  0x48   : > { %358 = vst [vmem:[%s5278_s3 + $0x310] sm:$0xff] %v357_v34  ;;  %v363_v37 = vld [vmem:[%s5273_s30 + $0x928] sm:$0xff]  ;;  %360 = vst [vmem:[%s5278_s3 + $0x318] sm:$0xff] %v359_v35  ;;  %v365_v38 = vld [vmem:[%s5273_s30 + $0x930] sm:$0xff] }
  0x49   : > { %362 = vst [vmem:[%s5278_s3 + $0x320] sm:$0xff] %v361_v36  ;;  %364 = vst [vmem:[%s5278_s3 + $0x328] sm:$0xff] %v363_v37  ;;  %v367_v39 = vld [vmem:[%s5273_s30 + $0x938] sm:$0xff]  ;;  %v369_v40 = vld [vmem:[%s5273_s30 + $0x940] sm:$0xff] }
  0x4a   : > { %366 = vst [vmem:[%s5278_s3 + $0x330] sm:$0xff] %v365_v38  ;;  %368 = vst [vmem:[%s5278_s3 + $0x338] sm:$0xff] %v367_v39  ;;  %v371_v41 = vld [vmem:[%s5273_s30 + $0x948] sm:$0xff]  ;;  %v373_v42 = vld [vmem:[%s5273_s30 + $0x950] sm:$0xff] }
  0x4b   : > { %370 = vst [vmem:[%s5278_s3 + $0x340] sm:$0xff] %v369_v40  ;;  %v375_v43 = vld [vmem:[%s5273_s30 + $0x958] sm:$0xff]  ;;  %372 = vst [vmem:[%s5278_s3 + $0x348] sm:$0xff] %v371_v41  ;;  %v377_v44 = vld [vmem:[%s5273_s30 + $0x960] sm:$0xff] }
  0x4c   : > { %374 = vst [vmem:[%s5278_s3 + $0x350] sm:$0xff] %v373_v42  ;;  %376 = vst [vmem:[%s5278_s3 + $0x358] sm:$0xff] %v375_v43  ;;  %v379_v45 = vld [vmem:[%s5273_s30 + $0x968] sm:$0xff]  ;;  %v381_v46 = vld [vmem:[%s5273_s30 + $0x970] sm:$0xff] }
  0x4d   : > { %378 = vst [vmem:[%s5278_s3 + $0x360] sm:$0xff] %v377_v44  ;;  %380 = vst [vmem:[%s5278_s3 + $0x368] sm:$0xff] %v379_v45  ;;  %v383_v47 = vld [vmem:[%s5273_s30 + $0x978] sm:$0xff]  ;;  %v385_v48 = vld [vmem:[%s5273_s30 + $0x980] sm:$0xff] }
  0x4e   : > { %382 = vst [vmem:[%s5278_s3 + $0x370] sm:$0xff] %v381_v46  ;;  %v387_v49 = vld [vmem:[%s5273_s30 + $0x988] sm:$0xff]  ;;  %384 = vst [vmem:[%s5278_s3 + $0x378] sm:$0xff] %v383_v47  ;;  %v389_v50 = vld [vmem:[%s5273_s30 + $0x990] sm:$0xff] }
  0x4f   : > { %386 = vst [vmem:[%s5278_s3 + $0x380] sm:$0xff] %v385_v48  ;;  %388 = vst [vmem:[%s5278_s3 + $0x388] sm:$0xff] %v387_v49  ;;  %v391_v51 = vld [vmem:[%s5273_s30 + $0x998] sm:$0xff]  ;;  %v393_v52 = vld [vmem:[%s5273_s30 + $0x9a0] sm:$0xff] }
  0x50   : > { %390 = vst [vmem:[%s5278_s3 + $0x390] sm:$0xff] %v389_v50  ;;  %392 = vst [vmem:[%s5278_s3 + $0x398] sm:$0xff] %v391_v51  ;;  %v395_v53 = vld [vmem:[%s5273_s30 + $0x9a8] sm:$0xff]  ;;  %v397_v54 = vld [vmem:[%s5273_s30 + $0x9b0] sm:$0xff] }
  0x51   : > { %394 = vst [vmem:[%s5278_s3 + $0x3a0] sm:$0xff] %v393_v52  ;;  %v399_v55 = vld [vmem:[%s5273_s30 + $0x9b8] sm:$0xff]  ;;  %396 = vst [vmem:[%s5278_s3 + $0x3a8] sm:$0xff] %v395_v53  ;;  %v401_v56 = vld [vmem:[%s5273_s30 + $0x9c0] sm:$0xff] }
  0x52   : > { %398 = vst [vmem:[%s5278_s3 + $0x3b0] sm:$0xff] %v397_v54  ;;  %400 = vst [vmem:[%s5278_s3 + $0x3b8] sm:$0xff] %v399_v55  ;;  %v403_v57 = vld [vmem:[%s5273_s30 + $0x9c8] sm:$0xff]  ;;  %v405_v58 = vld [vmem:[%s5273_s30 + $0x9d0] sm:$0xff] }
  0x53   : > { %402 = vst [vmem:[%s5278_s3 + $0x3c0] sm:$0xff] %v401_v56  ;;  %404 = vst [vmem:[%s5278_s3 + $0x3c8] sm:$0xff] %v403_v57  ;;  %v407_v59 = vld [vmem:[%s5273_s30 + $0x9d8] sm:$0xff]  ;;  %v409_v60 = vld [vmem:[%s5273_s30 + $0x9e0] sm:$0xff] }
  0x54   : > { %406 = vst [vmem:[%s5278_s3 + $0x3d0] sm:$0xff] %v405_v58  ;;  %v411_v61 = vld [vmem:[%s5273_s30 + $0x9e8] sm:$0xff]  ;;  %408 = vst [vmem:[%s5278_s3 + $0x3d8] sm:$0xff] %v407_v59  ;;  %v413_v62 = vld [vmem:[%s5273_s30 + $0x9f0] sm:$0xff] }
  0x55   : > { %410 = vst [vmem:[%s5278_s3 + $0x3e0] sm:$0xff] %v409_v60  ;;  %412 = vst [vmem:[%s5278_s3 + $0x3e8] sm:$0xff] %v411_v61  ;;  %v415_v63 = vld [vmem:[%s5273_s30 + $0x9f8] sm:$0xff] }
  0x56   : > { %414 = vst [vmem:[%s5278_s3 + $0x3f0] sm:$0xff] %v413_v62  ;;  %416 = vst [vmem:[%s5278_s3 + $0x3f8] sm:$0xff] %v415_v63 }
  0x57 PF: > { %p4928_p7 = scmp.ge.s32.totalorder %s5196_s15, 1  ;;  %p421_p8 = scmp.lt.s32.totalorder %s5196_s15, 5 }
  0x59   : > { %p422_p9 = pnand %p4928_p7, %p421_p8 }
  0x5a   : > { %s428_s4 = sand.u32 (!%p422_p9), 1, %s5172_s9   ;;  %s4930_s5 = sshll.u32 (!%p422_p9), %s5184_s12, 1 }
  0x5b   : > { %425 = sbr.rel (%p422_p9) target bundleno = 605 (0x25d), region = 47  ;;  %s4929_s6 = sshll.u32 (!%p422_p9), %s428_s4, 10 }
  0x5c   : > { %s456_s7 = sadd.s32 (!%p422_p9), %s5180_s11, %s4930_s5  ;;  %p467_p11 = scmp.lt.s32.totalorder (!%p422_p9), %s5184_s12, 1 }
  0x5d   : > { %s4931_s8 = sshll.u32 (!%p422_p9), %s456_s7, 7  ;;  %s5550_s9 = scalar_lea.vmem (!%p422_p9), [#allocation3], %s4929_s6 }
  0x5e   : > { %p458_p10 = scmp.lt.s32.totalorder (!%p422_p9), %s4931_s8, 511  ;;  %p4934_p12 = scmp.ne.s32.totalorder (!%p422_p9), %s5180_s11, 0 }
  0x62   : > { %s5835_s8 = smov (!%p458_p10, %s4931_s8), 511  ;;  %s5837_s12 = smov (!%p467_p11, %s5184_s12), 1 }
  0x63   : > { %s5543_s20 = scalar_lea.vmem %s5819_s0, %s5835_s8  ;;  %s5067_s21 = sshll.u32 %s5837_s12, 4  ;;  %vm477_vm0 = vcmask (!%p4934_p12), 15360   ;;  %vm479_vm1 = vcmask (!%p4934_p12), 12288   ;;  %v5198_v0 = vmov (!%p4934_p12), 0.0  }
  0x64   : > { %s5548_s25 = scalar_lea.vmem %s5821_s2, %s5067_s21  ;;  %476 = sbr.rel (%p4934_p12) target bundleno = 107 (0x6b), region = 55  ;;  %478 = vst.msk [vmem:[#allocation2] sm:$0xff] (!%p4934_p12), %vm477_vm0, %v5198_v0 }
  0x65   : > { %480 = vst.msk [vmem:[#allocation2 + $0x8] sm:$0x1f] (!%p4934_p12), %vm479_vm1, %v5198_v0 }
  0x6b PF: > { %v1287_v1 = vlaneseq  ;;  %v483_v2 = vld [vmem:[%s5550_s9] sm:$0xff]  ;;  %v5199_v4 = vmov 1966171168   ;;  %v484_v7 = vld [vmem:[%s5550_s9 + $0x8] sm:$0xff]  ;;  %v611_v9 = vld [vmem:[%s5543_s20] sm:$0xff]  ;;  %vm4821_vm2 = vcmask 15360  }
  0x6c   : > { %v547_v3 = vld [vmem:[%s5550_s9 + $0x200] sm:$0x77]  ;;  %v1285_v5 = vunpack.c.l.s4 %v5199_v4  ;;  %v548_v8 = vld [vmem:[%s5550_s9 + $0x208] sm:$0x77]  ;;  %v1283_v12 = vcombine.high %v611_v9, %v611_v9  ;;  %v612_v15 = vld [vmem:[%s5543_s20 + $0x8] sm:$0xff]  ;;  %vm4823_vm3 = vcmask 12288  }
  0x6d   : > { %v4936_v6 = vcombine.high %v483_v2, %v547_v3  ;;  %v1288_v10 = vshrl.u32 %v1287_v1, 7  ;;  %v4938_v11 = vcombine.high %v484_v7, %v548_v8  ;;  %v1332_v28 = vcombine.high %v612_v15, %v612_v15  ;;  %v485_v29 = vld [vmem:[%s5550_s9 + $0x10] sm:$0xff]  ;;  %v486_v34 = vld [vmem:[%s5550_s9 + $0x18] sm:$0xff]  ;;  %v613_v43 = vld [vmem:[%s5543_s20 + $0x10] sm:$0xff]  ;;  %p5063_p13 = scmp.ne.s32.totalorder %s5180_s11, 1 }
  0x6e   : > { %v1286_v13 = vunpack.c.0.s8 %v1285_v5  ;;  %v549_v30 = vld [vmem:[%s5550_s9 + $0x210] sm:$0x77]  ;;  %v4935_v32 = vcombine.low %v483_v2, %v547_v3  ;;  %v550_v35 = vld [vmem:[%s5550_s9 + $0x218] sm:$0x77]  ;;  %v4937_v38 = vcombine.low %v484_v7, %v548_v8  ;;  %v487_v44 = vld [vmem:[%s5550_s9 + $0x20] sm:$0xff]  ;;  %v1381_v58 = vcombine.high %v613_v43, %v613_v43 }
  0x6f   : > { %2227 = vmatprep.mubr.bf16.mxu0 %v4936_v6  ;;  %2268 = vmatprep.mubr.bf16.mxu1 %v4938_v11  ;;  %v4940_v37 = vcombine.high %v485_v29, %v549_v30  ;;  %v4942_v40 = vcombine.high %v486_v34, %v550_v35  ;;  %v551_v45 = vld [vmem:[%s5550_s9 + $0x220] sm:$0x77]  ;;  %v4939_v47 = vcombine.low %v485_v29, %v549_v30  ;;  %v488_v49 = vld [vmem:[%s5550_s9 + $0x28] sm:$0xff]  ;;  %v489_v59 = vld [vmem:[%s5550_s9 + $0x30] sm:$0xff] }
  0x70   : > { %v5558_v14 = vsub.s32 %v1286_v13, %v1288_v10  ;;  %v552_v50 = vld [vmem:[%s5550_s9 + $0x228] sm:$0x77]  ;;  %v4944_v52 = vcombine.high %v487_v44, %v551_v45  ;;  %v4941_v53 = vcombine.low %v486_v34, %v550_v35  ;;  %v553_v60 = vld [vmem:[%s5550_s9 + $0x230] sm:$0x77]  ;;  %v4943_v62 = vcombine.low %v487_v44, %v551_v45  ;;  %v490_v0 = vld [vmem:[%s5550_s9 + $0x38] sm:$0xff] }
  0x71   : > { %v4946_v55 = vcombine.high %v488_v49, %v552_v50  ;;  %v554_v1 = vld [vmem:[%s5550_s9 + $0x238] sm:$0x77]  ;;  %v4948_v3 = vcombine.high %v489_v59, %v553_v60  ;;  %v4945_v4 = vcombine.low %v488_v49, %v552_v50  ;;  %v491_v10 = vld [vmem:[%s5550_s9 + $0x40] sm:$0xff]  ;;  %v4947_v13 = vcombine.low %v489_v59, %v553_v60 }
  0x72   : > { %v1290_v16 = vrot.slane %v611_v9, %v5558_v14  ;;  %v1297_v17 = vrot.slane %v1283_v12, %v5558_v14  ;;  %v1339_v21 = vrot.slane %v612_v15, %v5558_v14  ;;  %v1346_v36 = vrot.slane %v1332_v28, %v5558_v14  ;;  %v614_v9 = vld [vmem:[%s5543_s20 + $0x18] sm:$0xff]  ;;  %v555_v11 = vld [vmem:[%s5550_s9 + $0x240] sm:$0x77] }
  0x73   : > { %v1388_v51 = vrot.slane %v613_v43, %v5558_v14  ;;  %v1395_v2 = vrot.slane %v1381_v58, %v5558_v14  ;;  %v4950_v6 = vcombine.high %v490_v0, %v554_v1  ;;  %v4951_v29 = vcombine.low %v491_v10, %v555_v11 }
  0x74   : > { %v1298_v18 = vcombine.high %v1290_v16, %v1290_v16  ;;  %v1306_v19 = vrot.slane %v1290_v16, %v5558_v14  ;;  %v1299_v20 = vcombine.high %v1297_v17, %v1297_v17  ;;  %v1347_v27 = vcombine.high %v1339_v21, %v1339_v21  ;;  %v492_v16 = vld [vmem:[%s5550_s9 + $0x48] sm:$0xff] }
  0x75   : > { %v1313_v31 = vrot.slane %v1297_v17, %v5558_v14  ;;  %v1348_v42 = vcombine.high %v1346_v36, %v1346_v36  ;;  %v1355_v46 = vrot.slane %v1339_v21, %v5558_v14  ;;  %v1396_v57 = vcombine.high %v1388_v51, %v1388_v51  ;;  %v556_v17 = vld [vmem:[%s5550_s9 + $0x248] sm:$0x77] }
  0x76   : > { %v1320_v22 = vrot.slane %v1298_v18, %v5558_v14  ;;  %v1327_v23 = vrot.slane %v1299_v20, %v5558_v14  ;;  %v1328_v24 = vcombine.high %v1306_v19, %v1306_v19  ;;  %v1369_v33 = vrot.slane %v1347_v27, %v5558_v14  ;;  %v557_v27 = vld [vmem:[%s5550_s9 + $0x250] sm:$0x77] }
  0x77   : > { %v1329_v39 = vcombine.high %v1313_v31, %v1313_v31  ;;  %v1376_v48 = vrot.slane %v1348_v42, %v5558_v14  ;;  %v1377_v54 = vcombine.high %v1355_v46, %v1355_v46  ;;  %v1362_v61 = vrot.slane %v1346_v36, %v5558_v14  ;;  %v559_v42 = vld [vmem:[%s5550_s9 + $0x260] sm:$0x77] }
  0x78   : > { %2195 = vmatprep.subr.bf16.mxu0 %v1320_v22  ;;  %v1330_v25 = vcombine.high %v1320_v22, %v1320_v22  ;;  %v1331_v26 = vcombine.high %v1327_v23, %v1327_v23  ;;  %v1379_v41 = vcombine.high %v1369_v33, %v1369_v33  ;;  %v1418_v63 = vrot.slane %v1396_v57, %v5558_v14  ;;  %v561_v57 = vld [vmem:[%s5550_s9 + $0x270] sm:$0x77] }
  0x79   : > { %2196 = vmatpush1.bf16.xpose.msra.mxu0 %v1306_v19  ;;  %v1380_v56 = vcombine.high %v1376_v48, %v1376_v48  ;;  %v1378_v5 = vcombine.high %v1362_v61, %v1362_v61  ;;  %v1397_v8 = vcombine.high %v1395_v2, %v1395_v2  ;;  %v1404_v12 = vrot.slane %v1388_v51, %v5558_v14 }
  0x7a   : > { %2236 = vmatprep.subr.bf16.mxu1 %v1330_v25  ;;  %2277 = vmatprep.subr.bf16.mxu0 %v1327_v23  ;;  %v1428_v7 = vcombine.high %v1418_v63, %v1418_v63  ;;  %v1437_v18 = vrot.slane %v614_v9, %v5558_v14  ;;  %v4952_v19 = vcombine.high %v491_v10, %v555_v11 }
  0x7b   : > { %2237 = vmatpush1.bf16.xpose.msra.mxu1 %v1328_v24  ;;  %v1425_v15 = vrot.slane %v1397_v8, %v5558_v14  ;;  %v4949_v20 = vcombine.low %v490_v0, %v554_v1  ;;  %v1426_v21 = vcombine.high %v1404_v12, %v1404_v12  ;;  %v4954_v22 = vcombine.high %v492_v16, %v556_v17  ;;  %v563_v8 = vld [vmem:[%s5550_s9 + $0x280] sm:$0x77] }
  0x7c   : > { %2318 = vmatprep.subr.bf16.mxu1 %v1331_v26  ;;  %v1445_v24 = vcombine.high %v1437_v18, %v1437_v18  ;;  %v1430_v25 = vcombine.high %v614_v9, %v614_v9  ;;  %v493_v26 = vld [vmem:[%s5550_s9 + $0x50] sm:$0xff]  ;;  %v1411_v28 = vrot.slane %v1395_v2, %v5558_v14  ;;  %v4953_v35 = vcombine.low %v492_v16, %v556_v17 }
  0x7d   : > { %v1429_v23 = vcombine.high %v1425_v15, %v1425_v15  ;;  %v4956_v34 = vcombine.high %v493_v26, %v557_v27  ;;  %v1453_v43 = vrot.slane %v1437_v18, %v5558_v14  ;;  %v4955_v44 = vcombine.low %v493_v26, %v557_v27 }
  0x7e   : > { %v1467_v30 = vrot.slane %v1445_v24, %v5558_v14  ;;  %v1427_v36 = vcombine.high %v1411_v28, %v1411_v28  ;;  %v565_v24 = vld [vmem:[%s5550_s9 + $0x290] sm:$0x77] }
  0x7f   : > { %v1475_v51 = vcombine.high %v1453_v43, %v1453_v43 }
  0x80   : > { %2228 = vmatmul.mubr.bf16.vlgmr.msra.gmra.mrb[0].mxu0 %v4935_v32  ;;  %v558_v32 = vld [vmem:[%s5550_s9 + $0x258] sm:$0x77] }
  0x81   : > { %2278 = vmatpush1.bf16.xpose.msra.mxu0 %v1313_v31  ;;  %2309 = vmatprep.mubr.bf16.mxu0 %v4940_v37  ;;  %v494_v31 = vld [vmem:[%s5550_s9 + $0x58] sm:$0xff] }
  0x82   : > { %2269 = vmatmul.mubr.bf16.vlgmr.msra.gmra.mrb[0].mxu1 %v4937_v38  ;;  %2359 = vmatprep.subr.bf16.mxu0 %v1369_v33  ;;  %v1444_v33 = vrot.slane %v1430_v25, %v5558_v14  ;;  %v4958_v37 = vcombine.high %v494_v31, %v558_v32  ;;  %v1477_v38 = vcombine.high %v1467_v30, %v1467_v30 }
  0x83   : > { %2319 = vmatpush1.bf16.xpose.msra.mxu1 %v1329_v39  ;;  %2350 = vmatprep.mubr.bf16.mxu1 %v4942_v40  ;;  %v615_v40 = vld [vmem:[%s5543_s20 + $0x20] sm:$0xff]  ;;  %v4957_v50 = vcombine.low %v494_v31, %v558_v32 }
  0x84   : > { %2400 = vmatprep.subr.bf16.mxu1 %v1379_v41  ;;  %v1446_v39 = vcombine.high %v1444_v33, %v1444_v33  ;;  %v495_v41 = vld [vmem:[%s5550_s9 + $0x60] sm:$0xff]  ;;  %v1460_v58 = vrot.slane %v1444_v33, %v5558_v14 }
  0x85   : > { %v4960_v49 = vcombine.high %v495_v41, %v559_v42  ;;  %v4959_v59 = vcombine.low %v495_v41, %v559_v42 }
  0x86   : > { %v1474_v45 = vrot.slane %v1446_v39, %v5558_v14  ;;  %v1476_v2 = vcombine.high %v1460_v58, %v1460_v58  ;;  %v567_v39 = vld [vmem:[%s5550_s9 + $0x2a0] sm:$0x77] }
  0x88   : > { %2310 = vmatmul.mubr.bf16.vlgmr.msra.gmra.mrb[4].mxu0 %v4939_v47  ;;  %v560_v47 = vld [vmem:[%s5550_s9 + $0x268] sm:$0x77] }
  0x89   : > { %2360 = vmatpush1.bf16.xpose.msra.mxu0 %v1355_v46  ;;  %2391 = vmatprep.mubr.bf16.mxu0 %v4944_v52  ;;  %v496_v46 = vld [vmem:[%s5550_s9 + $0x68] sm:$0xff] }
  0x8a   : > { %2351 = vmatmul.mubr.bf16.vlgmr.msra.gmra.mrb[4].mxu1 %v4941_v53  ;;  %2441 = vmatprep.subr.bf16.mxu0 %v1376_v48  ;;  %v1486_v48 = vrot.slane %v615_v40, %v5558_v14  ;;  %v4962_v52 = vcombine.high %v496_v46, %v560_v47  ;;  %v1478_v53 = vcombine.high %v1474_v45, %v1474_v45 }
  0x8b   : > { %2401 = vmatpush1.bf16.xpose.msra.mxu1 %v1377_v54  ;;  %2432 = vmatprep.mubr.bf16.mxu1 %v4946_v55  ;;  %v1479_v55 = vcombine.high %v615_v40, %v615_v40  ;;  %v4961_v1 = vcombine.low %v496_v46, %v560_v47 }
  0x8c   : > { %2482 = vmatprep.subr.bf16.mxu1 %v1380_v56  ;;  %v1494_v54 = vcombine.high %v1486_v48, %v1486_v48  ;;  %v497_v56 = vld [vmem:[%s5550_s9 + $0x70] sm:$0xff]  ;;  %v1502_v9 = vrot.slane %v1486_v48, %v5558_v14 }
  0x8d   : > { %v4964_v0 = vcombine.high %v497_v56, %v561_v57  ;;  %v4963_v10 = vcombine.low %v497_v56, %v561_v57 }
  0x8e   : > { %v1516_v60 = vrot.slane %v1494_v54, %v5558_v14  ;;  %v1524_v18 = vcombine.high %v1502_v9, %v1502_v9  ;;  %v569_v54 = vld [vmem:[%s5550_s9 + $0x2b0] sm:$0x77] }
  0x90   : > { %2392 = vmatmul.mubr.bf16.vlgmr.msra.gmra.mrb[8].mxu0 %v4943_v62  ;;  %v562_v62 = vld [vmem:[%s5550_s9 + $0x278] sm:$0x77] }
  0x91   : > { %2442 = vmatpush1.bf16.xpose.msra.mxu0 %v1362_v61  ;;  %2473 = vmatprep.mubr.bf16.mxu0 %v4948_v3  ;;  %v498_v61 = vld [vmem:[%s5550_s9 + $0x78] sm:$0xff] }
  0x92   : > { %2433 = vmatmul.mubr.bf16.vlgmr.msra.gmra.mrb[8].mxu1 %v4945_v4  ;;  %2523 = vmatprep.subr.bf16.mxu0 %v1418_v63  ;;  %v1493_v63 = vrot.slane %v1479_v55, %v5558_v14  ;;  %v4966_v3 = vcombine.high %v498_v61, %v562_v62  ;;  %v1526_v4 = vcombine.high %v1516_v60, %v1516_v60 }
  0x93   : > { %2483 = vmatpush1.bf16.xpose.msra.mxu1 %v1378_v5  ;;  %2514 = vmatprep.mubr.bf16.mxu1 %v4950_v6  ;;  %v616_v6 = vld [vmem:[%s5543_s20 + $0x28] sm:$0xff]  ;;  %v4965_v17 = vcombine.low %v498_v61, %v562_v62 }
  0x94   : > { %2564 = vmatprep.subr.bf16.mxu1 %v1428_v7  ;;  %v1495_v5 = vcombine.high %v1493_v63, %v1493_v63  ;;  %v499_v7 = vld [vmem:[%s5550_s9 + $0x80] sm:$0xff]  ;;  %v1509_v25 = vrot.slane %v1493_v63, %v5558_v14 }
  0x95   : > { %v4968_v16 = vcombine.high %v499_v7, %v563_v8  ;;  %v4967_v26 = vcombine.low %v499_v7, %v563_v8 }
  0x96   : > { %v1523_v11 = vrot.slane %v1495_v5, %v5558_v14  ;;  %v1525_v33 = vcombine.high %v1509_v25, %v1509_v25  ;;  %v571_v5 = vld [vmem:[%s5550_s9 + $0x2c0] sm:$0x77] }
  0x98   : > { %2474 = vmatmul.mubr.bf16.vlgmr.msra.gmra.mrb[12].mxu0 %v4947_v13  ;;  %v564_v13 = vld [vmem:[%s5550_s9 + $0x288] sm:$0x77] }
  0x99   : > { %2524 = vmatpush1.bf16.xpose.msra.mxu0 %v1404_v12  ;;  %2555 = vmatprep.mubr.bf16.mxu0 %v4952_v19  ;;  %v500_v12 = vld [vmem:[%s5550_s9 + $0x88] sm:$0xff] }
  0x9a   : > { %2515 = vmatmul.mubr.bf16.vlgmr.msra.gmra.mrb[12].mxu1 %v4949_v20  ;;  %2605 = vmatprep.subr.bf16.mxu0 %v1425_v15  ;;  %v1535_v15 = vrot.slane %v616_v6, %v5558_v14  ;;  %v4970_v19 = vcombine.high %v500_v12, %v564_v13  ;;  %v1527_v20 = vcombine.high %v1523_v11, %v1523_v11 }
  0x9b   : > { %2565 = vmatpush1.bf16.xpose.msra.mxu1 %v1426_v21  ;;  %2596 = vmatprep.mubr.bf16.mxu1 %v4954_v22  ;;  %v1528_v22 = vcombine.high %v616_v6, %v616_v6  ;;  %v4969_v32 = vcombine.low %v500_v12, %v564_v13 }
  0x9c   : > { %2646 = vmatprep.subr.bf16.mxu1 %v1429_v23  ;;  %v1543_v21 = vcombine.high %v1535_v15, %v1535_v15  ;;  %v501_v23 = vld [vmem:[%s5550_s9 + $0x90] sm:$0xff]  ;;  %v1551_v40 = vrot.slane %v1535_v15, %v5558_v14 }
  0x9d   : > { %v4972_v31 = vcombine.high %v501_v23, %v565_v24  ;;  %v4971_v41 = vcombine.low %v501_v23, %v565_v24 }
  0x9e   : > { %v1565_v27 = vrot.slane %v1543_v21, %v5558_v14  ;;  %v1573_v48 = vcombine.high %v1551_v40, %v1551_v40  ;;  %v573_v21 = vld [vmem:[%s5550_s9 + $0x2d0] sm:$0x77] }
  0xa0   : > { %2556 = vmatmul.mubr.bf16.vlgmr.msra.gmra.mrb[16].mxu0 %v4951_v29  ;;  %v566_v29 = vld [vmem:[%s5550_s9 + $0x298] sm:$0x77] }
  0xa1   : > { %2606 = vmatpush1.bf16.xpose.msra.mxu0 %v1411_v28  ;;  %2637 = vmatprep.mubr.bf16.mxu0 %v4956_v34  ;;  %v502_v28 = vld [vmem:[%s5550_s9 + $0x98] sm:$0xff] }
  0xa2   : > { %2597 = vmatmul.mubr.bf16.vlgmr.msra.gmra.mrb[16].mxu1 %v4953_v35  ;;  %2687 = vmatprep.subr.bf16.mxu0 %v1467_v30  ;;  %v1542_v30 = vrot.slane %v1528_v22, %v5558_v14  ;;  %v4974_v34 = vcombine.high %v502_v28, %v566_v29  ;;  %v1575_v35 = vcombine.high %v1565_v27, %v1565_v27 }
  0xa3   : > { %2647 = vmatpush1.bf16.xpose.msra.mxu1 %v1427_v36  ;;  %2678 = vmatprep.mubr.bf16.mxu1 %v4958_v37  ;;  %v617_v37 = vld [vmem:[%s5543_s20 + $0x30] sm:$0xff]  ;;  %v4973_v47 = vcombine.low %v502_v28, %v566_v29 }
  0xa4   : > { %2728 = vmatprep.subr.bf16.mxu1 %v1477_v38  ;;  %v1544_v36 = vcombine.high %v1542_v30, %v1542_v30  ;;  %v503_v38 = vld [vmem:[%s5550_s9 + $0xa0] sm:$0xff]  ;;  %v1558_v55 = vrot.slane %v1542_v30, %v5558_v14 }
  0xa5   : > { %v4976_v46 = vcombine.high %v503_v38, %v567_v39  ;;  %v4975_v56 = vcombine.low %v503_v38, %v567_v39 }
  0xa6   : > { %v1572_v42 = vrot.slane %v1544_v36, %v5558_v14  ;;  %v1574_v63 = vcombine.high %v1558_v55, %v1558_v55  ;;  %v575_v36 = vld [vmem:[%s5550_s9 + $0x2e0] sm:$0x77] }
  0xa8   : > { %2638 = vmatmul.mubr.bf16.vlgmr.msra.gmra.mrb[20].mxu0 %v4955_v44  ;;  %v568_v44 = vld [vmem:[%s5550_s9 + $0x2a8] sm:$0x77] }
  0xa9   : > { %2688 = vmatpush1.bf16.xpose.msra.mxu0 %v1453_v43  ;;  %2719 = vmatprep.mubr.bf16.mxu0 %v4960_v49  ;;  %v504_v43 = vld [vmem:[%s5550_s9 + $0xa8] sm:$0xff] }
  0xaa   : > { %2679 = vmatmul.mubr.bf16.vlgmr.msra.gmra.mrb[20].mxu1 %v4957_v50  ;;  %2769 = vmatprep.subr.bf16.mxu0 %v1474_v45  ;;  %v1584_v45 = vrot.slane %v617_v37, %v5558_v14  ;;  %v4978_v49 = vcombine.high %v504_v43, %v568_v44  ;;  %v1576_v50 = vcombine.high %v1572_v42, %v1572_v42 }
  0xab   : > { %2729 = vmatpush1.bf16.xpose.msra.mxu1 %v1475_v51  ;;  %2760 = vmatprep.mubr.bf16.mxu1 %v4962_v52  ;;  %v1577_v52 = vcombine.high %v617_v37, %v617_v37  ;;  %v4977_v62 = vcombine.low %v504_v43, %v568_v44 }
  0xac   : > { %2810 = vmatprep.subr.bf16.mxu1 %v1478_v53  ;;  %v1592_v51 = vcombine.high %v1584_v45, %v1584_v45  ;;  %v505_v53 = vld [vmem:[%s5550_s9 + $0xb0] sm:$0xff]  ;;  %v1600_v6 = vrot.slane %v1584_v45, %v5558_v14 }
  0xad   : > { %v4980_v61 = vcombine.high %v505_v53, %v569_v54  ;;  %v4979_v7 = vcombine.low %v505_v53, %v569_v54 }
  0xae   : > { %v1614_v57 = vrot.slane %v1592_v51, %v5558_v14  ;;  %v1622_v15 = vcombine.high %v1600_v6, %v1600_v6  ;;  %v577_v51 = vld [vmem:[%s5550_s9 + $0x2f0] sm:$0x77] }
  0xb0   : > { %2720 = vmatmul.mubr.bf16.vlgmr.msra.gmra.mrb[24].mxu0 %v4959_v59  ;;  %v570_v59 = vld [vmem:[%s5550_s9 + $0x2b8] sm:$0x77] }
  0xb1   : > { %2770 = vmatpush1.bf16.xpose.msra.mxu0 %v1460_v58  ;;  %2801 = vmatprep.mubr.bf16.mxu0 %v4964_v0  ;;  %v506_v58 = vld [vmem:[%s5550_s9 + $0xb8] sm:$0xff] }
  0xb2   : > { %2761 = vmatmul.mubr.bf16.vlgmr.msra.gmra.mrb[24].mxu1 %v4961_v1  ;;  %2851 = vmatprep.subr.bf16.mxu0 %v1516_v60  ;;  %v1591_v60 = vrot.slane %v1577_v52, %v5558_v14  ;;  %v4982_v0 = vcombine.high %v506_v58, %v570_v59  ;;  %v1624_v1 = vcombine.high %v1614_v57, %v1614_v57 }
  0xb3   : > { %2811 = vmatpush1.bf16.xpose.msra.mxu1 %v1476_v2  ;;  %2842 = vmatprep.mubr.bf16.mxu1 %v4966_v3  ;;  %v618_v3 = vld [vmem:[%s5543_s20 + $0x38] sm:$0xff]  ;;  %v4981_v13 = vcombine.low %v506_v58, %v570_v59 }
  0xb4   : > { %2892 = vmatprep.subr.bf16.mxu1 %v1526_v4  ;;  %v1593_v2 = vcombine.high %v1591_v60, %v1591_v60  ;;  %v507_v4 = vld [vmem:[%s5550_s9 + $0xc0] sm:$0xff]  ;;  %v1607_v22 = vrot.slane %v1591_v60, %v5558_v14 }
  0xb5   : > { %v4984_v12 = vcombine.high %v507_v4, %v571_v5  ;;  %v4983_v23 = vcombine.low %v507_v4, %v571_v5 }
  0xb6   : > { %v1621_v8 = vrot.slane %v1593_v2, %v5558_v14  ;;  %v1623_v30 = vcombine.high %v1607_v22, %v1607_v22  ;;  %v579_v2 = vld [vmem:[%s5550_s9 + $0x300] sm:$0x77] }
  0xb8   : > { %2802 = vmatmul.mubr.bf16.vlgmr.msra.gmra.mrb[28].mxu0 %v4963_v10  ;;  %v572_v10 = vld [vmem:[%s5550_s9 + $0x2c8] sm:$0x77] }
  0xb9   : > { %2852 = vmatpush1.bf16.xpose.msra.mxu0 %v1502_v9  ;;  %2883 = vmatprep.mubr.bf16.mxu0 %v4968_v16  ;;  %v508_v9 = vld [vmem:[%s5550_s9 + $0xc8] sm:$0xff] }
  0xba   : > { %2843 = vmatmul.mubr.bf16.vlgmr.msra.gmra.mrb[28].mxu1 %v4965_v17  ;;  %2933 = vmatprep.subr.bf16.mxu0 %v1523_v11  ;;  %v1633_v11 = vrot.slane %v618_v3, %v5558_v14  ;;  %v4986_v16 = vcombine.high %v508_v9, %v572_v10  ;;  %v1625_v17 = vcombine.high %v1621_v8, %v1621_v8 }
  0xbb   : > { %2893 = vmatpush1.bf16.xpose.msra.mxu1 %v1524_v18  ;;  %2924 = vmatprep.mubr.bf16.mxu1 %v4970_v19  ;;  %v1626_v19 = vcombine.high %v618_v3, %v618_v3  ;;  %v4985_v29 = vcombine.low %v508_v9, %v572_v10 }
  0xbc   : > { %2974 = vmatprep.subr.bf16.mxu1 %v1527_v20  ;;  %v1641_v18 = vcombine.high %v1633_v11, %v1633_v11  ;;  %v509_v20 = vld [vmem:[%s5550_s9 + $0xd0] sm:$0xff]  ;;  %v1649_v37 = vrot.slane %v1633_v11, %v5558_v14 }
  0xbd   : > { %v4988_v28 = vcombine.high %v509_v20, %v573_v21  ;;  %v4987_v38 = vcombine.low %v509_v20, %v573_v21 }
  0xbe   : > { %v1663_v24 = vrot.slane %v1641_v18, %v5558_v14  ;;  %v1671_v45 = vcombine.high %v1649_v37, %v1649_v37  ;;  %v581_v18 = vld [vmem:[%s5550_s9 + $0x310] sm:$0x77] }
  0xc0   : > { %2884 = vmatmul.mubr.bf16.vlgmr.msra.gmra.mrb[32].mxu0 %v4967_v26  ;;  %v574_v26 = vld [vmem:[%s5550_s9 + $0x2d8] sm:$0x77] }
  0xc1   : > { %2934 = vmatpush1.bf16.xpose.msra.mxu0 %v1509_v25  ;;  %2965 = vmatprep.mubr.bf16.mxu0 %v4972_v31  ;;  %v510_v25 = vld [vmem:[%s5550_s9 + $0xd8] sm:$0xff] }
  0xc2   : > { %2925 = vmatmul.mubr.bf16.vlgmr.msra.gmra.mrb[32].mxu1 %v4969_v32  ;;  %3015 = vmatprep.subr.bf16.mxu0 %v1565_v27  ;;  %v1640_v27 = vrot.slane %v1626_v19, %v5558_v14  ;;  %v4990_v31 = vcombine.high %v510_v25, %v574_v26  ;;  %v1673_v32 = vcombine.high %v1663_v24, %v1663_v24 }
  0xc3   : > { %2975 = vmatpush1.bf16.xpose.msra.mxu1 %v1525_v33  ;;  %3006 = vmatprep.mubr.bf16.mxu1 %v4974_v34  ;;  %v619_v34 = vld [vmem:[%s5543_s20 + $0x40] sm:$0xff]  ;;  %v4989_v44 = vcombine.low %v510_v25, %v574_v26 }
  0xc4   : > { %3056 = vmatprep.subr.bf16.mxu1 %v1575_v35  ;;  %v1642_v33 = vcombine.high %v1640_v27, %v1640_v27  ;;  %v511_v35 = vld [vmem:[%s5550_s9 + $0xe0] sm:$0xff]  ;;  %v1656_v52 = vrot.slane %v1640_v27, %v5558_v14 }
  0xc5   : > { %v4992_v43 = vcombine.high %v511_v35, %v575_v36  ;;  %v4991_v53 = vcombine.low %v511_v35, %v575_v36 }
  0xc6   : > { %v1670_v39 = vrot.slane %v1642_v33, %v5558_v14  ;;  %v1672_v60 = vcombine.high %v1656_v52, %v1656_v52  ;;  %v583_v33 = vld [vmem:[%s5550_s9 + $0x320] sm:$0x77] }
  0xc8   : > { %2966 = vmatmul.mubr.bf16.vlgmr.msra.gmra.mrb[36].mxu0 %v4971_v41  ;;  %v576_v41 = vld [vmem:[%s5550_s9 + $0x2e8] sm:$0x77] }
  0xc9   : > { %3016 = vmatpush1.bf16.xpose.msra.mxu0 %v1551_v40  ;;  %3047 = vmatprep.mubr.bf16.mxu0 %v4976_v46  ;;  %v512_v40 = vld [vmem:[%s5550_s9 + $0xe8] sm:$0xff] }
  0xca   : > { %3007 = vmatmul.mubr.bf16.vlgmr.msra.gmra.mrb[36].mxu1 %v4973_v47  ;;  %3097 = vmatprep.subr.bf16.mxu0 %v1572_v42  ;;  %v1682_v42 = vrot.slane %v619_v34, %v5558_v14  ;;  %v4994_v46 = vcombine.high %v512_v40, %v576_v41  ;;  %v1674_v47 = vcombine.high %v1670_v39, %v1670_v39 }
  0xcb   : > { %3057 = vmatpush1.bf16.xpose.msra.mxu1 %v1573_v48  ;;  %3088 = vmatprep.mubr.bf16.mxu1 %v4978_v49  ;;  %v1675_v49 = vcombine.high %v619_v34, %v619_v34  ;;  %v4993_v59 = vcombine.low %v512_v40, %v576_v41 }
  0xcc   : > { %3138 = vmatprep.subr.bf16.mxu1 %v1576_v50  ;;  %v1690_v48 = vcombine.high %v1682_v42, %v1682_v42  ;;  %v513_v50 = vld [vmem:[%s5550_s9 + $0xf0] sm:$0xff]  ;;  %v1698_v3 = vrot.slane %v1682_v42, %v5558_v14 }
  0xcd   : > { %v4996_v58 = vcombine.high %v513_v50, %v577_v51  ;;  %v4995_v4 = vcombine.low %v513_v50, %v577_v51 }
  0xce   : > { %v1712_v54 = vrot.slane %v1690_v48, %v5558_v14  ;;  %v1720_v11 = vcombine.high %v1698_v3, %v1698_v3  ;;  %v585_v48 = vld [vmem:[%s5550_s9 + $0x330] sm:$0x77] }
  0xd0   : > { %3048 = vmatmul.mubr.bf16.vlgmr.msra.gmra.mrb[40].mxu0 %v4975_v56  ;;  %v578_v56 = vld [vmem:[%s5550_s9 + $0x2f8] sm:$0x77] }
  0xd1   : > { %3098 = vmatpush1.bf16.xpose.msra.mxu0 %v1558_v55  ;;  %3129 = vmatprep.mubr.bf16.mxu0 %v4980_v61  ;;  %v514_v55 = vld [vmem:[%s5550_s9 + $0xf8] sm:$0xff] }
  0xd2   : > { %3089 = vmatmul.mubr.bf16.vlgmr.msra.gmra.mrb[40].mxu1 %v4977_v62  ;;  %3179 = vmatprep.subr.bf16.mxu0 %v1614_v57  ;;  %v1689_v57 = vrot.slane %v1675_v49, %v5558_v14  ;;  %v4998_v61 = vcombine.high %v514_v55, %v578_v56  ;;  %v1722_v62 = vcombine.high %v1712_v54, %v1712_v54 }
  0xd3   : > { %3139 = vmatpush1.bf16.xpose.msra.mxu1 %v1574_v63  ;;  %3170 = vmatprep.mubr.bf16.mxu1 %v4982_v0  ;;  %v620_v0 = vld [vmem:[%s5543_s20 + $0x48] sm:$0xff]  ;;  %v4997_v10 = vcombine.low %v514_v55, %v578_v56 }
  0xd4   : > { %3220 = vmatprep.subr.bf16.mxu1 %v1624_v1  ;;  %v1691_v63 = vcombine.high %v1689_v57, %v1689_v57  ;;  %v515_v1 = vld [vmem:[%s5550_s9 + $0x100] sm:$0xff]  ;;  %v1705_v19 = vrot.slane %v1689_v57, %v5558_v14 }
  0xd5   : > { %v5000_v9 = vcombine.high %v515_v1, %v579_v2  ;;  %v4999_v20 = vcombine.low %v515_v1, %v579_v2 }
  0xd6   : > { %v1719_v5 = vrot.slane %v1691_v63, %v5558_v14  ;;  %v1721_v27 = vcombine.high %v1705_v19, %v1705_v19  ;;  %v587_v63 = vld [vmem:[%s5550_s9 + $0x340] sm:$0x77] }
  0xd8   : > { %3130 = vmatmul.mubr.bf16.vlgmr.msra.gmra.mrb[44].mxu0 %v4979_v7  ;;  %v580_v7 = vld [vmem:[%s5550_s9 + $0x308] sm:$0x77] }
  0xd9   : > { %3180 = vmatpush1.bf16.xpose.msra.mxu0 %v1600_v6  ;;  %3211 = vmatprep.mubr.bf16.mxu0 %v4984_v12  ;;  %v516_v6 = vld [vmem:[%s5550_s9 + $0x108] sm:$0xff] }
  0xda   : > { %3171 = vmatmul.mubr.bf16.vlgmr.msra.gmra.mrb[44].mxu1 %v4981_v13  ;;  %3261 = vmatprep.subr.bf16.mxu0 %v1621_v8  ;;  %v1731_v8 = vrot.slane %v620_v0, %v5558_v14  ;;  %v5002_v12 = vcombine.high %v516_v6, %v580_v7  ;;  %v1723_v13 = vcombine.high %v1719_v5, %v1719_v5 }
  0xdb   : > { %3221 = vmatpush1.bf16.xpose.msra.mxu1 %v1622_v15  ;;  %3252 = vmatprep.mubr.bf16.mxu1 %v4986_v16  ;;  %v1724_v16 = vcombine.high %v620_v0, %v620_v0  ;;  %v5001_v26 = vcombine.low %v516_v6, %v580_v7 }
  0xdc   : > { %3302 = vmatprep.subr.bf16.mxu1 %v1625_v17  ;;  %v1739_v15 = vcombine.high %v1731_v8, %v1731_v8  ;;  %v517_v17 = vld [vmem:[%s5550_s9 + $0x110] sm:$0xff]  ;;  %v1747_v34 = vrot.slane %v1731_v8, %v5558_v14 }
  0xdd   : > { %v5004_v25 = vcombine.high %v517_v17, %v581_v18  ;;  %v5003_v35 = vcombine.low %v517_v17, %v581_v18 }
  0xde   : > { %v1761_v21 = vrot.slane %v1739_v15, %v5558_v14  ;;  %v1769_v42 = vcombine.high %v1747_v34, %v1747_v34  ;;  %v589_v15 = vld [vmem:[%s5550_s9 + $0x350] sm:$0x77] }
  0xe0   : > { %3212 = vmatmul.mubr.bf16.vlgmr.msra.gmra.mrb[48].mxu0 %v4983_v23  ;;  %v582_v23 = vld [vmem:[%s5550_s9 + $0x318] sm:$0x77] }
  0xe1   : > { %3262 = vmatpush1.bf16.xpose.msra.mxu0 %v1607_v22  ;;  %3293 = vmatprep.mubr.bf16.mxu0 %v4988_v28  ;;  %v518_v22 = vld [vmem:[%s5550_s9 + $0x118] sm:$0xff] }
  0xe2   : > { %3253 = vmatmul.mubr.bf16.vlgmr.msra.gmra.mrb[48].mxu1 %v4985_v29  ;;  %3343 = vmatprep.subr.bf16.mxu0 %v1663_v24  ;;  %v1738_v24 = vrot.slane %v1724_v16, %v5558_v14  ;;  %v5006_v28 = vcombine.high %v518_v22, %v582_v23  ;;  %v1771_v29 = vcombine.high %v1761_v21, %v1761_v21 }
  0xe3   : > { %3303 = vmatpush1.bf16.xpose.msra.mxu1 %v1623_v30  ;;  %3334 = vmatprep.mubr.bf16.mxu1 %v4990_v31  ;;  %v621_v31 = vld [vmem:[%s5543_s20 + $0x50] sm:$0xff]  ;;  %v5005_v41 = vcombine.low %v518_v22, %v582_v23 }
  0xe4   : > { %3384 = vmatprep.subr.bf16.mxu1 %v1673_v32  ;;  %v1740_v30 = vcombine.high %v1738_v24, %v1738_v24  ;;  %v519_v32 = vld [vmem:[%s5550_s9 + $0x120] sm:$0xff]  ;;  %v1754_v49 = vrot.slane %v1738_v24, %v5558_v14 }
  0xe5   : > { %v5008_v40 = vcombine.high %v519_v32, %v583_v33  ;;  %v5007_v50 = vcombine.low %v519_v32, %v583_v33 }
  0xe6   : > { %v1768_v36 = vrot.slane %v1740_v30, %v5558_v14  ;;  %v1770_v57 = vcombine.high %v1754_v49, %v1754_v49  ;;  %v591_v30 = vld [vmem:[%s5550_s9 + $0x360] sm:$0x77] }
  0xe8   : > { %3294 = vmatmul.mubr.bf16.vlgmr.msra.gmra.mrb[52].mxu0 %v4987_v38  ;;  %v584_v38 = vld [vmem:[%s5550_s9 + $0x328] sm:$0x77] }
  0xe9   : > { %3344 = vmatpush1.bf16.xpose.msra.mxu0 %v1649_v37  ;;  %3375 = vmatprep.mubr.bf16.mxu0 %v4992_v43  ;;  %v520_v37 = vld [vmem:[%s5550_s9 + $0x128] sm:$0xff] }
  0xea   : > { %3335 = vmatmul.mubr.bf16.vlgmr.msra.gmra.mrb[52].mxu1 %v4989_v44  ;;  %3425 = vmatprep.subr.bf16.mxu0 %v1670_v39  ;;  %v1780_v39 = vrot.slane %v621_v31, %v5558_v14  ;;  %v5010_v43 = vcombine.high %v520_v37, %v584_v38  ;;  %v1772_v44 = vcombine.high %v1768_v36, %v1768_v36 }
  0xeb   : > { %3385 = vmatpush1.bf16.xpose.msra.mxu1 %v1671_v45  ;;  %3416 = vmatprep.mubr.bf16.mxu1 %v4994_v46  ;;  %v1773_v46 = vcombine.high %v621_v31, %v621_v31  ;;  %v5009_v56 = vcombine.low %v520_v37, %v584_v38 }
  0xec   : > { %3466 = vmatprep.subr.bf16.mxu1 %v1674_v47  ;;  %v1788_v45 = vcombine.high %v1780_v39, %v1780_v39  ;;  %v521_v47 = vld [vmem:[%s5550_s9 + $0x130] sm:$0xff]  ;;  %v1796_v0 = vrot.slane %v1780_v39, %v5558_v14 }
  0xed   : > { %v5012_v55 = vcombine.high %v521_v47, %v585_v48  ;;  %v5011_v1 = vcombine.low %v521_v47, %v585_v48 }
  0xee   : > { %v1810_v51 = vrot.slane %v1788_v45, %v5558_v14  ;;  %v1818_v8 = vcombine.high %v1796_v0, %v1796_v0  ;;  %v593_v45 = vld [vmem:[%s5550_s9 + $0x370] sm:$0x77] }
  0xf0   : > { %3376 = vmatmul.mubr.bf16.vlgmr.msra.gmra.mrb[56].mxu0 %v4991_v53  ;;  %v586_v53 = vld [vmem:[%s5550_s9 + $0x338] sm:$0x77] }
  0xf1   : > { %3426 = vmatpush1.bf16.xpose.msra.mxu0 %v1656_v52  ;;  %3457 = vmatprep.mubr.bf16.mxu0 %v4996_v58  ;;  %v522_v52 = vld [vmem:[%s5550_s9 + $0x138] sm:$0xff] }
  0xf2   : > { %3417 = vmatmul.mubr.bf16.vlgmr.msra.gmra.mrb[56].mxu1 %v4993_v59  ;;  %3507 = vmatprep.subr.bf16.mxu0 %v1712_v54  ;;  %v1787_v54 = vrot.slane %v1773_v46, %v5558_v14  ;;  %v5014_v58 = vcombine.high %v522_v52, %v586_v53  ;;  %v1820_v59 = vcombine.high %v1810_v51, %v1810_v51 }
  0xf3   : > { %3467 = vmatpush1.bf16.xpose.msra.mxu1 %v1672_v60  ;;  %3498 = vmatprep.mubr.bf16.mxu1 %v4998_v61  ;;  %v622_v61 = vld [vmem:[%s5543_s20 + $0x58] sm:$0xff]  ;;  %v5013_v7 = vcombine.low %v522_v52, %v586_v53 }
  0xf4   : > { %3548 = vmatprep.subr.bf16.mxu1 %v1722_v62  ;;  %v1789_v60 = vcombine.high %v1787_v54, %v1787_v54  ;;  %v523_v62 = vld [vmem:[%s5550_s9 + $0x140] sm:$0xff]  ;;  %v1803_v16 = vrot.slane %v1787_v54, %v5558_v14 }
  0xf5   : > { %v5016_v6 = vcombine.high %v523_v62, %v587_v63  ;;  %v5015_v17 = vcombine.low %v523_v62, %v587_v63 }
  0xf6   : > { %v1817_v2 = vrot.slane %v1789_v60, %v5558_v14  ;;  %v1819_v24 = vcombine.high %v1803_v16, %v1803_v16  ;;  %v595_v60 = vld [vmem:[%s5550_s9 + $0x380] sm:$0x77] }
  0xf8   : > { %3458 = vmatmul.mubr.bf16.vlgmr.msra.gmra.mrb[60].mxu0 %v4995_v4  ;;  %v588_v4 = vld [vmem:[%s5550_s9 + $0x348] sm:$0x77] }
  0xf9   : > { %3508 = vmatpush1.bf16.xpose.msra.mxu0 %v1698_v3  ;;  %3539 = vmatprep.mubr.bf16.mxu0 %v5000_v9  ;;  %v524_v3 = vld [vmem:[%s5550_s9 + $0x148] sm:$0xff] }
  0xfa   : > { %3499 = vmatmul.mubr.bf16.vlgmr.msra.gmra.mrb[60].mxu1 %v4997_v10  ;;  %3589 = vmatprep.subr.bf16.mxu0 %v1719_v5  ;;  %v1829_v5 = vrot.slane %v622_v61, %v5558_v14  ;;  %v5018_v9 = vcombine.high %v524_v3, %v588_v4  ;;  %v1821_v10 = vcombine.high %v1817_v2, %v1817_v2 }
  0xfb   : > { %3549 = vmatpush1.bf16.xpose.msra.mxu1 %v1720_v11  ;;  %3580 = vmatprep.mubr.bf16.mxu1 %v5002_v12  ;;  %v1822_v12 = vcombine.high %v622_v61, %v622_v61  ;;  %v5017_v23 = vcombine.low %v524_v3, %v588_v4 }
  0xfc   : > { %3630 = vmatprep.subr.bf16.mxu1 %v1723_v13  ;;  %v1837_v11 = vcombine.high %v1829_v5, %v1829_v5  ;;  %v525_v13 = vld [vmem:[%s5550_s9 + $0x150] sm:$0xff]  ;;  %v1845_v31 = vrot.slane %v1829_v5, %v5558_v14 }
  0xfd   : > { %v5020_v22 = vcombine.high %v525_v13, %v589_v15  ;;  %v5019_v32 = vcombine.low %v525_v13, %v589_v15 }
  0xfe   : > { %v1859_v18 = vrot.slane %v1837_v11, %v5558_v14  ;;  %v1867_v39 = vcombine.high %v1845_v31, %v1845_v31  ;;  %v597_v11 = vld [vmem:[%s5550_s9 + $0x390] sm:$0x77] }
 0x100   : > { %3540 = vmatmul.mubr.bf16.vlgmr.msra.gmra.mrb[64].mxu0 %v4999_v20  ;;  %v590_v20 = vld [vmem:[%s5550_s9 + $0x358] sm:$0x77] }
 0x101   : > { %3590 = vmatpush1.bf16.xpose.msra.mxu0 %v1705_v19  ;;  %3621 = vmatprep.mubr.bf16.mxu0 %v5004_v25  ;;  %v526_v19 = vld [vmem:[%s5550_s9 + $0x158] sm:$0xff] }
 0x102   : > { %3581 = vmatmul.mubr.bf16.vlgmr.msra.gmra.mrb[64].mxu1 %v5001_v26  ;;  %3671 = vmatprep.subr.bf16.mxu0 %v1761_v21  ;;  %v1836_v21 = vrot.slane %v1822_v12, %v5558_v14  ;;  %v5022_v25 = vcombine.high %v526_v19, %v590_v20  ;;  %v1869_v26 = vcombine.high %v1859_v18, %v1859_v18 }
 0x103   : > { %3631 = vmatpush1.bf16.xpose.msra.mxu1 %v1721_v27  ;;  %3662 = vmatprep.mubr.bf16.mxu1 %v5006_v28  ;;  %v623_v28 = vld [vmem:[%s5543_s20 + $0x60] sm:$0xff]  ;;  %v5021_v38 = vcombine.low %v526_v19, %v590_v20 }
 0x104   : > { %3712 = vmatprep.subr.bf16.mxu1 %v1771_v29  ;;  %v1838_v27 = vcombine.high %v1836_v21, %v1836_v21  ;;  %v527_v29 = vld [vmem:[%s5550_s9 + $0x160] sm:$0xff]  ;;  %v1852_v46 = vrot.slane %v1836_v21, %v5558_v14 }
 0x105   : > { %v5024_v37 = vcombine.high %v527_v29, %v591_v30  ;;  %v5023_v47 = vcombine.low %v527_v29, %v591_v30 }
 0x106   : > { %v1866_v33 = vrot.slane %v1838_v27, %v5558_v14  ;;  %v1868_v54 = vcombine.high %v1852_v46, %v1852_v46  ;;  %v599_v27 = vld [vmem:[%s5550_s9 + $0x3a0] sm:$0x77] }
 0x108   : > { %3622 = vmatmul.mubr.bf16.vlgmr.msra.gmra.mrb[68].mxu0 %v5003_v35  ;;  %v592_v35 = vld [vmem:[%s5550_s9 + $0x368] sm:$0x77] }
 0x109   : > { %3672 = vmatpush1.bf16.xpose.msra.mxu0 %v1747_v34  ;;  %3703 = vmatprep.mubr.bf16.mxu0 %v5008_v40  ;;  %v528_v34 = vld [vmem:[%s5550_s9 + $0x168] sm:$0xff] }
 0x10a   : > { %3663 = vmatmul.mubr.bf16.vlgmr.msra.gmra.mrb[68].mxu1 %v5005_v41  ;;  %3753 = vmatprep.subr.bf16.mxu0 %v1768_v36  ;;  %v1878_v36 = vrot.slane %v623_v28, %v5558_v14  ;;  %v5026_v40 = vcombine.high %v528_v34, %v592_v35  ;;  %v1870_v41 = vcombine.high %v1866_v33, %v1866_v33 }
 0x10b   : > { %3713 = vmatpush1.bf16.xpose.msra.mxu1 %v1769_v42  ;;  %3744 = vmatprep.mubr.bf16.mxu1 %v5010_v43  ;;  %v1871_v43 = vcombine.high %v623_v28, %v623_v28  ;;  %v5025_v53 = vcombine.low %v528_v34, %v592_v35 }
 0x10c   : > { %3794 = vmatprep.subr.bf16.mxu1 %v1772_v44  ;;  %v1886_v42 = vcombine.high %v1878_v36, %v1878_v36  ;;  %v529_v44 = vld [vmem:[%s5550_s9 + $0x170] sm:$0xff]  ;;  %v1894_v61 = vrot.slane %v1878_v36, %v5558_v14 }
 0x10d   : > { %v5028_v52 = vcombine.high %v529_v44, %v593_v45  ;;  %v5027_v62 = vcombine.low %v529_v44, %v593_v45 }
 0x10e   : > { %v1908_v48 = vrot.slane %v1886_v42, %v5558_v14  ;;  %v1916_v5 = vcombine.high %v1894_v61, %v1894_v61  ;;  %v601_v42 = vld [vmem:[%s5550_s9 + $0x3b0] sm:$0x77] }
 0x110   : > { %3704 = vmatmul.mubr.bf16.vlgmr.msra.gmra.mrb[72].mxu0 %v5007_v50  ;;  %v594_v50 = vld [vmem:[%s5550_s9 + $0x378] sm:$0x77] }
 0x111   : > { %3754 = vmatpush1.bf16.xpose.msra.mxu0 %v1754_v49  ;;  %3785 = vmatprep.mubr.bf16.mxu0 %v5012_v55  ;;  %v530_v49 = vld [vmem:[%s5550_s9 + $0x178] sm:$0xff] }
 0x112   : > { %3745 = vmatmul.mubr.bf16.vlgmr.msra.gmra.mrb[72].mxu1 %v5009_v56  ;;  %3835 = vmatprep.subr.bf16.mxu0 %v1810_v51  ;;  %v1885_v51 = vrot.slane %v1871_v43, %v5558_v14  ;;  %v5030_v55 = vcombine.high %v530_v49, %v594_v50  ;;  %v1918_v56 = vcombine.high %v1908_v48, %v1908_v48 }
 0x113   : > { %3795 = vmatpush1.bf16.xpose.msra.mxu1 %v1770_v57  ;;  %3826 = vmatprep.mubr.bf16.mxu1 %v5014_v58  ;;  %v624_v58 = vld [vmem:[%s5543_s20 + $0x68] sm:$0xff]  ;;  %v5029_v4 = vcombine.low %v530_v49, %v594_v50 }
 0x114   : > { %3876 = vmatprep.subr.bf16.mxu1 %v1820_v59  ;;  %v1887_v57 = vcombine.high %v1885_v51, %v1885_v51  ;;  %v531_v59 = vld [vmem:[%s5550_s9 + $0x180] sm:$0xff]  ;;  %v1901_v12 = vrot.slane %v1885_v51, %v5558_v14 }
 0x115   : > { %v5032_v3 = vcombine.high %v531_v59, %v595_v60  ;;  %v5031_v13 = vcombine.low %v531_v59, %v595_v60 }
 0x116   : > { %v1915_v63 = vrot.slane %v1887_v57, %v5558_v14  ;;  %v1917_v21 = vcombine.high %v1901_v12, %v1901_v12  ;;  %v603_v57 = vld [vmem:[%s5550_s9 + $0x3c0] sm:$0x77] }
 0x118   : > { %3786 = vmatmul.mubr.bf16.vlgmr.msra.gmra.mrb[76].mxu0 %v5011_v1  ;;  %v596_v1 = vld [vmem:[%s5550_s9 + $0x388] sm:$0x77] }
 0x119   : > { %3836 = vmatpush1.bf16.xpose.msra.mxu0 %v1796_v0  ;;  %3867 = vmatprep.mubr.bf16.mxu0 %v5016_v6  ;;  %v532_v0 = vld [vmem:[%s5550_s9 + $0x188] sm:$0xff] }
 0x11a   : > { %3827 = vmatmul.mubr.bf16.vlgmr.msra.gmra.mrb[76].mxu1 %v5013_v7  ;;  %3917 = vmatprep.subr.bf16.mxu0 %v1817_v2  ;;  %v1927_v2 = vrot.slane %v624_v58, %v5558_v14  ;;  %v5034_v6 = vcombine.high %v532_v0, %v596_v1  ;;  %v1919_v7 = vcombine.high %v1915_v63, %v1915_v63 }
 0x11b   : > { %3877 = vmatpush1.bf16.xpose.msra.mxu1 %v1818_v8  ;;  %3908 = vmatprep.mubr.bf16.mxu1 %v5018_v9  ;;  %v1920_v9 = vcombine.high %v624_v58, %v624_v58  ;;  %v5033_v20 = vcombine.low %v532_v0, %v596_v1  ;;  %v604_v0 = vld [vmem:[%s5550_s9 + $0x3c8] sm:$0x77] }
 0x11c   : > { %3958 = vmatprep.subr.bf16.mxu1 %v1821_v10  ;;  %v1935_v8 = vcombine.high %v1927_v2, %v1927_v2  ;;  %v533_v10 = vld [vmem:[%s5550_s9 + $0x190] sm:$0xff]  ;;  %v1943_v28 = vrot.slane %v1927_v2, %v5558_v14 }
 0x11d   : > { %v5036_v19 = vcombine.high %v533_v10, %v597_v11  ;;  %v5035_v29 = vcombine.low %v533_v10, %v597_v11 }
 0x11e   : > { %v1957_v15 = vrot.slane %v1935_v8, %v5558_v14  ;;  %v1965_v36 = vcombine.high %v1943_v28, %v1943_v28 }
 0x120   : > { %3868 = vmatmul.mubr.bf16.vlgmr.msra.gmra.mrb[80].mxu0 %v5015_v17  ;;  %v598_v17 = vld [vmem:[%s5550_s9 + $0x398] sm:$0x77] }
 0x121   : > { %3918 = vmatpush1.bf16.xpose.msra.mxu0 %v1803_v16  ;;  %3949 = vmatprep.mubr.bf16.mxu0 %v5020_v22  ;;  %v534_v16 = vld [vmem:[%s5550_s9 + $0x198] sm:$0xff] }
 0x122   : > { %3909 = vmatmul.mubr.bf16.vlgmr.msra.gmra.mrb[80].mxu1 %v5017_v23  ;;  %3999 = vmatprep.subr.bf16.mxu0 %v1859_v18  ;;  %v1934_v18 = vrot.slane %v1920_v9, %v5558_v14  ;;  %v5038_v22 = vcombine.high %v534_v16, %v598_v17  ;;  %v1967_v23 = vcombine.high %v1957_v15, %v1957_v15 }
 0x123   : > { %3959 = vmatpush1.bf16.xpose.msra.mxu1 %v1819_v24  ;;  %3990 = vmatprep.mubr.bf16.mxu1 %v5022_v25  ;;  %v625_v25 = vld [vmem:[%s5543_s20 + $0x70] sm:$0xff]  ;;  %v5037_v35 = vcombine.low %v534_v16, %v598_v17 }
 0x124   : > { %4040 = vmatprep.subr.bf16.mxu1 %v1869_v26  ;;  %v1936_v24 = vcombine.high %v1934_v18, %v1934_v18  ;;  %v535_v26 = vld [vmem:[%s5550_s9 + $0x1a0] sm:$0xff]  ;;  %v1950_v43 = vrot.slane %v1934_v18, %v5558_v14  ;;  %v541_v18 = vld [vmem:[%s5550_s9 + $0x1d0] sm:$0xff] }
 0x125   : > { %v5040_v34 = vcombine.high %v535_v26, %v599_v27  ;;  %v5039_v44 = vcombine.low %v535_v26, %v599_v27  ;;  %v542_v26 = vld [vmem:[%s5550_s9 + $0x1d8] sm:$0xff] }
 0x126   : > { %v1964_v30 = vrot.slane %v1936_v24, %v5558_v14  ;;  %v1966_v51 = vcombine.high %v1950_v43, %v1950_v43  ;;  %v606_v27 = vld [vmem:[%s5550_s9 + $0x3d8] sm:$0x77] }
 0x128   : > { %3950 = vmatmul.mubr.bf16.vlgmr.msra.gmra.mrb[84].mxu0 %v5019_v32  ;;  %v600_v32 = vld [vmem:[%s5550_s9 + $0x3a8] sm:$0x77] }
 0x129   : > { %4000 = vmatpush1.bf16.xpose.msra.mxu0 %v1845_v31  ;;  %4031 = vmatprep.mubr.bf16.mxu0 %v5024_v37  ;;  %v536_v31 = vld [vmem:[%s5550_s9 + $0x1a8] sm:$0xff] }
 0x12a   : > { %3991 = vmatmul.mubr.bf16.vlgmr.msra.gmra.mrb[84].mxu1 %v5021_v38  ;;  %4081 = vmatprep.subr.bf16.mxu0 %v1866_v33  ;;  %v1976_v33 = vrot.slane %v625_v25, %v5558_v14  ;;  %v5042_v37 = vcombine.high %v536_v31, %v600_v32  ;;  %v1968_v38 = vcombine.high %v1964_v30, %v1964_v30 }
 0x12b   : > { %4041 = vmatpush1.bf16.xpose.msra.mxu1 %v1867_v39  ;;  %4072 = vmatprep.mubr.bf16.mxu1 %v5026_v40  ;;  %v1969_v40 = vcombine.high %v625_v25, %v625_v25  ;;  %v5041_v50 = vcombine.low %v536_v31, %v600_v32 }
 0x12c   : > { %4122 = vmatprep.subr.bf16.mxu1 %v1870_v41  ;;  %v1984_v39 = vcombine.high %v1976_v33, %v1976_v33  ;;  %v537_v41 = vld [vmem:[%s5550_s9 + $0x1b0] sm:$0xff]  ;;  %v1992_v59 = vrot.slane %v1976_v33, %v5558_v14 }
 0x12d   : > { %v5044_v49 = vcombine.high %v537_v41, %v601_v42 }
 0x12e   : > { %v2006_v45 = vrot.slane %v1984_v39, %v5558_v14  ;;  %v2014_v10 = vcombine.high %v1992_v59, %v1992_v59  ;;  %v5054_v39 = vcombine.high %v542_v26, %v606_v27 }
 0x130   : > { %4032 = vmatmul.mubr.bf16.vlgmr.msra.gmra.mrb[88].mxu0 %v5023_v47  ;;  %v602_v47 = vld [vmem:[%s5550_s9 + $0x3b8] sm:$0x77] }
 0x131   : > { %4082 = vmatpush1.bf16.xpose.msra.mxu0 %v1852_v46  ;;  %4113 = vmatprep.mubr.bf16.mxu0 %v5028_v52  ;;  %v538_v46 = vld [vmem:[%s5550_s9 + $0x1b8] sm:$0xff] }
 0x132   : > { %4073 = vmatmul.mubr.bf16.vlgmr.msra.gmra.mrb[88].mxu1 %v5025_v53  ;;  %4163 = vmatprep.subr.bf16.mxu0 %v1908_v48  ;;  %v1983_v48 = vrot.slane %v1969_v40, %v5558_v14  ;;  %v5046_v52 = vcombine.high %v538_v46, %v602_v47  ;;  %v2016_v53 = vcombine.high %v2006_v45, %v2006_v45 }
 0x133   : > { %4123 = vmatpush1.bf16.xpose.msra.mxu1 %v1868_v54  ;;  %4154 = vmatprep.mubr.bf16.mxu1 %v5030_v55  ;;  %v626_v55 = vld [vmem:[%s5543_s20 + $0x78] sm:$0xff]  ;;  %v5045_v8 = vcombine.low %v538_v46, %v602_v47 }
 0x134   : > { %4204 = vmatprep.subr.bf16.mxu1 %v1918_v56  ;;  %v1985_v54 = vcombine.high %v1983_v48, %v1983_v48  ;;  %v539_v56 = vld [vmem:[%s5550_s9 + $0x1c0] sm:$0xff]  ;;  %v2025_v1 = vrot.slane %v626_v55, %v5558_v14  ;;  %v2018_v17 = vcombine.high %v626_v55, %v626_v55 }
 0x135   : > { %v5047_v24 = vcombine.low %v539_v56, %v603_v57 }
 0x136   : > { %v2033_v16 = vcombine.high %v2025_v1, %v2025_v1  ;;  %v2041_v47 = vrot.slane %v2025_v1, %v5558_v14 }
 0x138   : > { %4114 = vmatmul.mubr.bf16.vlgmr.msra.gmra.mrb[92].mxu0 %v5027_v62  ;;  %v2013_v62 = vrot.slane %v1985_v54, %v5558_v14  ;;  %v2055_v25 = vrot.slane %v2033_v16, %v5558_v14 }
 0x139   : > { %4164 = vmatpush1.bf16.xpose.msra.mxu0 %v1894_v61  ;;  %4195 = vmatprep.mubr.bf16.mxu0 %v5032_v3  ;;  %v5043_v61 = vcombine.low %v537_v41, %v601_v42 }
 0x13a   : > { %4155 = vmatmul.mubr.bf16.vlgmr.msra.gmra.mrb[92].mxu1 %v5029_v4  ;;  %4245 = vmatprep.subr.bf16.mxu0 %v1915_v63  ;;  %v540_v63 = vld [vmem:[%s5550_s9 + $0x1c8] sm:$0xff]  ;;  %v5048_v4 = vcombine.high %v539_v56, %v603_v57  ;;  %v2065_v42 = vcombine.high %v2055_v25, %v2055_v25 }
 0x13b   : > { %4205 = vmatpush1.bf16.xpose.msra.mxu1 %v1916_v5  ;;  %4236 = vmatprep.mubr.bf16.mxu1 %v5034_v6  ;;  %v5050_v11 = vcombine.high %v540_v63, %v604_v0 }
 0x13c   : > { %4286 = vmatprep.subr.bf16.mxu1 %v1919_v7 }
 0x140   : > { %4196 = vmatmul.mubr.bf16.vlgmr.msra.gmra.mrb[96].mxu0 %v5031_v13 }
 0x141   : > { %4246 = vmatpush1.bf16.xpose.msra.mxu0 %v1901_v12  ;;  %4277 = vmatprep.mubr.bf16.mxu0 %v5036_v19  ;;  %v605_v19 = vld [vmem:[%s5550_s9 + $0x3d0] sm:$0x77] }
 0x142   : > { %4237 = vmatmul.mubr.bf16.vlgmr.msra.gmra.mrb[96].mxu1 %v5033_v20  ;;  %4327 = vmatprep.subr.bf16.mxu0 %v1957_v15  ;;  %v2017_v15 = vcombine.high %v2013_v62, %v2013_v62  ;;  %v5052_v31 = vcombine.high %v541_v18, %v605_v19 }
 0x143   : > { %4287 = vmatpush1.bf16.xpose.msra.mxu1 %v1917_v21  ;;  %4318 = vmatprep.mubr.bf16.mxu1 %v5038_v22  ;;  %v1999_v21 = vrot.slane %v1983_v48, %v5558_v14 }
 0x144   : > { %4368 = vmatprep.subr.bf16.mxu1 %v1967_v23 }
 0x148   : > { %4278 = vmatmul.mubr.bf16.vlgmr.msra.gmra.mrb[100].mxu0 %v5035_v29 }
 0x149   : > { %4328 = vmatpush1.bf16.xpose.msra.mxu0 %v1943_v28  ;;  %4359 = vmatprep.mubr.bf16.mxu0 %v5040_v34  ;;  %v2032_v28 = vrot.slane %v2018_v17, %v5558_v14 }
 0x14a   : > { %4319 = vmatmul.mubr.bf16.vlgmr.msra.gmra.mrb[100].mxu1 %v5037_v35  ;;  %4409 = vmatprep.subr.bf16.mxu0 %v1964_v30 }
 0x14b   : > { %4369 = vmatpush1.bf16.xpose.msra.mxu1 %v1965_v36  ;;  %4400 = vmatprep.mubr.bf16.mxu1 %v5042_v37  ;;  %v5049_v36 = vcombine.low %v540_v63, %v604_v0  ;;  %v2063_v63 = vcombine.high %v2041_v47, %v2041_v47 }
 0x14c   : > { %4450 = vmatprep.subr.bf16.mxu1 %v1968_v38  ;;  %v2015_v38 = vcombine.high %v1999_v21, %v1999_v21 }
 0x150   : > { %4360 = vmatmul.mubr.bf16.vlgmr.msra.gmra.mrb[104].mxu0 %v5039_v44  ;;  %v543_v44 = vld [vmem:[%s5550_s9 + $0x1e0] sm:$0xff] }
 0x151   : > { %4410 = vmatpush1.bf16.xpose.msra.mxu0 %v1950_v43  ;;  %4441 = vmatprep.mubr.bf16.mxu0 %v5044_v49  ;;  %v2034_v43 = vcombine.high %v2032_v28, %v2032_v28 }
 0x152   : > { %4401 = vmatmul.mubr.bf16.vlgmr.msra.gmra.mrb[104].mxu1 %v5041_v50  ;;  %4491 = vmatprep.subr.bf16.mxu0 %v2006_v45  ;;  %v607_v45 = vld [vmem:[%s5550_s9 + $0x3e0] sm:$0x77]  ;;  %v5051_v50 = vcombine.low %v541_v18, %v605_v19 }
 0x153   : > { %v2229_v58 = vpop.f32.mrb[0].mxu0  ;;  %4451 = vmatpush1.bf16.xpose.msra.mxu1 %v1966_v51  ;;  %4482 = vmatprep.mubr.bf16.mxu1 %v5046_v52  ;;  %v2062_v51 = vrot.slane %v2034_v43, %v5558_v14  ;;  %v544_v52 = vld [vmem:[%s5550_s9 + $0x1e8] sm:$0xff]  ;;  %v5056_v56 = vcombine.high %v543_v44, %v607_v45 }
 0x154   : > { %v2231_v60 = vpop.f32.mrb[1].mxu0  ;;  %4532 = vmatprep.subr.bf16.mxu1 %v2016_v53  ;;  %v608_v53 = vld [vmem:[%s5550_s9 + $0x3e8] sm:$0x77] }
 0x155   : > { %v2232_v2 = vpop.f32.mrb[2].mxu0  ;;  %v2270_v3 = vpop.f32.mrb[0].mxu1  ;;  %v5058_v0 = vcombine.high %v544_v52, %v608_v53 }
 0x156   : > { %v2271_v5 = vadd.f32 %v2270_v3, %v2229_v58  ;;  %v2234_v6 = vpop.f32.mrb[3].mxu0  ;;  %v2272_v7 = vpop.f32.mrb[1].mxu1  ;;  %v2066_v3 = vcombine.high %v2062_v51, %v2062_v51 }
 0x157   : > { %v2273_v9 = vpop.f32.mrb[2].mxu1  ;;  %v2048_v7 = vrot.slane %v2032_v28, %v5558_v14 }
 0x158   : > { %v2274_v12 = vadd.f32 %v2273_v9, %v2232_v2  ;;  %v2275_v13 = vpop.f32.mrb[3].mxu1  ;;  %4442 = vmatmul.mubr.bf16.vlgmr.msra.gmra.mrb[108].mxu0 %v5043_v61  ;;  %v5053_v61 = vcombine.low %v542_v26, %v606_v27 }
 0x159   : > { %4492 = vmatpush1.bf16.xpose.msra.mxu0 %v1992_v59  ;;  %4523 = vmatprep.mubr.bf16.mxu0 %v5048_v4  ;;  %v545_v4 = vld [vmem:[%s5550_s9 + $0x1f0] sm:$0xff] }
 0x15a   : > { %4483 = vmatmul.mubr.bf16.vlgmr.msra.gmra.mrb[108].mxu1 %v5045_v8  ;;  %4573 = vmatprep.subr.bf16.mxu0 %v2013_v62 }
 0x15b   : > { %v2311_v20 = vpop.f32.mrb[4].mxu0  ;;  %4533 = vmatpush1.bf16.xpose.msra.mxu1 %v2014_v10  ;;  %4564 = vmatprep.mubr.bf16.mxu1 %v5050_v11  ;;  %v5055_v10 = vcombine.low %v543_v44, %v607_v45  ;;  %v546_v11 = vld [vmem:[%s5550_s9 + $0x1f8] sm:$0xff] }
 0x15c   : > { %v2312_v22 = vadd.f32 %v2311_v20, %v2271_v5  ;;  %v2313_v23 = vpop.f32.mrb[5].mxu0  ;;  %4614 = vmatprep.subr.bf16.mxu1 %v2017_v15  ;;  %v609_v5 = vld [vmem:[%s5550_s9 + $0x3f0] sm:$0x77] }
 0x15d   : > { %v2314_v29 = vpop.f32.mrb[6].mxu0  ;;  %v2352_v30 = vpop.f32.mrb[4].mxu1  ;;  %v5060_v16 = vcombine.high %v545_v4, %v609_v5  ;;  %v2064_v23 = vcombine.high %v2048_v7, %v2048_v7 }
 0x15e   : > { %v2315_v32 = vadd.f32 %v2314_v29, %v2274_v12  ;;  %v2353_v33 = vadd.f32 %v2352_v30, %v2312_v22  ;;  %v2316_v34 = vpop.f32.mrb[7].mxu0  ;;  %v2354_v35 = vpop.f32.mrb[5].mxu1  ;;  %v610_v12 = vld [vmem:[%s5550_s9 + $0x3f8] sm:$0x77]  ;;  %v5059_v29 = vcombine.low %v545_v4, %v609_v5 }
 0x15f   : > { %v2355_v37 = vpop.f32.mrb[6].mxu1 }
 0x160   : > { %v2356_v40 = vadd.f32 %v2355_v37, %v2315_v32  ;;  %v2357_v41 = vpop.f32.mrb[7].mxu1  ;;  %4524 = vmatmul.mubr.bf16.vlgmr.msra.gmra.mrb[112].mxu0 %v5047_v24  ;;  %v5062_v24 = vcombine.high %v546_v11, %v610_v12 }
 0x161   : > { %4574 = vmatpush1.bf16.xpose.msra.mxu0 %v1999_v21  ;;  %4605 = vmatprep.mubr.bf16.mxu0 %v5052_v31  ;;  %v5057_v21 = vcombine.low %v544_v52, %v608_v53 }
 0x162   : > { %4565 = vmatmul.mubr.bf16.vlgmr.msra.gmra.mrb[112].mxu1 %v5049_v36  ;;  %4655 = vmatprep.subr.bf16.mxu0 %v2055_v25  ;;  %v5061_v36 = vcombine.low %v546_v11, %v610_v12 }
 0x163   : > { %v2393_v46 = vpop.f32.mrb[8].mxu0  ;;  %4615 = vmatpush1.bf16.xpose.msra.mxu1 %v2015_v38  ;;  %4646 = vmatprep.mubr.bf16.mxu1 %v5054_v39 }
 0x164   : > { %v2394_v48 = vadd.f32 %v2393_v46, %v2353_v33  ;;  %v2395_v49 = vpop.f32.mrb[9].mxu0  ;;  %4696 = vmatprep.subr.bf16.mxu1 %v2065_v42 }
 0x165   : > { %v2396_v54 = vpop.f32.mrb[10].mxu0  ;;  %v2434_v55 = vpop.f32.mrb[8].mxu1 }
 0x166   : > { %v2397_v57 = vadd.f32 %v2396_v54, %v2356_v40  ;;  %v2435_v58 = vadd.f32 %v2434_v55, %v2394_v48  ;;  %v2398_v59 = vpop.f32.mrb[11].mxu0  ;;  %v2436_v60 = vpop.f32.mrb[9].mxu1 }
 0x167   : > { %v2437_v62 = vpop.f32.mrb[10].mxu1 }
 0x168   : > { %v2438_v1 = vadd.f32 %v2437_v62, %v2397_v57  ;;  %v2439_v2 = vpop.f32.mrb[11].mxu1  ;;  %4606 = vmatmul.mubr.bf16.vlgmr.msra.gmra.mrb[116].mxu0 %v5051_v50 }
 0x169   : > { %4656 = vmatpush1.bf16.xpose.msra.mxu0 %v2041_v47  ;;  %4687 = vmatprep.mubr.bf16.mxu0 %v5056_v56 }
 0x16a   : > { %4647 = vmatmul.mubr.bf16.vlgmr.msra.gmra.mrb[116].mxu1 %v5053_v61  ;;  %4737 = vmatprep.subr.bf16.mxu0 %v2062_v51 }
 0x16b   : > { %v2475_v6 = vpop.f32.mrb[12].mxu0  ;;  %4697 = vmatpush1.bf16.xpose.msra.mxu1 %v2063_v63  ;;  %4728 = vmatprep.mubr.bf16.mxu1 %v5058_v0 }
 0x16c   : > { %v2476_v8 = vadd.f32 %v2475_v6, %v2435_v58  ;;  %v2477_v9 = vpop.f32.mrb[13].mxu0  ;;  %4778 = vmatprep.subr.bf16.mxu1 %v2066_v3 }
 0x16d   : > { %v2478_v13 = vpop.f32.mrb[14].mxu0  ;;  %v2516_v15 = vpop.f32.mrb[12].mxu1 }
 0x16e   : > { %v2479_v17 = vadd.f32 %v2478_v13, %v2438_v1  ;;  %v2517_v18 = vadd.f32 %v2516_v15, %v2476_v8  ;;  %v2480_v19 = vpop.f32.mrb[15].mxu0  ;;  %v2518_v20 = vpop.f32.mrb[13].mxu1 }
 0x16f   : > { %v2519_v22 = vpop.f32.mrb[14].mxu1 }
 0x170   : > { %v2520_v25 = vadd.f32 %v2519_v22, %v2479_v17  ;;  %v2521_v26 = vpop.f32.mrb[15].mxu1  ;;  %4688 = vmatmul.mubr.bf16.vlgmr.msra.gmra.mrb[120].mxu0 %v5055_v10 }
 0x171   : > { %4738 = vmatpush1.bf16.xpose.msra.mxu0 %v2048_v7  ;;  %4769 = vmatprep.mubr.bf16.mxu0 %v5060_v16 }
 0x172   : > { %4729 = vmatmul.mubr.bf16.vlgmr.msra.gmra.mrb[120].mxu1 %v5057_v21 }
 0x173   : > { %v2557_v14 = vpop.f32.mrb[16].mxu0  ;;  %4779 = vmatpush1.bf16.xpose.msra.mxu1 %v2064_v23  ;;  %4810 = vmatprep.mubr.bf16.mxu1 %v5062_v24 }
 0x174   : > { %v2558_v27 = vadd.f32 %v2557_v14, %v2517_v18  ;;  %v2559_v28 = vpop.f32.mrb[17].mxu0 }
 0x175   : > { %v2560_v30 = vpop.f32.mrb[18].mxu0  ;;  %v2598_v31 = vpop.f32.mrb[16].mxu1 }
 0x176   : > { %v2561_v32 = vadd.f32 %v2560_v30, %v2520_v25  ;;  %v2599_v33 = vadd.f32 %v2598_v31, %v2558_v27  ;;  %v2562_v34 = vpop.f32.mrb[19].mxu0  ;;  %v2600_v35 = vpop.f32.mrb[17].mxu1 }
 0x177   : > { %v2601_v37 = vpop.f32.mrb[18].mxu1 }
 0x178   : > { %v2602_v38 = vadd.f32 %v2601_v37, %v2561_v32  ;;  %v2603_v39 = vpop.f32.mrb[19].mxu1  ;;  %4770 = vmatmul.mubr.bf16.vlgmr.msra.gmra.mrb[124].mxu0 %v5059_v29 }
 0x17a   : > { %4811 = vmatmul.mubr.bf16.vlgmr.msra.gmra.mrb[124].mxu1 %v5061_v36 }
 0x17b   : > { %v2639_v40 = vpop.f32.mrb[20].mxu0 }
 0x17c   : > { %v2640_v41 = vadd.f32 %v2639_v40, %v2599_v33  ;;  %v2641_v42 = vpop.f32.mrb[21].mxu0 }
 0x17d   : > { %v2642_v43 = vpop.f32.mrb[22].mxu0  ;;  %v2680_v44 = vpop.f32.mrb[20].mxu1 }
 0x17e   : > { %v2643_v45 = vadd.f32 %v2642_v43, %v2602_v38  ;;  %v2681_v46 = vadd.f32 %v2680_v44, %v2640_v41  ;;  %v2644_v47 = vpop.f32.mrb[23].mxu0  ;;  %v2682_v48 = vpop.f32.mrb[21].mxu1 }
 0x17f   : > { %v2683_v49 = vpop.f32.mrb[22].mxu1 }
 0x180   : > { %v2684_v50 = vadd.f32 %v2683_v49, %v2643_v45  ;;  %v2685_v51 = vpop.f32.mrb[23].mxu1 }
 0x183   : > { %v2721_v52 = vpop.f32.mrb[24].mxu0 }
 0x184   : > { %v2722_v53 = vadd.f32 %v2721_v52, %v2681_v46  ;;  %v2723_v54 = vpop.f32.mrb[25].mxu0 }
 0x185   : > { %v2724_v55 = vpop.f32.mrb[26].mxu0  ;;  %v2762_v56 = vpop.f32.mrb[24].mxu1 }
 0x186   : > { %v2725_v57 = vadd.f32 %v2724_v55, %v2684_v50  ;;  %v2763_v58 = vadd.f32 %v2762_v56, %v2722_v53  ;;  %v2726_v59 = vpop.f32.mrb[27].mxu0  ;;  %v2764_v60 = vpop.f32.mrb[25].mxu1 }
 0x187   : > { %v2765_v61 = vpop.f32.mrb[26].mxu1 }
 0x188   : > { %v2766_v62 = vadd.f32 %v2765_v61, %v2725_v57  ;;  %v2767_v63 = vpop.f32.mrb[27].mxu1 }
 0x18b   : > { %v2803_v0 = vpop.f32.mrb[28].mxu0 }
 0x18c   : > { %v2804_v1 = vadd.f32 %v2803_v0, %v2763_v58  ;;  %v2805_v2 = vpop.f32.mrb[29].mxu0 }
 0x18d   : > { %v2806_v3 = vpop.f32.mrb[30].mxu0  ;;  %v2844_v4 = vpop.f32.mrb[28].mxu1 }
 0x18e   : > { %v2807_v5 = vadd.f32 %v2806_v3, %v2766_v62  ;;  %v2845_v6 = vadd.f32 %v2844_v4, %v2804_v1  ;;  %v2808_v7 = vpop.f32.mrb[31].mxu0  ;;  %v2846_v8 = vpop.f32.mrb[29].mxu1 }
 0x18f   : > { %v2847_v9 = vpop.f32.mrb[30].mxu1 }
 0x190   : > { %v2848_v10 = vadd.f32 %v2847_v9, %v2807_v5  ;;  %v2849_v11 = vpop.f32.mrb[31].mxu1 }
 0x193   : > { %v2885_v12 = vpop.f32.mrb[32].mxu0 }
 0x194   : > { %v2886_v13 = vadd.f32 %v2885_v12, %v2845_v6  ;;  %v2887_v15 = vpop.f32.mrb[33].mxu0 }
 0x195   : > { %v2888_v16 = vpop.f32.mrb[34].mxu0  ;;  %v2926_v17 = vpop.f32.mrb[32].mxu1 }
 0x196   : > { %v2889_v18 = vadd.f32 %v2888_v16, %v2848_v10  ;;  %v2927_v19 = vadd.f32 %v2926_v17, %v2886_v13  ;;  %v2890_v20 = vpop.f32.mrb[35].mxu0  ;;  %v2928_v21 = vpop.f32.mrb[33].mxu1 }
 0x197   : > { %v2929_v22 = vpop.f32.mrb[34].mxu1 }
 0x198   : > { %v2930_v23 = vadd.f32 %v2929_v22, %v2889_v18  ;;  %v2931_v24 = vpop.f32.mrb[35].mxu1 }
 0x19b   : > { %v2967_v25 = vpop.f32.mrb[36].mxu0 }
 0x19c   : > { %v2968_v26 = vadd.f32 %v2967_v25, %v2927_v19  ;;  %v2969_v14 = vpop.f32.mrb[37].mxu0 }
 0x19d   : > { %v2970_v27 = vpop.f32.mrb[38].mxu0  ;;  %v3008_v28 = vpop.f32.mrb[36].mxu1 }
 0x19e   : > { %v2971_v29 = vadd.f32 %v2970_v27, %v2930_v23  ;;  %v3009_v30 = vadd.f32 %v3008_v28, %v2968_v26  ;;  %v2972_v31 = vpop.f32.mrb[39].mxu0  ;;  %v3010_v32 = vpop.f32.mrb[37].mxu1 }
 0x19f   : > { %v3011_v33 = vpop.f32.mrb[38].mxu1 }
 0x1a0   : > { %v3012_v34 = vadd.f32 %v3011_v33, %v2971_v29  ;;  %v3013_v35 = vpop.f32.mrb[39].mxu1 }
 0x1a3   : > { %v3049_v36 = vpop.f32.mrb[40].mxu0 }
 0x1a4   : > { %v3050_v37 = vadd.f32 %v3049_v36, %v3009_v30  ;;  %v3051_v38 = vpop.f32.mrb[41].mxu0 }
 0x1a5   : > { %v3052_v39 = vpop.f32.mrb[42].mxu0  ;;  %v3090_v40 = vpop.f32.mrb[40].mxu1 }
 0x1a6   : > { %v3053_v41 = vadd.f32 %v3052_v39, %v3012_v34  ;;  %v3091_v42 = vadd.f32 %v3090_v40, %v3050_v37  ;;  %v3054_v43 = vpop.f32.mrb[43].mxu0  ;;  %v3092_v44 = vpop.f32.mrb[41].mxu1 }
 0x1a7   : > { %v3093_v45 = vpop.f32.mrb[42].mxu1 }
 0x1a8   : > { %v3094_v46 = vadd.f32 %v3093_v45, %v3053_v41  ;;  %v3095_v47 = vpop.f32.mrb[43].mxu1 }
 0x1ab   : > { %v3131_v48 = vpop.f32.mrb[44].mxu0 }
 0x1ac   : > { %v3132_v49 = vadd.f32 %v3131_v48, %v3091_v42  ;;  %v3133_v50 = vpop.f32.mrb[45].mxu0 }
 0x1ad   : > { %v3134_v51 = vpop.f32.mrb[46].mxu0  ;;  %v3172_v52 = vpop.f32.mrb[44].mxu1 }
 0x1ae   : > { %v3135_v53 = vadd.f32 %v3134_v51, %v3094_v46  ;;  %v3173_v54 = vadd.f32 %v3172_v52, %v3132_v49  ;;  %v3136_v55 = vpop.f32.mrb[47].mxu0  ;;  %v3174_v56 = vpop.f32.mrb[45].mxu1 }
 0x1af   : > { %v3175_v57 = vpop.f32.mrb[46].mxu1 }
 0x1b0   : > { %v3176_v58 = vadd.f32 %v3175_v57, %v3135_v53  ;;  %v3177_v59 = vpop.f32.mrb[47].mxu1 }
 0x1b3   : > { %v3213_v60 = vpop.f32.mrb[48].mxu0 }
 0x1b4   : > { %v3214_v61 = vadd.f32 %v3213_v60, %v3173_v54  ;;  %v3215_v62 = vpop.f32.mrb[49].mxu0 }
 0x1b5   : > { %v3216_v63 = vpop.f32.mrb[50].mxu0  ;;  %v3254_v0 = vpop.f32.mrb[48].mxu1 }
 0x1b6   : > { %v3217_v1 = vadd.f32 %v3216_v63, %v3176_v58  ;;  %v3255_v2 = vadd.f32 %v3254_v0, %v3214_v61  ;;  %v3218_v3 = vpop.f32.mrb[51].mxu0  ;;  %v3256_v4 = vpop.f32.mrb[49].mxu1 }
 0x1b7   : > { %v3257_v5 = vpop.f32.mrb[50].mxu1 }
 0x1b8   : > { %v3258_v6 = vadd.f32 %v3257_v5, %v3217_v1  ;;  %v3259_v7 = vpop.f32.mrb[51].mxu1 }
 0x1bb   : > { %v3295_v8 = vpop.f32.mrb[52].mxu0 }
 0x1bc   : > { %v3296_v9 = vadd.f32 %v3295_v8, %v3255_v2  ;;  %v3297_v10 = vpop.f32.mrb[53].mxu0 }
 0x1bd   : > { %v3298_v11 = vpop.f32.mrb[54].mxu0  ;;  %v3336_v12 = vpop.f32.mrb[52].mxu1 }
 0x1be   : > { %v3299_v13 = vadd.f32 %v3298_v11, %v3258_v6  ;;  %v3337_v15 = vadd.f32 %v3336_v12, %v3296_v9  ;;  %v3300_v16 = vpop.f32.mrb[55].mxu0  ;;  %v3338_v17 = vpop.f32.mrb[53].mxu1 }
 0x1bf   : > { %v3339_v18 = vpop.f32.mrb[54].mxu1 }
 0x1c0   : > { %v3340_v19 = vadd.f32 %v3339_v18, %v3299_v13  ;;  %v3341_v20 = vpop.f32.mrb[55].mxu1 }
 0x1c3   : > { %v3377_v21 = vpop.f32.mrb[56].mxu0 }
 0x1c4   : > { %v3378_v22 = vadd.f32 %v3377_v21, %v3337_v15  ;;  %v3379_v23 = vpop.f32.mrb[57].mxu0 }
 0x1c5   : > { %v3380_v24 = vpop.f32.mrb[58].mxu0  ;;  %v3418_v25 = vpop.f32.mrb[56].mxu1 }
 0x1c6   : > { %v3381_v26 = vadd.f32 %v3380_v24, %v3340_v19  ;;  %v3419_v14 = vadd.f32 %v3418_v25, %v3378_v22  ;;  %v3382_v27 = vpop.f32.mrb[59].mxu0  ;;  %v3420_v28 = vpop.f32.mrb[57].mxu1 }
 0x1c7   : > { %v3421_v29 = vpop.f32.mrb[58].mxu1 }
 0x1c8   : > { %v3422_v30 = vadd.f32 %v3421_v29, %v3381_v26  ;;  %v3423_v31 = vpop.f32.mrb[59].mxu1 }
 0x1cb   : > { %v3459_v32 = vpop.f32.mrb[60].mxu0 }
 0x1cc   : > { %v3460_v33 = vadd.f32 %v3459_v32, %v3419_v14  ;;  %v3461_v34 = vpop.f32.mrb[61].mxu0 }
 0x1cd   : > { %v3462_v35 = vpop.f32.mrb[62].mxu0  ;;  %v3500_v36 = vpop.f32.mrb[60].mxu1 }
 0x1ce   : > { %v3463_v37 = vadd.f32 %v3462_v35, %v3422_v30  ;;  %v3501_v38 = vadd.f32 %v3500_v36, %v3460_v33  ;;  %v3464_v39 = vpop.f32.mrb[63].mxu0  ;;  %v3502_v40 = vpop.f32.mrb[61].mxu1 }
 0x1cf   : > { %v3503_v41 = vpop.f32.mrb[62].mxu1 }
 0x1d0   : > { %v3504_v42 = vadd.f32 %v3503_v41, %v3463_v37  ;;  %v3505_v43 = vpop.f32.mrb[63].mxu1 }
 0x1d3   : > { %v3541_v44 = vpop.f32.mrb[64].mxu0 }
 0x1d4   : > { %v3542_v45 = vadd.f32 %v3541_v44, %v3501_v38  ;;  %v3543_v46 = vpop.f32.mrb[65].mxu0 }
 0x1d5   : > { %v3544_v47 = vpop.f32.mrb[66].mxu0  ;;  %v3582_v48 = vpop.f32.mrb[64].mxu1 }
 0x1d6   : > { %v3545_v49 = vadd.f32 %v3544_v47, %v3504_v42  ;;  %v3583_v50 = vadd.f32 %v3582_v48, %v3542_v45  ;;  %v3546_v51 = vpop.f32.mrb[67].mxu0  ;;  %v3584_v52 = vpop.f32.mrb[65].mxu1 }
 0x1d7   : > { %v3585_v53 = vpop.f32.mrb[66].mxu1 }
 0x1d8   : > { %v3586_v54 = vadd.f32 %v3585_v53, %v3545_v49  ;;  %v3587_v55 = vpop.f32.mrb[67].mxu1 }
 0x1db   : > { %v3623_v56 = vpop.f32.mrb[68].mxu0 }
 0x1dc   : > { %v3624_v57 = vadd.f32 %v3623_v56, %v3583_v50  ;;  %v3625_v58 = vpop.f32.mrb[69].mxu0 }
 0x1dd   : > { %v3626_v59 = vpop.f32.mrb[70].mxu0  ;;  %v3664_v60 = vpop.f32.mrb[68].mxu1 }
 0x1de   : > { %v3627_v61 = vadd.f32 %v3626_v59, %v3586_v54  ;;  %v3665_v62 = vadd.f32 %v3664_v60, %v3624_v57  ;;  %v3628_v63 = vpop.f32.mrb[71].mxu0  ;;  %v3666_v0 = vpop.f32.mrb[69].mxu1 }
 0x1df   : > { %v3667_v1 = vpop.f32.mrb[70].mxu1 }
 0x1e0   : > { %v3668_v2 = vadd.f32 %v3667_v1, %v3627_v61  ;;  %v3669_v3 = vpop.f32.mrb[71].mxu1 }
 0x1e3   : > { %v3705_v4 = vpop.f32.mrb[72].mxu0 }
 0x1e4   : > { %v3706_v5 = vadd.f32 %v3705_v4, %v3665_v62  ;;  %v3707_v6 = vpop.f32.mrb[73].mxu0 }
 0x1e5   : > { %v3708_v7 = vpop.f32.mrb[74].mxu0  ;;  %v3746_v8 = vpop.f32.mrb[72].mxu1 }
 0x1e6   : > { %v3709_v9 = vadd.f32 %v3708_v7, %v3668_v2  ;;  %v3747_v10 = vadd.f32 %v3746_v8, %v3706_v5  ;;  %v3710_v11 = vpop.f32.mrb[75].mxu0  ;;  %v3748_v12 = vpop.f32.mrb[73].mxu1 }
 0x1e7   : > { %v3749_v13 = vpop.f32.mrb[74].mxu1 }
 0x1e8   : > { %v3750_v15 = vadd.f32 %v3749_v13, %v3709_v9  ;;  %v3751_v16 = vpop.f32.mrb[75].mxu1 }
 0x1eb   : > { %v3787_v17 = vpop.f32.mrb[76].mxu0 }
 0x1ec   : > { %v3788_v18 = vadd.f32 %v3787_v17, %v3747_v10  ;;  %v3789_v19 = vpop.f32.mrb[77].mxu0 }
 0x1ed   : > { %v3790_v20 = vpop.f32.mrb[78].mxu0  ;;  %v3828_v21 = vpop.f32.mrb[76].mxu1 }
 0x1ee   : > { %v3791_v22 = vadd.f32 %v3790_v20, %v3750_v15  ;;  %v3829_v23 = vadd.f32 %v3828_v21, %v3788_v18  ;;  %v3792_v24 = vpop.f32.mrb[79].mxu0  ;;  %v3830_v25 = vpop.f32.mrb[77].mxu1 }
 0x1ef   : > { %v3831_v26 = vpop.f32.mrb[78].mxu1 }
 0x1f0   : > { %v3832_v14 = vadd.f32 %v3831_v26, %v3791_v22  ;;  %v3833_v27 = vpop.f32.mrb[79].mxu1 }
 0x1f3   : > { %v3869_v28 = vpop.f32.mrb[80].mxu0 }
 0x1f4   : > { %v3870_v29 = vadd.f32 %v3869_v28, %v3829_v23  ;;  %v3871_v30 = vpop.f32.mrb[81].mxu0 }
 0x1f5   : > { %v3872_v31 = vpop.f32.mrb[82].mxu0  ;;  %v3910_v32 = vpop.f32.mrb[80].mxu1 }
 0x1f6   : > { %v3873_v33 = vadd.f32 %v3872_v31, %v3832_v14  ;;  %v3911_v34 = vadd.f32 %v3910_v32, %v3870_v29  ;;  %v3874_v35 = vpop.f32.mrb[83].mxu0  ;;  %v3912_v36 = vpop.f32.mrb[81].mxu1 }
 0x1f7   : > { %v3913_v37 = vpop.f32.mrb[82].mxu1 }
 0x1f8   : > { %v3914_v38 = vadd.f32 %v3913_v37, %v3873_v33  ;;  %v3915_v39 = vpop.f32.mrb[83].mxu1 }
 0x1fb   : > { %v3951_v40 = vpop.f32.mrb[84].mxu0 }
 0x1fc   : > { %v3952_v41 = vadd.f32 %v3951_v40, %v3911_v34  ;;  %v3953_v42 = vpop.f32.mrb[85].mxu0 }
 0x1fd   : > { %v3954_v43 = vpop.f32.mrb[86].mxu0  ;;  %v3992_v44 = vpop.f32.mrb[84].mxu1 }
 0x1fe   : > { %v3955_v45 = vadd.f32 %v3954_v43, %v3914_v38  ;;  %v3993_v46 = vadd.f32 %v3992_v44, %v3952_v41  ;;  %v3956_v47 = vpop.f32.mrb[87].mxu0  ;;  %v3994_v48 = vpop.f32.mrb[85].mxu1 }
 0x1ff   : > { %v3995_v49 = vpop.f32.mrb[86].mxu1 }
 0x200   : > { %v3996_v50 = vadd.f32 %v3995_v49, %v3955_v45  ;;  %v3997_v51 = vpop.f32.mrb[87].mxu1 }
 0x203   : > { %v4033_v52 = vpop.f32.mrb[88].mxu0 }
 0x204   : > { %v4034_v53 = vadd.f32 %v4033_v52, %v3993_v46  ;;  %v4035_v54 = vpop.f32.mrb[89].mxu0 }
 0x205   : > { %v4036_v55 = vpop.f32.mrb[90].mxu0  ;;  %v4074_v56 = vpop.f32.mrb[88].mxu1 }
 0x206   : > { %v4037_v57 = vadd.f32 %v4036_v55, %v3996_v50  ;;  %v4075_v58 = vadd.f32 %v4074_v56, %v4034_v53  ;;  %v4038_v59 = vpop.f32.mrb[91].mxu0  ;;  %v4076_v60 = vpop.f32.mrb[89].mxu1 }
 0x207   : > { %v4077_v61 = vpop.f32.mrb[90].mxu1 }
 0x208   : > { %v4078_v62 = vadd.f32 %v4077_v61, %v4037_v57  ;;  %v4079_v63 = vpop.f32.mrb[91].mxu1 }
 0x20b   : > { %v4115_v0 = vpop.f32.mrb[92].mxu0 }
 0x20c   : > { %v4116_v1 = vadd.f32 %v4115_v0, %v4075_v58  ;;  %v4117_v2 = vpop.f32.mrb[93].mxu0 }
 0x20d   : > { %v4118_v3 = vpop.f32.mrb[94].mxu0  ;;  %v4156_v4 = vpop.f32.mrb[92].mxu1 }
 0x20e   : > { %v4119_v5 = vadd.f32 %v4118_v3, %v4078_v62  ;;  %v4157_v6 = vadd.f32 %v4156_v4, %v4116_v1  ;;  %v4120_v7 = vpop.f32.mrb[95].mxu0  ;;  %v4158_v8 = vpop.f32.mrb[93].mxu1 }
 0x20f   : > { %v4159_v9 = vpop.f32.mrb[94].mxu1 }
 0x210   : > { %v4160_v10 = vadd.f32 %v4159_v9, %v4119_v5  ;;  %v4161_v11 = vpop.f32.mrb[95].mxu1 }
 0x213   : > { %v4197_v12 = vpop.f32.mrb[96].mxu0 }
 0x214   : > { %v4198_v13 = vadd.f32 %v4197_v12, %v4157_v6  ;;  %v4199_v15 = vpop.f32.mrb[97].mxu0 }
 0x215   : > { %v4200_v16 = vpop.f32.mrb[98].mxu0  ;;  %v4238_v17 = vpop.f32.mrb[96].mxu1 }
 0x216   : > { %v4201_v18 = vadd.f32 %v4200_v16, %v4160_v10  ;;  %v4239_v19 = vadd.f32 %v4238_v17, %v4198_v13  ;;  %v4202_v20 = vpop.f32.mrb[99].mxu0  ;;  %v4240_v21 = vpop.f32.mrb[97].mxu1 }
 0x217   : > { %v4241_v22 = vpop.f32.mrb[98].mxu1 }
 0x218   : > { %v4242_v23 = vadd.f32 %v4241_v22, %v4201_v18  ;;  %v4243_v24 = vpop.f32.mrb[99].mxu1 }
 0x21b   : > { %v4279_v25 = vpop.f32.mrb[100].mxu0 }
 0x21c   : > { %v4280_v26 = vadd.f32 %v4279_v25, %v4239_v19  ;;  %v4281_v14 = vpop.f32.mrb[101].mxu0 }
 0x21d   : > { %v4282_v27 = vpop.f32.mrb[102].mxu0  ;;  %v4320_v28 = vpop.f32.mrb[100].mxu1 }
 0x21e   : > { %v4283_v29 = vadd.f32 %v4282_v27, %v4242_v23  ;;  %v4321_v30 = vadd.f32 %v4320_v28, %v4280_v26  ;;  %v4284_v31 = vpop.f32.mrb[103].mxu0  ;;  %v4322_v32 = vpop.f32.mrb[101].mxu1 }
 0x21f   : > { %v4323_v33 = vpop.f32.mrb[102].mxu1 }
 0x220   : > { %v4324_v34 = vadd.f32 %v4323_v33, %v4283_v29  ;;  %v4325_v35 = vpop.f32.mrb[103].mxu1 }
 0x223   : > { %v4361_v36 = vpop.f32.mrb[104].mxu0 }
 0x224   : > { %v4362_v37 = vadd.f32 %v4361_v36, %v4321_v30  ;;  %v4363_v38 = vpop.f32.mrb[105].mxu0  ;;  %v481_v36 = vld [vmem:[#allocation2] sm:$0xff] }
 0x225   : > { %v4364_v39 = vpop.f32.mrb[106].mxu0  ;;  %v4402_v40 = vpop.f32.mrb[104].mxu1 }
 0x226   : > { %v4365_v41 = vadd.f32 %v4364_v39, %v4324_v34  ;;  %v4403_v42 = vadd.f32 %v4402_v40, %v4362_v37  ;;  %v4366_v43 = vpop.f32.mrb[107].mxu0  ;;  %v4404_v44 = vpop.f32.mrb[105].mxu1 }
 0x227   : > { %v4405_v45 = vpop.f32.mrb[106].mxu1 }
 0x228   : > { %v4406_v46 = vadd.f32 %v4405_v45, %v4365_v41  ;;  %v4407_v47 = vpop.f32.mrb[107].mxu1 }
 0x22b   : > { %v4443_v48 = vpop.f32.mrb[108].mxu0 }
 0x22c   : > { %v4444_v49 = vadd.f32 %v4443_v48, %v4403_v42  ;;  %v4445_v50 = vpop.f32.mrb[109].mxu0  ;;  %v482_v42 = vld [vmem:[#allocation2 + $0x8] sm:$0x1f] }
 0x22d   : > { %v4446_v51 = vpop.f32.mrb[110].mxu0  ;;  %v4484_v52 = vpop.f32.mrb[108].mxu1 }
 0x22e   : > { %v4447_v53 = vadd.f32 %v4446_v51, %v4406_v46  ;;  %v4485_v54 = vadd.f32 %v4484_v52, %v4444_v49  ;;  %v4448_v55 = vpop.f32.mrb[111].mxu0  ;;  %v4486_v56 = vpop.f32.mrb[109].mxu1 }
 0x22f   : > { %v4487_v57 = vpop.f32.mrb[110].mxu1 }
 0x230   : > { %v4488_v58 = vadd.f32 %v4487_v57, %v4447_v53  ;;  %v4489_v59 = vpop.f32.mrb[111].mxu1 }
 0x233   : > { %v4525_v60 = vpop.f32.mrb[112].mxu0 }
 0x234   : > { %v4526_v61 = vadd.f32 %v4525_v60, %v4485_v54  ;;  %v4527_v62 = vpop.f32.mrb[113].mxu0 }
 0x235   : > { %v4528_v63 = vpop.f32.mrb[114].mxu0  ;;  %v4566_v0 = vpop.f32.mrb[112].mxu1 }
 0x236   : > { %v4529_v1 = vadd.f32 %v4528_v63, %v4488_v58  ;;  %v4567_v2 = vadd.f32 %v4566_v0, %v4526_v61  ;;  %v4530_v3 = vpop.f32.mrb[115].mxu0  ;;  %v4568_v4 = vpop.f32.mrb[113].mxu1 }
 0x237   : > { %v4569_v5 = vpop.f32.mrb[114].mxu1 }
 0x238   : > { %v4570_v6 = vadd.f32 %v4569_v5, %v4529_v1  ;;  %v4571_v7 = vpop.f32.mrb[115].mxu1 }
 0x23b   : > { %v4607_v8 = vpop.f32.mrb[116].mxu0 }
 0x23c   : > { %v4608_v9 = vadd.f32 %v4607_v8, %v4567_v2  ;;  %v4609_v10 = vpop.f32.mrb[117].mxu0 }
 0x23d   : > { %v4610_v11 = vpop.f32.mrb[118].mxu0  ;;  %v4648_v12 = vpop.f32.mrb[116].mxu1 }
 0x23e   : > { %v4611_v13 = vadd.f32 %v4610_v11, %v4570_v6  ;;  %v4649_v15 = vadd.f32 %v4648_v12, %v4608_v9  ;;  %v4612_v16 = vpop.f32.mrb[119].mxu0  ;;  %v4650_v17 = vpop.f32.mrb[117].mxu1 }
 0x23f   : > { %v4651_v18 = vpop.f32.mrb[118].mxu1 }
 0x240   : > { %v4652_v19 = vadd.f32 %v4651_v18, %v4611_v13  ;;  %v4653_v20 = vpop.f32.mrb[119].mxu1 }
 0x243   : > { %v4689_v21 = vpop.f32.mrb[120].mxu0 }
 0x244   : > { %v4690_v22 = vadd.f32 %v4689_v21, %v4649_v15  ;;  %v4691_v23 = vpop.f32.mrb[121].mxu0 }
 0x245   : > { %v4692_v24 = vpop.f32.mrb[122].mxu0  ;;  %v4730_v25 = vpop.f32.mrb[120].mxu1 }
 0x246   : > { %v4693_v26 = vadd.f32 %v4692_v24, %v4652_v19  ;;  %v4731_v14 = vadd.f32 %v4730_v25, %v4690_v22  ;;  %v4694_v27 = vpop.f32.mrb[123].mxu0  ;;  %v4732_v28 = vpop.f32.mrb[121].mxu1 }
 0x247   : > { %v4733_v29 = vpop.f32.mrb[122].mxu1 }
 0x248   : > { %v4734_v30 = vadd.f32 %v4733_v29, %v4693_v26  ;;  %v4735_v31 = vpop.f32.mrb[123].mxu1 }
 0x24b   : > { %v4771_v32 = vpop.f32.mrb[124].mxu0 }
 0x24c   : > { %v4772_v33 = vadd.f32 %v4771_v32, %v4731_v14  ;;  %v4773_v34 = vpop.f32.mrb[125].mxu0 }
 0x24d   : > { %v4774_v35 = vpop.f32.mrb[126].mxu0  ;;  %v4812_v37 = vpop.f32.mrb[124].mxu1 }
 0x24e   : > { %v4775_v38 = vadd.f32 %v4774_v35, %v4734_v30  ;;  %v4813_v39 = vadd.f32 %v4812_v37, %v4772_v33  ;;  %v4776_v40 = vpop.f32.mrb[127].mxu0  ;;  %v4814_v41 = vpop.f32.mrb[125].mxu1  ;;  %4828 = sbr.rel (%p5063_p13) target bundleno = 605 (0x25d), region = 59 }
 0x24f   : > { %v4815_v43 = vpop.f32.mrb[126].mxu1 }
 0x250   : > { %v4819_v44 = vadd.f32 %v4813_v39, %v481_v36  ;;  %v4816_v45 = vadd.f32 %v4815_v43, %v4775_v38  ;;  %v4817_v46 = vpop.f32.mrb[127].mxu1 }
 0x252   : > { %4822 = vst.msk [vmem:[#allocation2] sm:$0xff] %vm4821_vm2, %v4819_v44  ;;  %v4820_v47 = vadd.f32 %v4816_v45, %v482_v42 }
 0x254   : > { %4824 = vst.msk [vmem:[#allocation2 + $0x8] sm:$0x1f] %vm4823_vm3, %v4820_v47 }
 0x259   : > { %v4829_v48 = vld [vmem:[#allocation2] sm:$0xff] }
 0x25a   : > { %4831 = vst.msk [vmem:[%s5548_s25] sm:$0xff] %vm4821_vm2, %v4829_v48 }
 0x25b   : > { %v4830_v49 = vld [vmem:[#allocation2 + $0x8] sm:$0x1f] }
 0x25c   : > { %4832 = vst.msk [vmem:[%s5548_s25 + $0x8] sm:$0x1f] %vm4823_vm3, %v4830_v49 }
 0x25d PF: > { %s12_s15 = sadd.s32 1, %s5196_s15   ;;  %s5822_s9 = smov %s5176_s10 }
 0x25e   : > { %p9_p0 = scmp.ge.s32.totalorder %s12_s15, 6   ;;  %s5823_s10 = smov %s5266_s24 }
 0x25f   : > { %s5824_s11 = smov %s5188_s13  ;;  %s5825_s12 = smov %s5192_s14 }
 0x260   : > { %s5826_s13 = smov %s5829_s16  ;;  %s5827_s14 = smov %s5833_s17 }
 0x261   :  { %11 = sbr.rel (!%p9_p0) target bundleno = 4 (0x4), region = 97 }

</bundles_post_ra>
